<compile_context>
chip_gen: v7x
topology: tpu7x:2x2x1
jax: 0.10.0
libtpu: 0.0.40
codegen_flags: <defaults>
</compile_context>

<pallas_src>
import functools

import jax
import jax.numpy as jnp
from jax import lax
from jax.experimental import pallas as pl
from jax.experimental.pallas import tpu as pltpu


# ----------------------------- VMEM-aware tiling -----------------------------

def _tpu_vmem_bytes():
    try:
        info = pltpu.get_tpu_info()
        v = getattr(info, "vmem_capacity_bytes", None)
        if v:
            return int(v)
    except Exception:
        pass
    return 64 * 1024 * 1024        # conservative fallback (v7x per-TC)


_VMEM_BYTES = _tpu_vmem_bytes()
_VMEM_BUDGET = int(_VMEM_BYTES * 0.35)     # cap for double-buffered blocks + temps
_VMEM_LIMIT = int(_VMEM_BYTES * 0.75)      # explicit scoped-VMEM limit for Mosaic


def _cparams(sem):
    return pltpu.CompilerParams(dimension_semantics=sem,
                                vmem_limit_bytes=_VMEM_LIMIT)


def _row_tile(n, c, n_bufs, target, min_blocks=2):
    """Row tile for (n, c) kernels: VMEM-aware, >= min_blocks grid steps (v7x)."""
    bytes_per_row = max(1, n_bufs * 2 * c * 4)     # double-buffered f32 blocks
    cap = max(8, _VMEM_BUDGET // bytes_per_row)
    tn = min(n, target, cap)
    if n >= 16:
        tn = min(tn, -(-n // min_blocks))          # keep >=2 steps for megacore
    if tn >= 8:
        tn = (tn // 8) * 8
    return max(1, min(tn, n))


def _dw_row_tile(r, w, c, min_blocks=2):
    bytes_per_row = max(1, 8 * w * c * 4)          # 2 blocks x 2 bufs + f32 temps
    cap = max(8, _VMEM_BUDGET // bytes_per_row)
    tr = min(r, 128, cap)
    if r >= 16:
        tr = min(tr, -(-r // min_blocks))
    if tr >= 8:
        tr = (tr // 8) * 8
    return max(1, min(tr, r))


def _head_tile(bh, s, d, min_blocks=2):
    per_head = max(1, (10 * s * d + 2 * s * s) * 4)
    cap = max(1, _VMEM_BUDGET // per_head)
    hb = min(bh, 8, cap)
    if bh >= 2:
        hb = min(hb, -(-bh // min_blocks))
    return max(1, hb)


# ----------------------------- Pallas kernels -----------------------------

def _layernorm_kernel(x_ref, w_ref, b_ref, o_ref):
    x = x_ref[...].astype(jnp.float32)                        # (TN, C)
    mu = jnp.mean(x, axis=-1, keepdims=True)
    xc = x - mu
    var = jnp.mean(xc * xc, axis=-1, keepdims=True)           # unbiased=False
    y = xc * lax.rsqrt(var + 1e-5) * w_ref[...] + b_ref[...]
    o_ref[...] = y.astype(o_ref.dtype)


def _dwconv_proj_kernel(x_ref, w_ref, b_ref, wt_ref, pb_ref, o_ref,
                        *, pad, taps, mxu_dtype):
    """Folded (1,7)+(1,11) depthwise conv (11 taps) fused with the 1x1 proj.

    Halo along w handled with masked pltpu.roll (XLU) -> no jnp.pad pre-pass and
    no unaligned sublane slices.
    """
    x = x_ref[...].astype(jnp.float32)                        # (TR, W, C)
    w = w_ref[...].astype(jnp.float32)                        # (taps, C)
    tr, W, c = x.shape
    col = lax.broadcasted_iota(jnp.int32, (1, W, 1), 1)
    acc = jnp.zeros((tr, W, c), jnp.float32)
    for k in range(taps):
        d = k - pad                                           # out[j] += x[j+d]*w[k]
        if d == 0:
            acc = acc + x * w[k][None, None, :]
        else:
            shifted = pltpu.roll(x, shift=(-d) % W, axis=1)   # shifted[j] = x[j+d]
            valid = (col + d >= 0) & (col + d < W)            # zero-pad boundary
            acc = acc + jnp.where(valid, shifted, 0.0) * w[k][None, None, :]
    acc = acc + b_ref[...].astype(jnp.float32)                # (1, C) broadcast
    # fused 1x1 projection (channel mix) on the MXU
    acc2d = acc.reshape(tr * W, c).astype(mxu_dtype)
    y = jnp.dot(acc2d, wt_ref[...].astype(mxu_dtype),
                preferred_element_type=jnp.float32)
    y = y + pb_ref[...].astype(jnp.float32)
    o_ref[...] = y.reshape(tr, W, c).astype(o_ref.dtype)


def _attn_kernel(q_ref, kv_ref, o_ref, *, mxu_dtype):
    q = q_ref[...].astype(jnp.float32)                        # (HB, S, D)
    kv = kv_ref[...].astype(jnp.float32)                      # K == V, one DMA
    # F.normalize: x / max(||x||, 1e-12)  ==  x * rsqrt(max(sum(x^2), 1e-24))
    qn = q * lax.rsqrt(jnp.maximum(jnp.sum(q * q, -1, keepdims=True), 1e-24))
    kn = kv * lax.rsqrt(jnp.maximum(jnp.sum(kv * kv, -1, keepdims=True), 1e-24))
    # batched q @ k^T without an explicit transpose (contract last dims)
    s = lax.dot_general(qn.astype(mxu_dtype), kn.astype(mxu_dtype),
                        dimension_numbers=(((2,), (2,)), ((0,), (0,))),
                        preferred_element_type=jnp.float32)   # (HB, S, S)
    s = s - jnp.max(s, -1, keepdims=True)
    p = jnp.exp(s)
    p = p * pl.reciprocal(jnp.sum(p, -1, keepdims=True), approx=True)
    o = lax.dot_general(p.astype(mxu_dtype), kv.astype(mxu_dtype),
                        dimension_numbers=(((2,), (1,)), ((0,), (0,))),
                        preferred_element_type=jnp.float32) + qn
    o_ref[...] = o.astype(o_ref.dtype)


def _final_proj_kernel(o3_ref, o4_ref, r1_ref, r2_ref, wt_ref, b2_ref, o_ref,
                       *, mxu_dtype):
    # proj(out3) + proj(out4) + x1n + x2n == proj(out3+out4) + 2b + x1n + x2n
    s = o3_ref[...].astype(jnp.float32) + o4_ref[...].astype(jnp.float32)
    y = jnp.dot(s.astype(mxu_dtype), wt_ref[...].astype(mxu_dtype),
                preferred_element_type=jnp.float32)
    y = (y + b2_ref[...].astype(jnp.float32)
         + r1_ref[...].astype(jnp.float32) + r2_ref[...].astype(jnp.float32))
    o_ref[...] = y.astype(o_ref.dtype)


# ----------------------------- Pallas wrappers -----------------------------

def layernorm_nhwc(x, weight, bias):
    b, h, w, c = x.shape
    n = b * h * w
    tn = _row_tile(n, c, n_bufs=2, target=4096)
    x2d = x.reshape(n, c)
    y2d = pl.pallas_call(
        _layernorm_kernel,
        out_shape=jax.ShapeDtypeStruct((n, c), x.dtype),
        grid=(pl.cdiv(n, tn),),
        in_specs=[pl.BlockSpec((tn, c), lambda i: (i, 0)),
                  pl.BlockSpec((1, c), lambda i: (0, 0)),
                  pl.BlockSpec((1, c), lambda i: (0, 0))],
        out_specs=pl.BlockSpec((tn, c), lambda i: (i, 0)),
        compiler_params=_cparams(("parallel",)),
    )(x2d, weight, bias)
    return y2d.reshape(b, h, w, c)


def dwconv_proj(x, w_eff, b_eff, proj_wt, proj_b, mxu_dtype):
    """(dw(1,7) + dw(1,11)) followed by the shared 1x1 projection, fused."""
    b, h, w, c = x.shape
    r = b * h
    x3d = x.reshape(r, w, c)               # conv is along w only; rows independent
    tr = _dw_row_tile(r, w, c)
    kern = functools.partial(_dwconv_proj_kernel, pad=5, taps=11,
                             mxu_dtype=mxu_dtype)
    y3d = pl.pallas_call(
        kern,
        out_shape=jax.ShapeDtypeStruct((r, w, c), x.dtype),
        grid=(pl.cdiv(r, tr),),
        in_specs=[pl.BlockSpec((tr, w, c), lambda i: (i, 0, 0)),
                  pl.BlockSpec((11, c), lambda i: (0, 0)),
                  pl.BlockSpec((1, c), lambda i: (0, 0)),
                  pl.BlockSpec((c, c), lambda i: (0, 0)),   # proj weight resident
                  pl.BlockSpec((1, c), lambda i: (0, 0))],
        out_specs=pl.BlockSpec((tr, w, c), lambda i: (i, 0, 0)),
        compiler_params=_cparams(("parallel",)),
    )(x3d, w_eff, b_eff, proj_wt, proj_b)
    return y3d.reshape(b, h, w, c)


def norm_attn(q, kv, mxu_dtype):
    """softmax(l2norm(q) @ l2norm(kv)^T) @ kv + l2norm(q); q,kv: (BH, S, D)."""
    bh, s, d = q.shape
    hb = _head_tile(bh, s, d)
    kern = functools.partial(_attn_kernel, mxu_dtype=mxu_dtype)
    return pl.pallas_call(
        kern,
        out_shape=jax.ShapeDtypeStruct((bh, s, d), q.dtype),
        grid=(pl.cdiv(bh, hb),),
        in_specs=[pl.BlockSpec((hb, s, d), lambda i: (i, 0, 0)),
                  pl.BlockSpec((hb, s, d), lambda i: (i, 0, 0))],
        out_specs=pl.BlockSpec((hb, s, d), lambda i: (i, 0, 0)),
        compiler_params=_cparams(("parallel",)),
    )(q, kv)


def final_project(out3_c, out4_c, r1, r2, proj_wt, proj_b2, mxu_dtype):
    b, h, w, c = out3_c.shape
    n = b * h * w
    tn = _row_tile(n, c, n_bufs=6, target=2048)
    kern = functools.partial(_final_proj_kernel, mxu_dtype=mxu_dtype)
    row_spec = pl.BlockSpec((tn, c), lambda i: (i, 0))
    y2d = pl.pallas_call(
        kern,
        out_shape=jax.ShapeDtypeStruct((n, c), out3_c.dtype),
        grid=(pl.cdiv(n, tn),),
        in_specs=[row_spec, row_spec, row_spec, row_spec,
                  pl.BlockSpec((c, c), lambda i: (0, 0)),
                  pl.BlockSpec((1, c), lambda i: (0, 0))],
        out_specs=row_spec,
        compiler_params=_cparams(("parallel",)),
    )(out3_c.reshape(n, c), out4_c.reshape(n, c),
      r1.reshape(n, c), r2.reshape(n, c), proj_wt, proj_b2)
    return y2d.reshape(b, h, w, c)


# --------------------- rearrange glue (channel-last side) ---------------------
# Kept as XLA transposes — see module docstring for why they are not folded
# into BlockSpecs.

def rearr_hwc_nhwc(x, heads):
    b, h, w, c = x.shape
    cp = c // heads
    return jnp.transpose(x.reshape(b, h, w, heads, cp),
                         (0, 3, 1, 2, 4)).reshape(b, heads, h, w * cp)


def rearr_whc_nhwc(x, heads):
    b, h, w, c = x.shape
    cp = c // heads
    return jnp.transpose(x.reshape(b, h, w, heads, cp),
                         (0, 3, 2, 1, 4)).reshape(b, heads, w, h * cp)


def inv_hwc_nhwc(t, heads, h, w):
    b = t.shape[0]
    cp = t.shape[-1] // w
    return jnp.transpose(t.reshape(b, heads, h, w, cp),
                         (0, 2, 3, 1, 4)).reshape(b, h, w, heads * cp)


def inv_whc_nhwc(t, heads, h, w):
    b = t.shape[0]
    cp = t.shape[-1] // h
    return jnp.transpose(t.reshape(b, heads, w, h, cp),
                         (0, 3, 2, 1, 4)).reshape(b, h, w, heads * cp)


# --------------------- rearrange glue (NCHW, reference only) ---------------------

def rearr_hwc(x, heads):
    b, c, h, w = x.shape
    cp = c // heads
    return jnp.transpose(x.reshape(b, heads, cp, h, w),
                         (0, 1, 3, 4, 2)).reshape(b, heads, h, w * cp)


def rearr_whc(x, heads):
    b, c, h, w = x.shape
    cp = c // heads
    return jnp.transpose(x.reshape(b, heads, cp, h, w),
                         (0, 1, 4, 3, 2)).reshape(b, heads, w, h * cp)


def inv_hwc(t, heads, h, w):
    b = t.shape[0]
    cp = t.shape[-1] // w
    return jnp.transpose(t.reshape(b, heads, h, w, cp),
                         (0, 1, 4, 2, 3)).reshape(b, heads * cp, h, w)


def inv_whc(t, heads, h, w):
    b = t.shape[0]
    cp = t.shape[-1] // h
    return jnp.transpose(t.reshape(b, heads, w, h, cp),
                         (0, 1, 4, 3, 2)).reshape(b, heads * cp, h, w)


# ----------------------------- parameter prep -----------------------------

def prepare_params(params):
    """One-time parameter preparation (hoisted off the launch path)."""
    c = params["proj_w"].shape[0]
    # fold the (1,7) filter (pad=3) into the (1,11) filter (pad=5): taps 2..8
    dw1_w = params["c12_w"].T.at[2:9].add(params["c11_w"].T)        # (11, c)
    dw2_w = params["c22_w"].T.at[2:9].add(params["c21_w"].T)
    return {
        "ln1_w": params["ln1_w"].reshape(1, c),
        "ln1_b": params["ln1_b"].reshape(1, c),
        "ln2_w": params["ln2_w"].reshape(1, c),
        "ln2_b": params["ln2_b"].reshape(1, c),
        "proj_wt": params["proj_w"].T,                               # (c_in, c_out)
        "proj_b1": params["proj_b"].reshape(1, c),
        "proj_b2": (2.0 * params["proj_b"]).reshape(1, c),
        "dw1_w": dw1_w,
        "dw1_b": (params["c11_b"] + params["c12_b"]).reshape(1, c),
        "dw2_w": dw2_w,
        "dw2_b": (params["c21_b"] + params["c22_b"]).reshape(1, c),
    }


# ----------------------------- FDFA forward -----------------------------

def fdfa_forward(prepared, x1, x2, num_heads, mxu_dtype=jnp.float32):
    b, c, h, w = x1.shape
    assert h == w, "FDFA's attention matmuls require square spatial dims"

    # single NCHW -> NHWC pass per input; everything downstream stays channel-last
    x1c = jnp.transpose(x1, (0, 2, 3, 1))
    x2c = jnp.transpose(x2, (0, 2, 3, 1))

    x1n = layernorm_nhwc(x1c, prepared["ln1_w"], prepared["ln1_b"])
    x2n = layernorm_nhwc(x2c, prepared["ln2_w"], prepared["ln2_b"])

    # fused: (dw7 + dw11) -> 1x1 projection, one kernel each
    out1 = dwconv_proj(x1n, prepared["dw1_w"], prepared["dw1_b"],
                       prepared["proj_wt"], prepared["proj_b1"], mxu_dtype)
    out2 = dwconv_proj(x2n, prepared["dw2_w"], prepared["dw2_b"],
                       prepared["proj_wt"], prepared["proj_b1"], mxu_dtype)

    k1 = rearr_hwc_nhwc(x1n, num_heads)          # (b, head, h, w*cp), v1 == k1
    k2 = rearr_whc_nhwc(x2n, num_heads)          # (b, head, w, h*cp), v2 == k2
    q2 = rearr_hwc_nhwc(out1, num_heads)
    q1 = rearr_whc_nhwc(out2, num_heads)

    bh = b * num_heads
    s = h                                        # == w
    d = k1.shape[-1]
    # two attention calls, no concat/slice glue, kv passed once
    out3 = norm_attn(q1.reshape(bh, s, d), k1.reshape(bh, s, d),
                     mxu_dtype).reshape(b, num_heads, s, d)
    out4 = norm_attn(q2.reshape(bh, s, d), k2.reshape(bh, s, d),
                     mxu_dtype).reshape(b, num_heads, s, d)

    out3_c = inv_hwc_nhwc(out3, num_heads, h, w)
    out4_c = inv_whc_nhwc(out4, num_heads, h, w)

    # fused epilogue: proj(out3+out4) + 2b + x1n + x2n
    out_c = final_project(out3_c, out4_c, x1n, x2n,
                          prepared["proj_wt"], prepared["proj_b2"], mxu_dtype)
    return jnp.transpose(out_c, (0, 3, 1, 2))


# ----------------------------- pure-JAX reference -----------------------------

def _ln_ref(x, wv, bv):
    xc = jnp.transpose(x, (0, 2, 3, 1))
    mu = xc.mean(-1, keepdims=True)
    var = ((xc - mu) ** 2).mean(-1, keepdims=True)
    y = (xc - mu) / jnp.sqrt(var + 1e-5) * wv + bv
    return jnp.transpose(y, (0, 3, 1, 2))


def _dw_ref(x, wk, bk, K, pad):
    b, c, h, w = x.shape
    xp = jnp.pad(x, ((0, 0), (0, 0), (0, 0), (pad, pad)))
    out = jnp.zeros_like(x) + bk[None, :, None, None]
    for k in range(K):
        out = out + xp[:, :, :, k:k + w] * wk[None, :, k, None, None]
    return out


def _proj_ref(x, W, bv):
    return jnp.einsum('bchw,oc->bohw', x, W) + bv[None, :, None, None]


def _attn_ref(q, k, v):
    qn = q / jnp.maximum(jnp.linalg.norm(q, axis=-1, keepdims=True), 1e-12)
    kn = k / jnp.maximum(jnp.linalg.norm(k, axis=-1, keepdims=True), 1e-12)
    s = jnp.einsum('bhsd,bhtd->bhst', qn, kn)
    p = jax.nn.softmax(s, axis=-1)
    return jnp.einsum('bhst,bhtd->bhsd', p, v) + qn


def fdfa_reference(params, x1, x2, num_heads):
    b, c, h, w = x1.shape
    x1n = _ln_ref(x1, params["ln1_w"], params["ln1_b"])
    x2n = _ln_ref(x2, params["ln2_w"], params["ln2_b"])
    out1 = (_dw_ref(x1n, params["c11_w"], params["c11_b"], 7, 3)
            + _dw_ref(x1n, params["c12_w"], params["c12_b"], 11, 5))
    out2 = (_dw_ref(x2n, params["c21_w"], params["c21_b"], 7, 3)
            + _dw_ref(x2n, params["c22_w"], params["c22_b"], 11, 5))
    out1 = _proj_ref(out1, params["proj_w"], params["proj_b"])
    out2 = _proj_ref(out2, params["proj_w"], params["proj_b"])
    k1 = rearr_hwc(x1n, num_heads); v1 = k1
    k2 = rearr_whc(x2n, num_heads); v2 = k2
    q2 = rearr_hwc(out1, num_heads)
    q1 = rearr_whc(out2, num_heads)
    out3 = _attn_ref(q1, k1, v1)
    out4 = _attn_ref(q2, k2, v2)
    out3_4d = inv_hwc(out3, num_heads, h, w)
    out4_4d = inv_whc(out4, num_heads, h, w)
    return (_proj_ref(out3_4d, params["proj_w"], params["proj_b"])
            + _proj_ref(out4_4d, params["proj_w"], params["proj_b"])
            + x1n + x2n)


# ----------------------------- params & main -----------------------------

def init_params(key, dim):
    ks = jax.random.split(key, 10)
    return {
        "ln1_w": jnp.ones((dim,), jnp.float32),
        "ln1_b": jnp.zeros((dim,), jnp.float32),
        "ln2_w": jnp.ones((dim,), jnp.float32),
        "ln2_b": jnp.zeros((dim,), jnp.float32),
        "proj_w": jax.random.normal(ks[0], (dim, dim), jnp.float32) * 0.1,
        "proj_b": jax.random.normal(ks[1], (dim,), jnp.float32) * 0.1,
        "c11_w": jax.random.normal(ks[2], (dim, 7), jnp.float32) * 0.1,
        "c11_b": jax.random.normal(ks[3], (dim,), jnp.float32) * 0.1,
        "c12_w": jax.random.normal(ks[4], (dim, 11), jnp.float32) * 0.1,
        "c12_b": jax.random.normal(ks[5], (dim,), jnp.float32) * 0.1,
        "c21_w": jax.random.normal(ks[6], (dim, 7), jnp.float32) * 0.1,
        "c21_b": jax.random.normal(ks[7], (dim,), jnp.float32) * 0.1,
        "c22_w": jax.random.normal(ks[8], (dim, 11), jnp.float32) * 0.1,
        "c22_b": jax.random.normal(ks[9], (dim,), jnp.float32) * 0.1,
    }


if __name__ == "__main__":
    b, dim, heads, h, w = 2, 8, 2, 16, 16
    key = jax.random.PRNGKey(0)
    kx1, kx2, kp = jax.random.split(key, 3)
    x1 = jax.random.normal(kx1, (b, dim, h, w), jnp.float32)
    x2 = jax.random.normal(kx2, (b, dim, h, w), jnp.float32)
    params = init_params(kp, dim)
    prepared = prepare_params(params)          # one-time weight prep (hoisted)

    ref = fdfa_reference(params, x1, x2, heads)

    # strict correctness gate: f32 MXU operands
    fwd_f32 = jax.jit(functools.partial(fdfa_forward, num_heads=heads,
                                        mxu_dtype=jnp.float32))
    out_f32 = jax.block_until_ready(fwd_f32(prepared, x1, x2))
    assert out_f32.shape == (b, dim, h, w)
    if not bool(jnp.allclose(out_f32, ref, rtol=1e-3, atol=1e-3)):
        raise AssertionError("f32 Pallas FDFA output mismatches pure-JAX reference")

    # production path for v6e/v7x: bf16 MXU operands, f32 accumulation/statistics
    fwd_bf16 = jax.jit(functools.partial(fdfa_forward, num_heads=heads,
                                         mxu_dtype=jnp.bfloat16))
    out_bf16 = jax.block_until_ready(fwd_bf16(prepared, x1, x2))
    if not bool(jnp.allclose(out_bf16, ref, rtol=1e-1, atol=1e-1)):
        raise AssertionError("bf16-MXU Pallas FDFA output drifted from reference")

    print("KERNEL_OK")
</pallas_src>

<mosaic_0001>
module attributes {stable_mosaic.version = 11 : i64} {
  func.func @_layernorm_kernel(%arg0: i32, %arg1: memref<256x8xf32, #tpu.memory_space<vmem>>, %arg2: memref<1x8xf32, #tpu.memory_space<vmem>>, %arg3: memref<1x8xf32, #tpu.memory_space<vmem>>, %arg4: memref<256x8xf32, #tpu.memory_space<vmem>>) attributes {dimension_semantics = [#tpu.dimension_semantics<parallel>], iteration_bounds = array<i64: 2>, scalar_prefetch = 0 : i64, scratch_operands = 0 : i64, tpu.core_type = #tpu.core_type<tc>, window_params = [{transform_indices = @transform_0, window_bounds = array<i64: 256, 8>}, {pipeline_mode = #tpu.pipeline_mode<synchronous>, transform_indices = @transform_1, window_bounds = array<i64: 1, 8>}, {pipeline_mode = #tpu.pipeline_mode<synchronous>, transform_indices = @transform_2, window_bounds = array<i64: 1, 8>}, {transform_indices = @transform_3, window_bounds = array<i64: 256, 8>}]} {
    %c0 = arith.constant 0 : index
    %c0_0 = arith.constant 0 : index
    %0 = vector.load %arg1[%c0, %c0_0] : memref<256x8xf32, #tpu.memory_space<vmem>>, vector<256x8xf32>
    %cst = arith.constant dense<0.000000e+00> : vector<256xf32>
    %1 = vector.multi_reduction <add>, %0, %cst [1] : vector<256x8xf32> to vector<256xf32>
    %2 = vector.shape_cast %1 : vector<256xf32> to vector<256x1xf32>
    %cst_1 = arith.constant 8.000000e+00 : f32
    %3 = vector.broadcast %cst_1 : f32 to vector<256x1xf32>
    %4 = arith.divf %2, %3 : vector<256x1xf32>
    %5 = vector.broadcast %4 : vector<256x1xf32> to vector<256x8xf32>
    %6 = arith.subf %0, %5 : vector<256x8xf32>
    %7 = arith.mulf %6, %6 : vector<256x8xf32>
    %cst_2 = arith.constant dense<0.000000e+00> : vector<256xf32>
    %8 = vector.multi_reduction <add>, %7, %cst_2 [1] : vector<256x8xf32> to vector<256xf32>
    %9 = vector.shape_cast %8 : vector<256xf32> to vector<256x1xf32>
    %cst_3 = arith.constant 8.000000e+00 : f32
    %10 = vector.broadcast %cst_3 : f32 to vector<256x1xf32>
    %11 = arith.divf %9, %10 : vector<256x1xf32>
    %cst_4 = arith.constant 9.99999974E-6 : f32
    %12 = vector.broadcast %cst_4 : f32 to vector<256x1xf32>
    %13 = arith.addf %11, %12 : vector<256x1xf32>
    %14 = math.rsqrt %13 : vector<256x1xf32>
    %15 = vector.broadcast %14 : vector<256x1xf32> to vector<256x8xf32>
    %16 = arith.mulf %6, %15 : vector<256x8xf32>
    %c0_5 = arith.constant 0 : index
    %c0_6 = arith.constant 0 : index
    %17 = vector.load %arg2[%c0_5, %c0_6] : memref<1x8xf32, #tpu.memory_space<vmem>>, vector<1x8xf32>
    %18 = vector.broadcast %17 : vector<1x8xf32> to vector<256x8xf32>
    %19 = arith.mulf %16, %18 : vector<256x8xf32>
    %c0_7 = arith.constant 0 : index
    %c0_8 = arith.constant 0 : index
    %20 = vector.load %arg3[%c0_7, %c0_8] : memref<1x8xf32, #tpu.memory_space<vmem>>, vector<1x8xf32>
    %21 = vector.broadcast %20 : vector<1x8xf32> to vector<256x8xf32>
    %22 = arith.addf %19, %21 : vector<256x8xf32>
    %c0_9 = arith.constant 0 : index
    %c0_10 = arith.constant 0 : index
    %23 = vector.load %arg4[%c0_9, %c0_10] : memref<256x8xf32, #tpu.memory_space<vmem>>, vector<256x8xf32>
    tpu.vector_store %arg4[%c0_9, %c0_10], %22 {strides = array<i32>} : memref<256x8xf32, #tpu.memory_space<vmem>>, vector<256x8xf32>,
    return
  }
  func.func @transform_0(%arg0: i32) -> (i32, i32) {
    %c0_i32 = arith.constant 0 : i32
    %c0_i32_0 = arith.constant 0 : i32
    return %arg0, %c0_i32 : i32, i32
  }
  func.func @transform_1(%arg0: i32) -> (i32, i32) {
    %c0_i32 = arith.constant 0 : i32
    %c0_i32_0 = arith.constant 0 : i32
    %c0_i32_1 = arith.constant 0 : i32
    return %c0_i32, %c0_i32_0 : i32, i32
  }
  func.func @transform_2(%arg0: i32) -> (i32, i32) {
    %c0_i32 = arith.constant 0 : i32
    %c0_i32_0 = arith.constant 0 : i32
    %c0_i32_1 = arith.constant 0 : i32
    return %c0_i32, %c0_i32_0 : i32, i32
  }
  func.func @transform_3(%arg0: i32) -> (i32, i32) {
    %c0_i32 = arith.constant 0 : i32
    %c0_i32_0 = arith.constant 0 : i32
    return %arg0, %c0_i32 : i32, i32
  }
}

module attributes {stable_mosaic.version = 11 : i64} {
  func.func @_dwconv_proj_kernel(%arg0: i32, %arg1: memref<16x16x8xf32, #tpu.memory_space<vmem>>, %arg2: memref<11x8xf32, #tpu.memory_space<vmem>>, %arg3: memref<1x8xf32, #tpu.memory_space<vmem>>, %arg4: memref<8x8xf32, #tpu.memory_space<vmem>>, %arg5: memref<1x8xf32, #tpu.memory_space<vmem>>, %arg6: memref<16x16x8xf32, #tpu.memory_space<vmem>>) attributes {dimension_semantics = [#tpu.dimension_semantics<parallel>], iteration_bounds = array<i64: 2>, scalar_prefetch = 0 : i64, scratch_operands = 0 : i64, tpu.core_type = #tpu.core_type<tc>, window_params = [{transform_indices = @transform_0, window_bounds = array<i64: 16, 16, 8>}, {pipeline_mode = #tpu.pipeline_mode<synchronous>, transform_indices = @transform_1, window_bounds = array<i64: 11, 8>}, {pipeline_mode = #tpu.pipeline_mode<synchronous>, transform_indices = @transform_2, window_bounds = array<i64: 1, 8>}, {pipeline_mode = #tpu.pipeline_mode<synchronous>, transform_indices = @transform_3, window_bounds = array<i64: 8, 8>}, {pipeline_mode = #tpu.pipeline_mode<synchronous>, transform_indices = @transform_4, window_bounds = array<i64: 1, 8>}, {transform_indices = @transform_5, window_bounds = array<i64: 16, 16, 8>}]} {
    %c0 = arith.constant 0 : index
    %c0_0 = arith.constant 0 : index
    %c0_1 = arith.constant 0 : index
    %0 = vector.load %arg1[%c0, %c0_0, %c0_1] : memref<16x16x8xf32, #tpu.memory_space<vmem>>, vector<16x16x8xf32>
    %c0_2 = arith.constant 0 : index
    %c0_3 = arith.constant 0 : index
    %1 = vector.load %arg2[%c0_2, %c0_3] : memref<11x8xf32, #tpu.memory_space<vmem>>, vector<11x8xf32>
    %2 = tpu.iota {dimensions = array<i32: 1>} : vector<1x16x1xi32>
    %cst = arith.constant 0.000000e+00 : f32
    %3 = vector.broadcast %cst : f32 to vector<16x16x8xf32>
    %c5_i32 = arith.constant 5 : i32
    %4 = tpu.dynamic_rotate %0 by %c5_i32 dim 1 : vector<16x16x8xf32>, i32 -> vector<16x16x8xf32>
    %c-5_i32 = arith.constant -5 : i32
    %5 = vector.broadcast %c-5_i32 : i32 to vector<1x16x1xi32>
    %6 = arith.addi %2, %5 : vector<1x16x1xi32>
    %c0_i32 = arith.constant 0 : i32
    %7 = vector.broadcast %c0_i32 : i32 to vector<1x16x1xi32>
    %8 = arith.cmpi sge, %6, %7 : vector<1x16x1xi32>
    %c-5_i32_4 = arith.constant -5 : i32
    %9 = vector.broadcast %c-5_i32_4 : i32 to vector<1x16x1xi32>
    %10 = arith.addi %2, %9 : vector<1x16x1xi32>
    %c16_i32 = arith.constant 16 : i32
    %11 = vector.broadcast %c16_i32 : i32 to vector<1x16x1xi32>
    %12 = arith.cmpi slt, %10, %11 : vector<1x16x1xi32>
    %13 = arith.andi %8, %12 : vector<1x16x1xi1>
    %cst_5 = arith.constant 0.000000e+00 : f32
    %14 = vector.shape_cast %13 : vector<1x16x1xi1> to vector<1x16x1xi1>
    %15 = vector.broadcast %14 : vector<1x16x1xi1> to vector<16x16x8xi1>
    %16 = vector.broadcast %cst_5 : f32 to vector<16x16x8xf32>
    %17 = arith.select %15, %4, %16 : vector<16x16x8xi1>, vector<16x16x8xf32>
    %18 = vector.extract_strided_slice %1 {offsets = [0, 0], sizes = [1, 8], strides = [1, 1]} : vector<11x8xf32> to vector<1x8xf32>
    %19 = vector.shape_cast %18 : vector<1x8xf32> to vector<8xf32>
    %20 = vector.shape_cast %19 : vector<8xf32> to vector<1x1x8xf32>
    %21 = vector.broadcast %20 : vector<1x1x8xf32> to vector<16x16x8xf32>
    %22 = arith.mulf %17, %21 : vector<16x16x8xf32>
    %23 = arith.addf %3, %22 : vector<16x16x8xf32>
    %c4_i32 = arith.constant 4 : i32
    %24 = tpu.dynamic_rotate %0 by %c4_i32 dim 1 : vector<16x16x8xf32>, i32 -> vector<16x16x8xf32>
    %c-4_i32 = arith.constant -4 : i32
    %25 = vector.broadcast %c-4_i32 : i32 to vector<1x16x1xi32>
    %26 = arith.addi %2, %25 : vector<1x16x1xi32>
    %c0_i32_6 = arith.constant 0 : i32
    %27 = vector.broadcast %c0_i32_6 : i32 to vector<1x16x1xi32>
    %28 = arith.cmpi sge, %26, %27 : vector<1x16x1xi32>
    %c-4_i32_7 = arith.constant -4 : i32
    %29 = vector.broadcast %c-4_i32_7 : i32 to vector<1x16x1xi32>
    %30 = arith.addi %2, %29 : vector<1x16x1xi32>
    %c16_i32_8 = arith.constant 16 : i32
    %31 = vector.broadcast %c16_i32_8 : i32 to vector<1x16x1xi32>
    %32 = arith.cmpi slt, %30, %31 : vector<1x16x1xi32>
    %33 = arith.andi %28, %32 : vector<1x16x1xi1>
    %cst_9 = arith.constant 0.000000e+00 : f32
    %34 = vector.shape_cast %33 : vector<1x16x1xi1> to vector<1x16x1xi1>
    %35 = vector.broadcast %34 : vector<1x16x1xi1> to vector<16x16x8xi1>
    %36 = vector.broadcast %cst_9 : f32 to vector<16x16x8xf32>
    %37 = arith.select %35, %24, %36 : vector<16x16x8xi1>, vector<16x16x8xf32>
    %38 = vector.extract_strided_slice %1 {offsets = [1, 0], sizes = [1, 8], strides = [1, 1]} : vector<11x8xf32> to vector<1x8xf32>
    %39 = vector.shape_cast %38 : vector<1x8xf32> to vector<8xf32>
    %40 = vector.shape_cast %39 : vector<8xf32> to vector<1x1x8xf32>
    %41 = vector.broadcast %40 : vector<1x1x8xf32> to vector<16x16x8xf32>
    %42 = arith.mulf %37, %41 : vector<16x16x8xf32>
    %43 = arith.addf %23, %42 : vector<16x16x8xf32>
    %c3_i32 = arith.constant 3 : i32
    %44 = tpu.dynamic_rotate %0 by %c3_i32 dim 1 : vector<16x16x8xf32>, i32 -> vector<16x16x8xf32>
    %c-3_i32 = arith.constant -3 : i32
    %45 = vector.broadcast %c-3_i32 : i32 to vector<1x16x1xi32>
    %46 = arith.addi %2, %45 : vector<1x16x1xi32>
    %c0_i32_10 = arith.constant 0 : i32
    %47 = vector.broadcast %c0_i32_10 : i32 to vector<1x16x1xi32>
    %48 = arith.cmpi sge, %46, %47 : vector<1x16x1xi32>
    %c-3_i32_11 = arith.constant -3 : i32
    %49 = vector.broadcast %c-3_i32_11 : i32 to vector<1x16x1xi32>
    %50 = arith.addi %2, %49 : vector<1x16x1xi32>
    %c16_i32_12 = arith.constant 16 : i32
    %51 = vector.broadcast %c16_i32_12 : i32 to vector<1x16x1xi32>
    %52 = arith.cmpi slt, %50, %51 : vector<1x16x1xi32>
    %53 = arith.andi %48, %52 : vector<1x16x1xi1>
    %cst_13 = arith.constant 0.000000e+00 : f32
    %54 = vector.shape_cast %53 : vector<1x16x1xi1> to vector<1x16x1xi1>
    %55 = vector.broadcast %54 : vector<1x16x1xi1> to vector<16x16x8xi1>
    %56 = vector.broadcast %cst_13 : f32 to vector<16x16x8xf32>
    %57 = arith.select %55, %44, %56 : vector<16x16x8xi1>, vector<16x16x8xf32>
    %58 = vector.extract_strided_slice %1 {offsets = [2, 0], sizes = [1, 8], strides = [1, 1]} : vector<11x8xf32> to vector<1x8xf32>
    %59 = vector.shape_cast %58 : vector<1x8xf32> to vector<8xf32>
    %60 = vector.shape_cast %59 : vector<8xf32> to vector<1x1x8xf32>
    %61 = vector.broadcast %60 : vector<1x1x8xf32> to vector<16x16x8xf32>
    %62 = arith.mulf %57, %61 : vector<16x16x8xf32>
    %63 = arith.addf %43, %62 : vector<16x16x8xf32>
    %c2_i32 = arith.constant 2 : i32
    %64 = tpu.dynamic_rotate %0 by %c2_i32 dim 1 : vector<16x16x8xf32>, i32 -> vector<16x16x8xf32>
    %c-2_i32 = arith.constant -2 : i32
    %65 = vector.broadcast %c-2_i32 : i32 to vector<1x16x1xi32>
    %66 = arith.addi %2, %65 : vector<1x16x1xi32>
    %c0_i32_14 = arith.constant 0 : i32
    %67 = vector.broadcast %c0_i32_14 : i32 to vector<1x16x1xi32>
    %68 = arith.cmpi sge, %66, %67 : vector<1x16x1xi32>
    %c-2_i32_15 = arith.constant -2 : i32
    %69 = vector.broadcast %c-2_i32_15 : i32 to vector<1x16x1xi32>
    %70 = arith.addi %2, %69 : vector<1x16x1xi32>
    %c16_i32_16 = arith.constant 16 : i32
    %71 = vector.broadcast %c16_i32_16 : i32 to vector<1x16x1xi32>
    %72 = arith.cmpi slt, %70, %71 : vector<1x16x1xi32>
    %73 = arith.andi %68, %72 : vector<1x16x1xi1>
    %cst_17 = arith.constant 0.000000e+00 : f32
    %74 = vector.shape_cast %73 : vector<1x16x1xi1> to vector<1x16x1xi1>
    %75 = vector.broadcast %74 : vector<1x16x1xi1> to vector<16x16x8xi1>
    %76 = vector.broadcast %cst_17 : f32 to vector<16x16x8xf32>
    %77 = arith.select %75, %64, %76 : vector<16x16x8xi1>, vector<16x16x8xf32>
    %78 = vector.extract_strided_slice %1 {offsets = [3, 0], sizes = [1, 8], strides = [1, 1]} : vector<11x8xf32> to vector<1x8xf32>
    %79 = vector.shape_cast %78 : vector<1x8xf32> to vector<8xf32>
    %80 = vector.shape_cast %79 : vector<8xf32> to vector<1x1x8xf32>
    %81 = vector.broadcast %80 : vector<1x1x8xf32> to vector<16x16x8xf32>
    %82 = arith.mulf %77, %81 : vector<16x16x8xf32>
    %83 = arith.addf %63, %82 : vector<16x16x8xf32>
    %c1_i32 = arith.constant 1 : i32
    %84 = tpu.dynamic_rotate %0 by %c1_i32 dim 1 : vector<16x16x8xf32>, i32 -> vector<16x16x8xf32>
    %c-1_i32 = arith.constant -1 : i32
    %85 = vector.broadcast %c-1_i32 : i32 to vector<1x16x1xi32>
    %86 = arith.addi %2, %85 : vector<1x16x1xi32>
    %c0_i32_18 = arith.constant 0 : i32
    %87 = vector.broadcast %c0_i32_18 : i32 to vector<1x16x1xi32>
    %88 = arith.cmpi sge, %86, %87 : vector<1x16x1xi32>
    %c-1_i32_19 = arith.constant -1 : i32
    %89 = vector.broadcast %c-1_i32_19 : i32 to vector<1x16x1xi32>
    %90 = arith.addi %2, %89 : vector<1x16x1xi32>
    %c16_i32_20 = arith.constant 16 : i32
    %91 = vector.broadcast %c16_i32_20 : i32 to vector<1x16x1xi32>
    %92 = arith.cmpi slt, %90, %91 : vector<1x16x1xi32>
    %93 = arith.andi %88, %92 : vector<1x16x1xi1>
    %cst_21 = arith.constant 0.000000e+00 : f32
    %94 = vector.shape_cast %93 : vector<1x16x1xi1> to vector<1x16x1xi1>
    %95 = vector.broadcast %94 : vector<1x16x1xi1> to vector<16x16x8xi1>
    %96 = vector.broadcast %cst_21 : f32 to vector<16x16x8xf32>
    %97 = arith.select %95, %84, %96 : vector<16x16x8xi1>, vector<16x16x8xf32>
    %98 = vector.extract_strided_slice %1 {offsets = [4, 0], sizes = [1, 8], strides = [1, 1]} : vector<11x8xf32> to vector<1x8xf32>
    %99 = vector.shape_cast %98 : vector<1x8xf32> to vector<8xf32>
    %100 = vector.shape_cast %99 : vector<8xf32> to vector<1x1x8xf32>
    %101 = vector.broadcast %100 : vector<1x1x8xf32> to vector<16x16x8xf32>
    %102 = arith.mulf %97, %101 : vector<16x16x8xf32>
    %103 = arith.addf %83, %102 : vector<16x16x8xf32>
    %104 = vector.extract_strided_slice %1 {offsets = [5, 0], sizes = [1, 8], strides = [1, 1]} : vector<11x8xf32> to vector<1x8xf32>
    %105 = vector.shape_cast %104 : vector<1x8xf32> to vector<8xf32>
    %106 = vector.shape_cast %105 : vector<8xf32> to vector<1x1x8xf32>
    %107 = vector.broadcast %106 : vector<1x1x8xf32> to vector<16x16x8xf32>
    %108 = arith.mulf %0, %107 : vector<16x16x8xf32>
    %109 = arith.addf %103, %108 : vector<16x16x8xf32>
    %c15_i32 = arith.constant 15 : i32
    %110 = tpu.dynamic_rotate %0 by %c15_i32 dim 1 : vector<16x16x8xf32>, i32 -> vector<16x16x8xf32>
    %c1_i32_22 = arith.constant 1 : i32
    %111 = vector.broadcast %c1_i32_22 : i32 to vector<1x16x1xi32>
    %112 = arith.addi %2, %111 : vector<1x16x1xi32>
    %c0_i32_23 = arith.constant 0 : i32
    %113 = vector.broadcast %c0_i32_23 : i32 to vector<1x16x1xi32>
    %114 = arith.cmpi sge, %112, %113 : vector<1x16x1xi32>
    %c1_i32_24 = arith.constant 1 : i32
    %115 = vector.broadcast %c1_i32_24 : i32 to vector<1x16x1xi32>
    %116 = arith.addi %2, %115 : vector<1x16x1xi32>
    %c16_i32_25 = arith.constant 16 : i32
    %117 = vector.broadcast %c16_i32_25 : i32 to vector<1x16x1xi32>
    %118 = arith.cmpi slt, %116, %117 : vector<1x16x1xi32>
    %119 = arith.andi %114, %118 : vector<1x16x1xi1>
    %cst_26 = arith.constant 0.000000e+00 : f32
    %120 = vector.shape_cast %119 : vector<1x16x1xi1> to vector<1x16x1xi1>
    %121 = vector.broadcast %120 : vector<1x16x1xi1> to vector<16x16x8xi1>
    %122 = vector.broadcast %cst_26 : f32 to vector<16x16x8xf32>
    %123 = arith.select %121, %110, %122 : vector<16x16x8xi1>, vector<16x16x8xf32>
    %124 = vector.extract_strided_slice %1 {offsets = [6, 0], sizes = [1, 8], strides = [1, 1]} : vector<11x8xf32> to vector<1x8xf32>
    %125 = vector.shape_cast %124 : vector<1x8xf32> to vector<8xf32>
    %126 = vector.shape_cast %125 : vector<8xf32> to vector<1x1x8xf32>
    %127 = vector.broadcast %126 : vector<1x1x8xf32> to vector<16x16x8xf32>
    %128 = arith.mulf %123, %127 : vector<16x16x8xf32>
    %129 = arith.addf %109, %128 : vector<16x16x8xf32>
    %c14_i32 = arith.constant 14 : i32
    %130 = tpu.dynamic_rotate %0 by %c14_i32 dim 1 : vector<16x16x8xf32>, i32 -> vector<16x16x8xf32>
    %c2_i32_27 = arith.constant 2 : i32
    %131 = vector.broadcast %c2_i32_27 : i32 to vector<1x16x1xi32>
    %132 = arith.addi %2, %131 : vector<1x16x1xi32>
    %c0_i32_28 = arith.constant 0 : i32
    %133 = vector.broadcast %c0_i32_28 : i32 to vector<1x16x1xi32>
    %134 = arith.cmpi sge, %132, %133 : vector<1x16x1xi32>
    %c2_i32_29 = arith.constant 2 : i32
    %135 = vector.broadcast %c2_i32_29 : i32 to vector<1x16x1xi32>
    %136 = arith.addi %2, %135 : vector<1x16x1xi32>
    %c16_i32_30 = arith.constant 16 : i32
    %137 = vector.broadcast %c16_i32_30 : i32 to vector<1x16x1xi32>
    %138 = arith.cmpi slt, %136, %137 : vector<1x16x1xi32>
    %139 = arith.andi %134, %138 : vector<1x16x1xi1>
    %cst_31 = arith.constant 0.000000e+00 : f32
    %140 = vector.shape_cast %139 : vector<1x16x1xi1> to vector<1x16x1xi1>
    %141 = vector.broadcast %140 : vector<1x16x1xi1> to vector<16x16x8xi1>
    %142 = vector.broadcast %cst_31 : f32 to vector<16x16x8xf32>
    %143 = arith.select %141, %130, %142 : vector<16x16x8xi1>, vector<16x16x8xf32>
    %144 = vector.extract_strided_slice %1 {offsets = [7, 0], sizes = [1, 8], strides = [1, 1]} : vector<11x8xf32> to vector<1x8xf32>
    %145 = vector.shape_cast %144 : vector<1x8xf32> to vector<8xf32>
    %146 = vector.shape_cast %145 : vector<8xf32> to vector<1x1x8xf32>
    %147 = vector.broadcast %146 : vector<1x1x8xf32> to vector<16x16x8xf32>
    %148 = arith.mulf %143, %147 : vector<16x16x8xf32>
    %149 = arith.addf %129, %148 : vector<16x16x8xf32>
    %c13_i32 = arith.constant 13 : i32
    %150 = tpu.dynamic_rotate %0 by %c13_i32 dim 1 : vector<16x16x8xf32>, i32 -> vector<16x16x8xf32>
    %c3_i32_32 = arith.constant 3 : i32
    %151 = vector.broadcast %c3_i32_32 : i32 to vector<1x16x1xi32>
    %152 = arith.addi %2, %151 : vector<1x16x1xi32>
    %c0_i32_33 = arith.constant 0 : i32
    %153 = vector.broadcast %c0_i32_33 : i32 to vector<1x16x1xi32>
    %154 = arith.cmpi sge, %152, %153 : vector<1x16x1xi32>
    %c3_i32_34 = arith.constant 3 : i32
    %155 = vector.broadcast %c3_i32_34 : i32 to vector<1x16x1xi32>
    %156 = arith.addi %2, %155 : vector<1x16x1xi32>
    %c16_i32_35 = arith.constant 16 : i32
    %157 = vector.broadcast %c16_i32_35 : i32 to vector<1x16x1xi32>
    %158 = arith.cmpi slt, %156, %157 : vector<1x16x1xi32>
    %159 = arith.andi %154, %158 : vector<1x16x1xi1>
    %cst_36 = arith.constant 0.000000e+00 : f32
    %160 = vector.shape_cast %159 : vector<1x16x1xi1> to vector<1x16x1xi1>
    %161 = vector.broadcast %160 : vector<1x16x1xi1> to vector<16x16x8xi1>
    %162 = vector.broadcast %cst_36 : f32 to vector<16x16x8xf32>
    %163 = arith.select %161, %150, %162 : vector<16x16x8xi1>, vector<16x16x8xf32>
    %164 = vector.extract_strided_slice %1 {offsets = [8, 0], sizes = [1, 8], strides = [1, 1]} : vector<11x8xf32> to vector<1x8xf32>
    %165 = vector.shape_cast %164 : vector<1x8xf32> to vector<8xf32>
    %166 = vector.shape_cast %165 : vector<8xf32> to vector<1x1x8xf32>
    %167 = vector.broadcast %166 : vector<1x1x8xf32> to vector<16x16x8xf32>
    %168 = arith.mulf %163, %167 : vector<16x16x8xf32>
    %169 = arith.addf %149, %168 : vector<16x16x8xf32>
    %c12_i32 = arith.constant 12 : i32
    %170 = tpu.dynamic_rotate %0 by %c12_i32 dim 1 : vector<16x16x8xf32>, i32 -> vector<16x16x8xf32>
    %c4_i32_37 = arith.constant 4 : i32
    %171 = vector.broadcast %c4_i32_37 : i32 to vector<1x16x1xi32>
    %172 = arith.addi %2, %171 : vector<1x16x1xi32>
    %c0_i32_38 = arith.constant 0 : i32
    %173 = vector.broadcast %c0_i32_38 : i32 to vector<1x16x1xi32>
    %174 = arith.cmpi sge, %172, %173 : vector<1x16x1xi32>
    %c4_i32_39 = arith.constant 4 : i32
    %175 = vector.broadcast %c4_i32_39 : i32 to vector<1x16x1xi32>
    %176 = arith.addi %2, %175 : vector<1x16x1xi32>
    %c16_i32_40 = arith.constant 16 : i32
    %177 = vector.broadcast %c16_i32_40 : i32 to vector<1x16x1xi32>
    %178 = arith.cmpi slt, %176, %177 : vector<1x16x1xi32>
    %179 = arith.andi %174, %178 : vector<1x16x1xi1>
    %cst_41 = arith.constant 0.000000e+00 : f32
    %180 = vector.shape_cast %179 : vector<1x16x1xi1> to vector<1x16x1xi1>
    %181 = vector.broadcast %180 : vector<1x16x1xi1> to vector<16x16x8xi1>
    %182 = vector.broadcast %cst_41 : f32 to vector<16x16x8xf32>
    %183 = arith.select %181, %170, %182 : vector<16x16x8xi1>, vector<16x16x8xf32>
    %184 = vector.extract_strided_slice %1 {offsets = [9, 0], sizes = [1, 8], strides = [1, 1]} : vector<11x8xf32> to vector<1x8xf32>
    %185 = vector.shape_cast %184 : vector<1x8xf32> to vector<8xf32>
    %186 = vector.shape_cast %185 : vector<8xf32> to vector<1x1x8xf32>
    %187 = vector.broadcast %186 : vector<1x1x8xf32> to vector<16x16x8xf32>
    %188 = arith.mulf %183, %187 : vector<16x16x8xf32>
    %189 = arith.addf %169, %188 : vector<16x16x8xf32>
    %c11_i32 = arith.constant 11 : i32
    %190 = tpu.dynamic_rotate %0 by %c11_i32 dim 1 : vector<16x16x8xf32>, i32 -> vector<16x16x8xf32>
    %c5_i32_42 = arith.constant 5 : i32
    %191 = vector.broadcast %c5_i32_42 : i32 to vector<1x16x1xi32>
    %192 = arith.addi %2, %191 : vector<1x16x1xi32>
    %c0_i32_43 = arith.constant 0 : i32
    %193 = vector.broadcast %c0_i32_43 : i32 to vector<1x16x1xi32>
    %194 = arith.cmpi sge, %192, %193 : vector<1x16x1xi32>
    %c5_i32_44 = arith.constant 5 : i32
    %195 = vector.broadcast %c5_i32_44 : i32 to vector<1x16x1xi32>
    %196 = arith.addi %2, %195 : vector<1x16x1xi32>
    %c16_i32_45 = arith.constant 16 : i32
    %197 = vector.broadcast %c16_i32_45 : i32 to vector<1x16x1xi32>
    %198 = arith.cmpi slt, %196, %197 : vector<1x16x1xi32>
    %199 = arith.andi %194, %198 : vector<1x16x1xi1>
    %cst_46 = arith.constant 0.000000e+00 : f32
    %200 = vector.shape_cast %199 : vector<1x16x1xi1> to vector<1x16x1xi1>
    %201 = vector.broadcast %200 : vector<1x16x1xi1> to vector<16x16x8xi1>
    %202 = vector.broadcast %cst_46 : f32 to vector<16x16x8xf32>
    %203 = arith.select %201, %190, %202 : vector<16x16x8xi1>, vector<16x16x8xf32>
    %204 = vector.extract_strided_slice %1 {offsets = [10, 0], sizes = [1, 8], strides = [1, 1]} : vector<11x8xf32> to vector<1x8xf32>
    %205 = vector.shape_cast %204 : vector<1x8xf32> to vector<8xf32>
    %206 = vector.shape_cast %205 : vector<8xf32> to vector<1x1x8xf32>
    %207 = vector.broadcast %206 : vector<1x1x8xf32> to vector<16x16x8xf32>
    %208 = arith.mulf %203, %207 : vector<16x16x8xf32>
    %209 = arith.addf %189, %208 : vector<16x16x8xf32>
    %c0_47 = arith.constant 0 : index
    %c0_48 = arith.constant 0 : index
    %210 = vector.load %arg3[%c0_47, %c0_48] : memref<1x8xf32, #tpu.memory_space<vmem>>, vector<1x8xf32>
    %211 = vector.shape_cast %210 : vector<1x8xf32> to vector<1x1x8xf32>
    %212 = vector.broadcast %211 : vector<1x1x8xf32> to vector<16x16x8xf32>
    %213 = arith.addf %209, %212 : vector<16x16x8xf32>
    %214 = vector.shape_cast %213 : vector<16x16x8xf32> to vector<256x8xf32>
    %c0_49 = arith.constant 0 : index
    %c0_50 = arith.constant 0 : index
    %215 = vector.load %arg4[%c0_49, %c0_50] : memref<8x8xf32, #tpu.memory_space<vmem>>, vector<8x8xf32>
    %cst_51 = arith.constant dense<0.000000e+00> : vector<256x8xf32>
    %216 = tpu.matmul %214, %215, %cst_51 {dimension_numbers = #tpu.dot_dimension_numbers<[1], [0], [0], [1], [0, 0, 1, 1], [], []>} : vector<256x8xf32>, vector<8x8xf32>, vector<256x8xf32> -> vector<256x8xf32>
    %c0_52 = arith.constant 0 : index
    %c0_53 = arith.constant 0 : index
    %217 = vector.load %arg5[%c0_52, %c0_53] : memref<1x8xf32, #tpu.memory_space<vmem>>, vector<1x8xf32>
    %218 = vector.broadcast %217 : vector<1x8xf32> to vector<256x8xf32>
    %219 = arith.addf %216, %218 : vector<256x8xf32>
    %220 = vector.shape_cast %219 : vector<256x8xf32> to vector<16x16x8xf32>
    %c0_54 = arith.constant 0 : index
    %c0_55 = arith.constant 0 : index
    %c0_56 = arith.constant 0 : index
    %221 = vector.load %arg6[%c0_54, %c0_55, %c0_56] : memref<16x16x8xf32, #tpu.memory_space<vmem>>, vector<16x16x8xf32>
    tpu.vector_store %arg6[%c0_54, %c0_55, %c0_56], %220 {strides = array<i32>} : memref<16x16x8xf32, #tpu.memory_space<vmem>>, vector<16x16x8xf32>,
    return
  }
  func.func @transform_0(%arg0: i32) -> (i32, i32, i32) {
    %c0_i32 = arith.constant 0 : i32
    %c0_i32_0 = arith.constant 0 : i32
    %c0_i32_1 = arith.constant 0 : i32
    return %arg0, %c0_i32, %c0_i32_0 : i32, i32, i32
  }
  func.func @transform_1(%arg0: i32) -> (i32, i32) {
    %c0_i32 = arith.constant 0 : i32
    %c0_i32_0 = arith.constant 0 : i32
    %c0_i32_1 = arith.constant 0 : i32
    return %c0_i32, %c0_i32_0 : i32, i32
  }
  func.func @transform_2(%arg0: i32) -> (i32, i32) {
    %c0_i32 = arith.constant 0 : i32
    %c0_i32_0 = arith.constant 0 : i32
    %c0_i32_1 = arith.constant 0 : i32
    return %c0_i32, %c0_i32_0 : i32, i32
  }
  func.func @transform_3(%arg0: i32) -> (i32, i32) {
    %c0_i32 = arith.constant 0 : i32
    %c0_i32_0 = arith.constant 0 : i32
    %c0_i32_1 = arith.constant 0 : i32
    return %c0_i32, %c0_i32_0 : i32, i32
  }
  func.func @transform_4(%arg0: i32) -> (i32, i32) {
    %c0_i32 = arith.constant 0 : i32
    %c0_i32_0 = arith.constant 0 : i32
    %c0_i32_1 = arith.constant 0 : i32
    return %c0_i32, %c0_i32_0 : i32, i32
  }
  func.func @transform_5(%arg0: i32) -> (i32, i32, i32) {
    %c0_i32 = arith.constant 0 : i32
    %c0_i32_0 = arith.constant 0 : i32
    %c0_i32_1 = arith.constant 0 : i32
    return %arg0, %c0_i32, %c0_i32_0 : i32, i32, i32
  }
}

module attributes {stable_mosaic.version = 11 : i64} {
  func.func @_attn_kernel(%arg0: i32, %arg1: memref<2x16x64xf32, #tpu.memory_space<vmem>>, %arg2: memref<2x16x64xf32, #tpu.memory_space<vmem>>, %arg3: memref<2x16x64xf32, #tpu.memory_space<vmem>>) attributes {dimension_semantics = [#tpu.dimension_semantics<parallel>], iteration_bounds = array<i64: 2>, scalar_prefetch = 0 : i64, scratch_operands = 0 : i64, tpu.core_type = #tpu.core_type<tc>, window_params = [{transform_indices = @transform_0, window_bounds = array<i64: 2, 16, 64>}, {transform_indices = @transform_1, window_bounds = array<i64: 2, 16, 64>}, {transform_indices = @transform_2, window_bounds = array<i64: 2, 16, 64>}]} {
    %c0 = arith.constant 0 : index
    %c0_0 = arith.constant 0 : index
    %c0_1 = arith.constant 0 : index
    %0 = vector.load %arg1[%c0, %c0_0, %c0_1] : memref<2x16x64xf32, #tpu.memory_space<vmem>>, vector<2x16x64xf32>
    %c0_2 = arith.constant 0 : index
    %c0_3 = arith.constant 0 : index
    %c0_4 = arith.constant 0 : index
    %1 = vector.load %arg2[%c0_2, %c0_3, %c0_4] : memref<2x16x64xf32, #tpu.memory_space<vmem>>, vector<2x16x64xf32>
    %2 = arith.mulf %0, %0 : vector<2x16x64xf32>
    %cst = arith.constant dense<0.000000e+00> : vector<2x16xf32>
    %3 = vector.multi_reduction <add>, %2, %cst [2] : vector<2x16x64xf32> to vector<2x16xf32>
    %4 = vector.shape_cast %3 : vector<2x16xf32> to vector<2x16x1xf32>
    %cst_5 = arith.constant 1.000000e-24 : f32
    %5 = vector.broadcast %cst_5 : f32 to vector<2x16x1xf32>
    %6 = arith.maximumf %4, %5 : vector<2x16x1xf32>
    %7 = math.rsqrt %6 : vector<2x16x1xf32>
    %8 = vector.broadcast %7 : vector<2x16x1xf32> to vector<2x16x64xf32>
    %9 = arith.mulf %0, %8 : vector<2x16x64xf32>
    %10 = arith.mulf %1, %1 : vector<2x16x64xf32>
    %cst_6 = arith.constant dense<0.000000e+00> : vector<2x16xf32>
    %11 = vector.multi_reduction <add>, %10, %cst_6 [2] : vector<2x16x64xf32> to vector<2x16xf32>
    %12 = vector.shape_cast %11 : vector<2x16xf32> to vector<2x16x1xf32>
    %cst_7 = arith.constant 1.000000e-24 : f32
    %13 = vector.broadcast %cst_7 : f32 to vector<2x16x1xf32>
    %14 = arith.maximumf %12, %13 : vector<2x16x1xf32>
    %15 = math.rsqrt %14 : vector<2x16x1xf32>
    %16 = vector.broadcast %15 : vector<2x16x1xf32> to vector<2x16x64xf32>
    %17 = arith.mulf %1, %16 : vector<2x16x64xf32>
    %cst_8 = arith.constant dense<0.000000e+00> : vector<2x16x16xf32>
    %18 = tpu.matmul %9, %17, %cst_8 {dimension_numbers = #tpu.dot_dimension_numbers<[2], [2], [1], [1], [0, 0, 0, 1, 1, 1], [0], [0]>} : vector<2x16x64xf32>, vector<2x16x64xf32>, vector<2x16x16xf32> -> vector<2x16x16xf32>
    %cst_9 = arith.constant dense<0xFF800000> : vector<2x16xf32>
    %19 = vector.multi_reduction <maximumf>, %18, %cst_9 [2] : vector<2x16x16xf32> to vector<2x16xf32>
    %20 = vector.shape_cast %19 : vector<2x16xf32> to vector<2x16x1xf32>
    %21 = vector.broadcast %20 : vector<2x16x1xf32> to vector<2x16x16xf32>
    %22 = arith.subf %18, %21 : vector<2x16x16xf32>
    %23 = math.exp %22 : vector<2x16x16xf32>
    %cst_10 = arith.constant dense<0.000000e+00> : vector<2x16xf32>
    %24 = vector.multi_reduction <add>, %23, %cst_10 [2] : vector<2x16x16xf32> to vector<2x16xf32>
    %25 = vector.shape_cast %24 : vector<2x16xf32> to vector<2x16x1xf32>
    %26 = tpu.reciprocal %25 {approx = true} : vector<2x16x1xf32> -> vector<2x16x1xf32>
    %27 = vector.broadcast %26 : vector<2x16x1xf32> to vector<2x16x16xf32>
    %28 = arith.mulf %23, %27 : vector<2x16x16xf32>
    %cst_11 = arith.constant dense<0.000000e+00> : vector<2x16x64xf32>
    %29 = tpu.matmul %28, %1, %cst_11 {dimension_numbers = #tpu.dot_dimension_numbers<[2], [1], [1], [2], [0, 0, 0, 1, 1, 2], [0], [0]>} : vector<2x16x16xf32>, vector<2x16x64xf32>, vector<2x16x64xf32> -> vector<2x16x64xf32>
    %30 = arith.addf %29, %9 : vector<2x16x64xf32>
    %c0_12 = arith.constant 0 : index
    %c0_13 = arith.constant 0 : index
    %c0_14 = arith.constant 0 : index
    %31 = vector.load %arg3[%c0_12, %c0_13, %c0_14] : memref<2x16x64xf32, #tpu.memory_space<vmem>>, vector<2x16x64xf32>
    tpu.vector_store %arg3[%c0_12, %c0_13, %c0_14], %30 {strides = array<i32>} : memref<2x16x64xf32, #tpu.memory_space<vmem>>, vector<2x16x64xf32>,
    return
  }
  func.func @transform_0(%arg0: i32) -> (i32, i32, i32) {
    %c0_i32 = arith.constant 0 : i32
    %c0_i32_0 = arith.constant 0 : i32
    %c0_i32_1 = arith.constant 0 : i32
    return %arg0, %c0_i32, %c0_i32_0 : i32, i32, i32
  }
  func.func @transform_1(%arg0: i32) -> (i32, i32, i32) {
    %c0_i32 = arith.constant 0 : i32
    %c0_i32_0 = arith.constant 0 : i32
    %c0_i32_1 = arith.constant 0 : i32
    return %arg0, %c0_i32, %c0_i32_0 : i32, i32, i32
  }
  func.func @transform_2(%arg0: i32) -> (i32, i32, i32) {
    %c0_i32 = arith.constant 0 : i32
    %c0_i32_0 = arith.constant 0 : i32
    %c0_i32_1 = arith.constant 0 : i32
    return %arg0, %c0_i32, %c0_i32_0 : i32, i32, i32
  }
}

module attributes {stable_mosaic.version = 11 : i64} {
  func.func @_final_proj_kernel(%arg0: i32, %arg1: memref<256x8xf32, #tpu.memory_space<vmem>>, %arg2: memref<256x8xf32, #tpu.memory_space<vmem>>, %arg3: memref<256x8xf32, #tpu.memory_space<vmem>>, %arg4: memref<256x8xf32, #tpu.memory_space<vmem>>, %arg5: memref<8x8xf32, #tpu.memory_space<vmem>>, %arg6: memref<1x8xf32, #tpu.memory_space<vmem>>, %arg7: memref<256x8xf32, #tpu.memory_space<vmem>>) attributes {dimension_semantics = [#tpu.dimension_semantics<parallel>], iteration_bounds = array<i64: 2>, scalar_prefetch = 0 : i64, scratch_operands = 0 : i64, tpu.core_type = #tpu.core_type<tc>, window_params = [{transform_indices = @transform_0, window_bounds = array<i64: 256, 8>}, {transform_indices = @transform_1, window_bounds = array<i64: 256, 8>}, {transform_indices = @transform_2, window_bounds = array<i64: 256, 8>}, {transform_indices = @transform_3, window_bounds = array<i64: 256, 8>}, {pipeline_mode = #tpu.pipeline_mode<synchronous>, transform_indices = @transform_4, window_bounds = array<i64: 8, 8>}, {pipeline_mode = #tpu.pipeline_mode<synchronous>, transform_indices = @transform_5, window_bounds = array<i64: 1, 8>}, {transform_indices = @transform_6, window_bounds = array<i64: 256, 8>}]} {
    %c0 = arith.constant 0 : index
    %c0_0 = arith.constant 0 : index
    %0 = vector.load %arg1[%c0, %c0_0] : memref<256x8xf32, #tpu.memory_space<vmem>>, vector<256x8xf32>
    %c0_1 = arith.constant 0 : index
    %c0_2 = arith.constant 0 : index
    %1 = vector.load %arg2[%c0_1, %c0_2] : memref<256x8xf32, #tpu.memory_space<vmem>>, vector<256x8xf32>
    %2 = arith.addf %0, %1 : vector<256x8xf32>
    %c0_3 = arith.constant 0 : index
    %c0_4 = arith.constant 0 : index
    %3 = vector.load %arg5[%c0_3, %c0_4] : memref<8x8xf32, #tpu.memory_space<vmem>>, vector<8x8xf32>
    %cst = arith.constant dense<0.000000e+00> : vector<256x8xf32>
    %4 = tpu.matmul %2, %3, %cst {dimension_numbers = #tpu.dot_dimension_numbers<[1], [0], [0], [1], [0, 0, 1, 1], [], []>} : vector<256x8xf32>, vector<8x8xf32>, vector<256x8xf32> -> vector<256x8xf32>
    %c0_5 = arith.constant 0 : index
    %c0_6 = arith.constant 0 : index
    %5 = vector.load %arg6[%c0_5, %c0_6] : memref<1x8xf32, #tpu.memory_space<vmem>>, vector<1x8xf32>
    %6 = vector.broadcast %5 : vector<1x8xf32> to vector<256x8xf32>
    %7 = arith.addf %4, %6 : vector<256x8xf32>
    %c0_7 = arith.constant 0 : index
    %c0_8 = arith.constant 0 : index
    %8 = vector.load %arg3[%c0_7, %c0_8] : memref<256x8xf32, #tpu.memory_space<vmem>>, vector<256x8xf32>
    %9 = arith.addf %7, %8 : vector<256x8xf32>
    %c0_9 = arith.constant 0 : index
    %c0_10 = arith.constant 0 : index
    %10 = vector.load %arg4[%c0_9, %c0_10] : memref<256x8xf32, #tpu.memory_space<vmem>>, vector<256x8xf32>
    %11 = arith.addf %9, %10 : vector<256x8xf32>
    %c0_11 = arith.constant 0 : index
    %c0_12 = arith.constant 0 : index
    %12 = vector.load %arg7[%c0_11, %c0_12] : memref<256x8xf32, #tpu.memory_space<vmem>>, vector<256x8xf32>
    tpu.vector_store %arg7[%c0_11, %c0_12], %11 {strides = array<i32>} : memref<256x8xf32, #tpu.memory_space<vmem>>, vector<256x8xf32>,
    return
  }
  func.func @transform_0(%arg0: i32) -> (i32, i32) {
    %c0_i32 = arith.constant 0 : i32
    %c0_i32_0 = arith.constant 0 : i32
    return %arg0, %c0_i32 : i32, i32
  }
  func.func @transform_1(%arg0: i32) -> (i32, i32) {
    %c0_i32 = arith.constant 0 : i32
    %c0_i32_0 = arith.constant 0 : i32
    return %arg0, %c0_i32 : i32, i32
  }
  func.func @transform_2(%arg0: i32) -> (i32, i32) {
    %c0_i32 = arith.constant 0 : i32
    %c0_i32_0 = arith.constant 0 : i32
    return %arg0, %c0_i32 : i32, i32
  }
  func.func @transform_3(%arg0: i32) -> (i32, i32) {
    %c0_i32 = arith.constant 0 : i32
    %c0_i32_0 = arith.constant 0 : i32
    return %arg0, %c0_i32 : i32, i32
  }
  func.func @transform_4(%arg0: i32) -> (i32, i32) {
    %c0_i32 = arith.constant 0 : i32
    %c0_i32_0 = arith.constant 0 : i32
    %c0_i32_1 = arith.constant 0 : i32
    return %c0_i32, %c0_i32_0 : i32, i32
  }
  func.func @transform_5(%arg0: i32) -> (i32, i32) {
    %c0_i32 = arith.constant 0 : i32
    %c0_i32_0 = arith.constant 0 : i32
    %c0_i32_1 = arith.constant 0 : i32
    return %c0_i32, %c0_i32_0 : i32, i32
  }
  func.func @transform_6(%arg0: i32) -> (i32, i32) {
    %c0_i32 = arith.constant 0 : i32
    %c0_i32_0 = arith.constant 0 : i32
    return %arg0, %c0_i32 : i32, i32
  }
}

</mosaic_0001>

<bundles_post_ra>
// kernel: fdfa_forward.7
= control target key start
LH: loop header
LB: loop body
LE: loop exit
PB: predicated region body
PF: predicated region fallthrough
CT: control target
= control target key end

     0   :  { %s903_s12 = smov 0   ;;  %s1453_s0 = inlined_call_operand.vmem [shape: f32[512,8], index: 0, kind: input, shape index: {}]   ;;  %s1454_s1 = inlined_call_operand.vmem [shape: f32[1,8], index: 1, kind: input, shape index: {}]   ;;  %s1455_s2 = inlined_call_operand.vmem [shape: f32[1,8], index: 2, kind: input, shape index: {}]   ;;  %s1456_s3 = inlined_call_operand.vmem [shape: f32[512,8], index: 3, kind: output, shape index: {}]  }
   0x1 LB: > { %s790_s13 = sadd.s32 4294967295, %s881_s12   ;;  %p794_p0 = scmp.ge.s32.totalorder %s881_s12, 1  ;;  %s881_s12 = sphi %s903_s12, %s13_s12  }
   0x2   : > { %p138_p1 = scmp.lt.s32.totalorder %s881_s12, 3 }
   0x4   : > { %p139_p2 = pnand %p794_p0, %p138_p1 }
   0x5   : > { %s795_s14 = sshll.u32 (!%p139_p2), %s790_s13, 5  ;;  %vm206_vm0 = vcmask (!%p139_p2), 64512  }
   0x6   : > { %142 = sbr.rel (%p139_p2) target bundleno = 395 (0x18b), region = 32  ;;  %p163_p3 = scmp.lt.s32.totalorder (!%p139_p2), %s795_s14, 63 }
   0xd   : > { %s1458_s14 = smov (!%p163_p3, %s795_s14), 63 }
   0xe   : > { %s796_s15 = sshll.u32 %s1458_s14, 3 }
   0xf   : > { %s919_s18 = scalar_lea.vmem %s1453_s0, %s796_s15  ;;  %s1290_s25 = scalar_lea.vmem %s1456_s3, %s796_s15 }
  0x10   : > { %v922_v0 = vld [vmem:[%s919_s18] sm:$0xff]  ;;  %v925_v1 = vld [vmem:[%s919_s18 + $0x10] sm:$0xff]  ;;  %v928_v2 = vld [vmem:[%s919_s18 + $0x8] sm:$0xff] }
  0x11   : > { %v207_v3 = vsel %vm206_vm0, %v922_v0, 0.0  ;;  %v213_v4 = vsel %vm206_vm0, %v925_v1, 0.0  ;;  %v935_v5 = vld [vmem:[%s919_s18 + $0x18] sm:$0xff]  ;;  %v210_v6 = vsel %vm206_vm0, %v928_v2, 0.0  ;;  %v942_v8 = vld [vmem:[%s919_s18 + $0x20] sm:$0xff]  ;;  %v945_v9 = vld [vmem:[%s919_s18 + $0x28] sm:$0xff] }
  0x12   : > { %208 = vadd.xlane.f32.xlu0 %v207_v3  ;;  %214 = vadd.xlane.f32.xlu1 %v213_v4  ;;  %v216_v7 = vsel %vm206_vm0, %v935_v5, 0.0  ;;  %v219_v10 = vsel %vm206_vm0, %v942_v8, 0.0  ;;  %v222_v11 = vsel %vm206_vm0, %v945_v9, 0.0  ;;  %v952_v12 = vld [vmem:[%s919_s18 + $0x30] sm:$0xff]  ;;  %v955_v13 = vld [vmem:[%s919_s18 + $0x38] sm:$0xff]  ;;  %v962_v16 = vld [vmem:[%s919_s18 + $0x40] sm:$0xff] }
  0x13   : > { %v225_v14 = vsel %vm206_vm0, %v952_v12, 0.0  ;;  %v228_v15 = vsel %vm206_vm0, %v955_v13, 0.0  ;;  %v965_v17 = vld [vmem:[%s919_s18 + $0x48] sm:$0xff]  ;;  %v231_v18 = vsel %vm206_vm0, %v962_v16, 0.0  ;;  %v972_v20 = vld [vmem:[%s919_s18 + $0x50] sm:$0xff]  ;;  %v975_v21 = vld [vmem:[%s919_s18 + $0x58] sm:$0xff] }
  0x14   : > { %v234_v19 = vsel %vm206_vm0, %v965_v17, 0.0  ;;  %v237_v22 = vsel %vm206_vm0, %v972_v20, 0.0  ;;  %v240_v23 = vsel %vm206_vm0, %v975_v21, 0.0  ;;  %v982_v24 = vld [vmem:[%s919_s18 + $0x60] sm:$0xff]  ;;  %v985_v25 = vld [vmem:[%s919_s18 + $0x68] sm:$0xff]  ;;  %v992_v28 = vld [vmem:[%s919_s18 + $0x70] sm:$0xff] }
  0x15   : > { %v243_v26 = vsel %vm206_vm0, %v982_v24, 0.0  ;;  %v246_v27 = vsel %vm206_vm0, %v985_v25, 0.0  ;;  %v995_v29 = vld [vmem:[%s919_s18 + $0x78] sm:$0xff]  ;;  %v249_v30 = vsel %vm206_vm0, %v992_v28, 0.0  ;;  %v1002_v32 = vld [vmem:[%s919_s18 + $0x80] sm:$0xff]  ;;  %v1005_v33 = vld [vmem:[%s919_s18 + $0x88] sm:$0xff] }
  0x16   : > { %211 = vadd.xlane.f32.xlu0 %v210_v6  ;;  %217 = vadd.xlane.f32.xlu1 %v216_v7  ;;  %v252_v31 = vsel %vm206_vm0, %v995_v29, 0.0  ;;  %v255_v34 = vsel %vm206_vm0, %v1002_v32, 0.0  ;;  %v258_v35 = vsel %vm206_vm0, %v1005_v33, 0.0  ;;  %v1012_v36 = vld [vmem:[%s919_s18 + $0x90] sm:$0xff]  ;;  %v1015_v37 = vld [vmem:[%s919_s18 + $0x98] sm:$0xff]  ;;  %v1022_v40 = vld [vmem:[%s919_s18 + $0xa0] sm:$0xff] }
  0x17   : > { %v261_v38 = vsel %vm206_vm0, %v1012_v36, 0.0  ;;  %v264_v39 = vsel %vm206_vm0, %v1015_v37, 0.0  ;;  %v1025_v41 = vld [vmem:[%s919_s18 + $0xa8] sm:$0xff]  ;;  %v267_v42 = vsel %vm206_vm0, %v1022_v40, 0.0  ;;  %v1032_v44 = vld [vmem:[%s919_s18 + $0xb0] sm:$0xff]  ;;  %v1035_v45 = vld [vmem:[%s919_s18 + $0xb8] sm:$0xff] }
  0x18   : > { %v270_v43 = vsel %vm206_vm0, %v1025_v41, 0.0  ;;  %v273_v46 = vsel %vm206_vm0, %v1032_v44, 0.0  ;;  %v276_v47 = vsel %vm206_vm0, %v1035_v45, 0.0  ;;  %v1042_v48 = vld [vmem:[%s919_s18 + $0xc0] sm:$0xff]  ;;  %v1045_v49 = vld [vmem:[%s919_s18 + $0xc8] sm:$0xff]  ;;  %v1052_v52 = vld [vmem:[%s919_s18 + $0xd0] sm:$0xff] }
  0x19   : > { %v279_v50 = vsel %vm206_vm0, %v1042_v48, 0.0  ;;  %v282_v51 = vsel %vm206_vm0, %v1045_v49, 0.0  ;;  %v1055_v53 = vld [vmem:[%s919_s18 + $0xd8] sm:$0xff]  ;;  %v285_v54 = vsel %vm206_vm0, %v1052_v52, 0.0  ;;  %v1062_v56 = vld [vmem:[%s919_s18 + $0xe0] sm:$0xff]  ;;  %v1065_v57 = vld [vmem:[%s919_s18 + $0xe8] sm:$0xff] }
  0x1a   : > { %220 = vadd.xlane.f32.xlu0 %v219_v10  ;;  %223 = vadd.xlane.f32.xlu1 %v222_v11  ;;  %v288_v55 = vsel %vm206_vm0, %v1055_v53, 0.0  ;;  %v291_v58 = vsel %vm206_vm0, %v1062_v56, 0.0  ;;  %v294_v59 = vsel %vm206_vm0, %v1065_v57, 0.0  ;;  %v1072_v60 = vld [vmem:[%s919_s18 + $0xf0] sm:$0xff]  ;;  %v1075_v61 = vld [vmem:[%s919_s18 + $0xf8] sm:$0xff] }
  0x1b   : > { %v297_v62 = vsel %vm206_vm0, %v1072_v60, 0.0  ;;  %v300_v63 = vsel %vm206_vm0, %v1075_v61, 0.0 }
  0x1e   : > { %226 = vadd.xlane.f32.xlu0 %v225_v14  ;;  %229 = vadd.xlane.f32.xlu1 %v228_v15 }
  0x22   : > { %232 = vadd.xlane.f32.xlu0 %v231_v18  ;;  %235 = vadd.xlane.f32.xlu1 %v234_v19 }
  0x26   : > { %238 = vadd.xlane.f32.xlu0 %v237_v22  ;;  %241 = vadd.xlane.f32.xlu1 %v240_v23 }
  0x2a   : > { %244 = vadd.xlane.f32.xlu0 %v243_v26  ;;  %247 = vadd.xlane.f32.xlu1 %v246_v27 }
  0x2e   : > { %250 = vadd.xlane.f32.xlu0 %v249_v30  ;;  %253 = vadd.xlane.f32.xlu1 %v252_v31 }
  0x32   : > { %256 = vadd.xlane.f32.xlu0 %v255_v34  ;;  %259 = vadd.xlane.f32.xlu1 %v258_v35 }
  0x36   : > { %262 = vadd.xlane.f32.xlu0 %v261_v38  ;;  %265 = vadd.xlane.f32.xlu1 %v264_v39 }
  0x3a   : > { %268 = vadd.xlane.f32.xlu0 %v267_v42  ;;  %271 = vadd.xlane.f32.xlu1 %v270_v43 }
  0x3e   : > { %274 = vadd.xlane.f32.xlu0 %v273_v46  ;;  %277 = vadd.xlane.f32.xlu1 %v276_v47 }
  0x42   : > { %280 = vadd.xlane.f32.xlu0 %v279_v50  ;;  %283 = vadd.xlane.f32.xlu1 %v282_v51 }
  0x46   : > { %286 = vadd.xlane.f32.xlu0 %v285_v54  ;;  %289 = vadd.xlane.f32.xlu1 %v288_v55 }
  0x4a   : > { %292 = vadd.xlane.f32.xlu0 %v291_v58  ;;  %295 = vadd.xlane.f32.xlu1 %v294_v59 }
  0x4e   : > { %298 = vadd.xlane.f32.xlu0 %v297_v62  ;;  %301 = vadd.xlane.f32.xlu1 %v300_v63 }
  0x9f   : > { %v209_v3 = vpop.xlane.xlu0 %208  ;;  %v215_v4 = vpop.xlane.xlu1 %214 }
  0xa0   : > { %v304_v6 = vmul.f32 0.125, %v209_v3  ;;  %v306_v7 = vmul.f32 0.125, %v215_v4 }
  0xa2   : > { %v1082_v10 = vsub.f32 %v922_v0, %v304_v6  ;;  %v1085_v11 = vsub.f32 %v925_v1, %v306_v7 }
  0xa3   : > { %v212_v14 = vpop.xlane.xlu0 %211  ;;  %v218_v15 = vpop.xlane.xlu1 %217 }
  0xa4   : > { %v305_v18 = vmul.f32 0.125, %v212_v14  ;;  %v307_v19 = vmul.f32 0.125, %v218_v15  ;;  %v368_v22 = vmul.f32 %v1082_v10, %v1082_v10  ;;  %v370_v23 = vmul.f32 %v1085_v11, %v1085_v11 }
  0xa6   : > { %v1092_v26 = vsub.f32 %v928_v2, %v305_v18  ;;  %v1095_v27 = vsub.f32 %v935_v5, %v307_v19  ;;  %v400_v0 = vsel %vm206_vm0, %v368_v22, 0.0  ;;  %v406_v31 = vsel %vm206_vm0, %v370_v23, 0.0 }
  0xa7   : > { %401 = vadd.xlane.f32.xlu0 %v400_v0  ;;  %v221_v1 = vpop.xlane.xlu0 %220  ;;  %v224_v30 = vpop.xlane.xlu1 %223 }
  0xa8   : > { %v308_v34 = vmul.f32 0.125, %v221_v1  ;;  %v309_v35 = vmul.f32 0.125, %v224_v30  ;;  %v369_v38 = vmul.f32 %v1092_v26, %v1092_v26  ;;  %v371_v39 = vmul.f32 %v1095_v27, %v1095_v27 }
  0xaa   : > { %v1104_v2 = vsub.f32 %v942_v8, %v308_v34  ;;  %v1107_v5 = vsub.f32 %v945_v9, %v309_v35  ;;  %v403_v42 = vsel %vm206_vm0, %v369_v38, 0.0  ;;  %v409_v47 = vsel %vm206_vm0, %v371_v39, 0.0 }
  0xab   : > { %407 = vadd.xlane.f32.xlu0 %v406_v31  ;;  %404 = vadd.xlane.f32.xlu1 %v403_v42  ;;  %v227_v43 = vpop.xlane.xlu0 %226  ;;  %v230_v46 = vpop.xlane.xlu1 %229 }
  0xac   : > { %v310_v50 = vmul.f32 0.125, %v227_v43  ;;  %v311_v51 = vmul.f32 0.125, %v230_v46  ;;  %v372_v54 = vmul.f32 %v1104_v2, %v1104_v2  ;;  %v373_v8 = vmul.f32 %v1107_v5, %v1107_v5 }
  0xae   : > { %v1116_v55 = vsub.f32 %v952_v12, %v310_v50  ;;  %v1119_v9 = vsub.f32 %v955_v13, %v311_v51  ;;  %v412_v58 = vsel %vm206_vm0, %v372_v54, 0.0  ;;  %v415_v63 = vsel %vm206_vm0, %v373_v8, 0.0 }
  0xaf   : > { %410 = vadd.xlane.f32.xlu1 %v409_v47  ;;  %413 = vadd.xlane.f32.xlu0 %v412_v58  ;;  %v233_v59 = vpop.xlane.xlu0 %232  ;;  %v236_v62 = vpop.xlane.xlu1 %235 }
  0xb0   : > { %v312_v3 = vmul.f32 0.125, %v233_v59  ;;  %v313_v4 = vmul.f32 0.125, %v236_v62  ;;  %v374_v6 = vmul.f32 %v1116_v55, %v1116_v55  ;;  %v375_v12 = vmul.f32 %v1119_v9, %v1119_v9 }
  0xb2   : > { %v1128_v7 = vsub.f32 %v962_v16, %v312_v3  ;;  %v1131_v13 = vsub.f32 %v965_v17, %v313_v4  ;;  %v418_v14 = vsel %vm206_vm0, %v374_v6, 0.0  ;;  %v421_v19 = vsel %vm206_vm0, %v375_v12, 0.0 }
  0xb3   : > { %416 = vadd.xlane.f32.xlu1 %v415_v63  ;;  %419 = vadd.xlane.f32.xlu0 %v418_v14  ;;  %v239_v15 = vpop.xlane.xlu0 %238  ;;  %v242_v18 = vpop.xlane.xlu1 %241 }
  0xb4   : > { %v314_v22 = vmul.f32 0.125, %v239_v15  ;;  %v315_v23 = vmul.f32 0.125, %v242_v18  ;;  %v376_v0 = vmul.f32 %v1128_v7, %v1128_v7  ;;  %v377_v16 = vmul.f32 %v1131_v13, %v1131_v13 }
  0xb6   : > { %v1140_v1 = vsub.f32 %v972_v20, %v314_v22  ;;  %v1143_v17 = vsub.f32 %v975_v21, %v315_v23  ;;  %v424_v30 = vsel %vm206_vm0, %v376_v0, 0.0  ;;  %v427_v35 = vsel %vm206_vm0, %v377_v16, 0.0 }
  0xb7   : > { %422 = vadd.xlane.f32.xlu1 %v421_v19  ;;  %425 = vadd.xlane.f32.xlu0 %v424_v30  ;;  %v245_v31 = vpop.xlane.xlu0 %244  ;;  %v248_v34 = vpop.xlane.xlu1 %247 }
  0xb8   : > { %v316_v38 = vmul.f32 0.125, %v245_v31  ;;  %v317_v39 = vmul.f32 0.125, %v248_v34  ;;  %v378_v42 = vmul.f32 %v1140_v1, %v1140_v1  ;;  %v379_v20 = vmul.f32 %v1143_v17, %v1143_v17 }
  0xba   : > { %v1152_v43 = vsub.f32 %v982_v24, %v316_v38  ;;  %v1155_v21 = vsub.f32 %v985_v25, %v317_v39  ;;  %v430_v46 = vsel %vm206_vm0, %v378_v42, 0.0  ;;  %v433_v51 = vsel %vm206_vm0, %v379_v20, 0.0 }
  0xbb   : > { %428 = vadd.xlane.f32.xlu1 %v427_v35  ;;  %431 = vadd.xlane.f32.xlu0 %v430_v46  ;;  %v251_v47 = vpop.xlane.xlu0 %250  ;;  %v254_v50 = vpop.xlane.xlu1 %253 }
  0xbc   : > { %v318_v54 = vmul.f32 0.125, %v251_v47  ;;  %v319_v8 = vmul.f32 0.125, %v254_v50  ;;  %v380_v58 = vmul.f32 %v1152_v43, %v1152_v43  ;;  %v381_v24 = vmul.f32 %v1155_v21, %v1155_v21 }
  0xbe   : > { %v1164_v59 = vsub.f32 %v992_v28, %v318_v54  ;;  %v1167_v25 = vsub.f32 %v995_v29, %v319_v8  ;;  %v436_v62 = vsel %vm206_vm0, %v380_v58, 0.0  ;;  %v439_v4 = vsel %vm206_vm0, %v381_v24, 0.0 }
  0xbf   : > { %434 = vadd.xlane.f32.xlu1 %v433_v51  ;;  %437 = vadd.xlane.f32.xlu0 %v436_v62  ;;  %v257_v63 = vpop.xlane.xlu0 %256  ;;  %v260_v3 = vpop.xlane.xlu1 %259 }
  0xc0   : > { %v320_v6 = vmul.f32 0.125, %v257_v63  ;;  %v321_v12 = vmul.f32 0.125, %v260_v3  ;;  %v382_v14 = vmul.f32 %v1164_v59, %v1164_v59  ;;  %v383_v28 = vmul.f32 %v1167_v25, %v1167_v25 }
  0xc2   : > { %v1176_v15 = vsub.f32 %v1002_v32, %v320_v6  ;;  %v1179_v29 = vsub.f32 %v1005_v33, %v321_v12  ;;  %v442_v18 = vsel %vm206_vm0, %v382_v14, 0.0  ;;  %v445_v23 = vsel %vm206_vm0, %v383_v28, 0.0 }
  0xc3   : > { %440 = vadd.xlane.f32.xlu1 %v439_v4  ;;  %443 = vadd.xlane.f32.xlu0 %v442_v18  ;;  %v263_v19 = vpop.xlane.xlu0 %262  ;;  %v266_v22 = vpop.xlane.xlu1 %265 }
  0xc4   : > { %v322_v0 = vmul.f32 0.125, %v263_v19  ;;  %v323_v16 = vmul.f32 0.125, %v266_v22  ;;  %v384_v30 = vmul.f32 %v1176_v15, %v1176_v15  ;;  %v385_v32 = vmul.f32 %v1179_v29, %v1179_v29 }
  0xc6   : > { %v1188_v31 = vsub.f32 %v1012_v36, %v322_v0  ;;  %v1191_v33 = vsub.f32 %v1015_v37, %v323_v16  ;;  %v448_v34 = vsel %vm206_vm0, %v384_v30, 0.0  ;;  %v451_v39 = vsel %vm206_vm0, %v385_v32, 0.0 }
  0xc7   : > { %446 = vadd.xlane.f32.xlu1 %v445_v23  ;;  %449 = vadd.xlane.f32.xlu0 %v448_v34  ;;  %v269_v35 = vpop.xlane.xlu0 %268  ;;  %v272_v38 = vpop.xlane.xlu1 %271 }
  0xc8   : > { %v324_v42 = vmul.f32 0.125, %v269_v35  ;;  %v325_v20 = vmul.f32 0.125, %v272_v38  ;;  %v386_v46 = vmul.f32 %v1188_v31, %v1188_v31  ;;  %v387_v36 = vmul.f32 %v1191_v33, %v1191_v33 }
  0xca   : > { %v1200_v47 = vsub.f32 %v1022_v40, %v324_v42  ;;  %v1203_v37 = vsub.f32 %v1025_v41, %v325_v20  ;;  %v454_v50 = vsel %vm206_vm0, %v386_v46, 0.0  ;;  %v457_v8 = vsel %vm206_vm0, %v387_v36, 0.0 }
  0xcb   : > { %452 = vadd.xlane.f32.xlu1 %v451_v39  ;;  %455 = vadd.xlane.f32.xlu0 %v454_v50  ;;  %v275_v51 = vpop.xlane.xlu0 %274  ;;  %v278_v54 = vpop.xlane.xlu1 %277 }
  0xcc   : > { %v326_v58 = vmul.f32 0.125, %v275_v51  ;;  %v327_v24 = vmul.f32 0.125, %v278_v54  ;;  %v388_v62 = vmul.f32 %v1200_v47, %v1200_v47  ;;  %v389_v40 = vmul.f32 %v1203_v37, %v1203_v37 }
  0xce   : > { %v1212_v63 = vsub.f32 %v1032_v44, %v326_v58  ;;  %v1215_v41 = vsub.f32 %v1035_v45, %v327_v24  ;;  %v460_v3 = vsel %vm206_vm0, %v388_v62, 0.0  ;;  %v463_v12 = vsel %vm206_vm0, %v389_v40, 0.0 }
  0xcf   : > { %458 = vadd.xlane.f32.xlu1 %v457_v8  ;;  %461 = vadd.xlane.f32.xlu0 %v460_v3  ;;  %v281_v4 = vpop.xlane.xlu0 %280  ;;  %v284_v6 = vpop.xlane.xlu1 %283 }
  0xd0   : > { %v328_v14 = vmul.f32 0.125, %v281_v4  ;;  %v329_v28 = vmul.f32 0.125, %v284_v6  ;;  %v390_v18 = vmul.f32 %v1212_v63, %v1212_v63  ;;  %v391_v44 = vmul.f32 %v1215_v41, %v1215_v41 }
  0xd2   : > { %v1224_v19 = vsub.f32 %v1042_v48, %v328_v14  ;;  %v1227_v45 = vsub.f32 %v1045_v49, %v329_v28  ;;  %v466_v22 = vsel %vm206_vm0, %v390_v18, 0.0  ;;  %v469_v16 = vsel %vm206_vm0, %v391_v44, 0.0 }
  0xd3   : > { %464 = vadd.xlane.f32.xlu1 %v463_v12  ;;  %467 = vadd.xlane.f32.xlu0 %v466_v22  ;;  %v287_v23 = vpop.xlane.xlu0 %286  ;;  %v290_v0 = vpop.xlane.xlu1 %289 }
  0xd4   : > { %v330_v30 = vmul.f32 0.125, %v287_v23  ;;  %v331_v32 = vmul.f32 0.125, %v290_v0  ;;  %v392_v34 = vmul.f32 %v1224_v19, %v1224_v19  ;;  %v393_v48 = vmul.f32 %v1227_v45, %v1227_v45 }
  0xd6   : > { %v1236_v35 = vsub.f32 %v1052_v52, %v330_v30  ;;  %v1239_v49 = vsub.f32 %v1055_v53, %v331_v32  ;;  %v472_v38 = vsel %vm206_vm0, %v392_v34, 0.0  ;;  %v475_v20 = vsel %vm206_vm0, %v393_v48, 0.0 }
  0xd7   : > { %470 = vadd.xlane.f32.xlu1 %v469_v16  ;;  %473 = vadd.xlane.f32.xlu0 %v472_v38  ;;  %v293_v39 = vpop.xlane.xlu0 %292  ;;  %v296_v42 = vpop.xlane.xlu1 %295 }
  0xd8   : > { %v332_v46 = vmul.f32 0.125, %v293_v39  ;;  %v333_v36 = vmul.f32 0.125, %v296_v42  ;;  %v394_v50 = vmul.f32 %v1236_v35, %v1236_v35  ;;  %v395_v52 = vmul.f32 %v1239_v49, %v1239_v49 }
  0xda   : > { %v1248_v51 = vsub.f32 %v1062_v56, %v332_v46  ;;  %v1251_v53 = vsub.f32 %v1065_v57, %v333_v36  ;;  %v478_v54 = vsel %vm206_vm0, %v394_v50, 0.0  ;;  %v481_v24 = vsel %vm206_vm0, %v395_v52, 0.0 }
  0xdb   : > { %476 = vadd.xlane.f32.xlu1 %v475_v20  ;;  %479 = vadd.xlane.f32.xlu0 %v478_v54  ;;  %v299_v8 = vpop.xlane.xlu0 %298  ;;  %v302_v58 = vpop.xlane.xlu1 %301 }
  0xdc   : > { %v334_v62 = vmul.f32 0.125, %v299_v8  ;;  %v335_v40 = vmul.f32 0.125, %v302_v58  ;;  %v396_v3 = vmul.f32 %v1248_v51, %v1248_v51  ;;  %v397_v56 = vmul.f32 %v1251_v53, %v1251_v53  ;;  %v1276_v58 = vld [vmem:[%s1454_s1] ss:$0 sm:$0xff] }
  0xde   : > { %v1260_v4 = vsub.f32 %v1072_v60, %v334_v62  ;;  %v1263_v57 = vsub.f32 %v1075_v61, %v335_v40  ;;  %v484_v6 = vsel %vm206_vm0, %v396_v3, 0.0  ;;  %v487_v12 = vsel %vm206_vm0, %v397_v56, 0.0 }
  0xdf   : > { %482 = vadd.xlane.f32.xlu1 %v481_v24  ;;  %485 = vadd.xlane.f32.xlu0 %v484_v6  ;;  %v1282_v6 = vld [vmem:[%s1455_s2] ss:$0 sm:$0xff] }
  0xe0   : > { %v398_v14 = vmul.f32 %v1260_v4, %v1260_v4  ;;  %v399_v28 = vmul.f32 %v1263_v57, %v1263_v57 }
  0xe2   : > { %v490_v18 = vsel %vm206_vm0, %v398_v14, 0.0  ;;  %v493_v60 = vsel %vm206_vm0, %v399_v28, 0.0 }
  0xe3   : > { %488 = vadd.xlane.f32.xlu1 %v487_v12  ;;  %491 = vadd.xlane.f32.xlu0 %v490_v18 }
  0xe7   : > { %494 = vadd.xlane.f32.xlu1 %v493_v60 }
 0x134   : > { %v402_v61 = vpop.xlane.xlu0 %401 }
 0x135   : > { %v496_v44 = vmul.f32 0.125, %v402_v61 }
 0x137   : > { %v528_v22 = vadd.f32 1e-05, %v496_v44 }
 0x138   : > { %v405_v23 = vpop.xlane.xlu1 %404  ;;  %v408_v0 = vpop.xlane.xlu0 %407 }
 0x139   : > { %811 = vrsqrt.f32 %v528_v22  ;;  %v497_v16 = vmul.f32 0.125, %v405_v23  ;;  %v498_v30 = vmul.f32 0.125, %v408_v0 }
 0x13b   : > { %v529_v32 = vadd.f32 1e-05, %v497_v16  ;;  %v530_v34 = vadd.f32 1e-05, %v498_v30 }
 0x13c   : > { %v411_v48 = vpop.xlane.xlu1 %410  ;;  %v414_v38 = vpop.xlane.xlu0 %413 }
 0x13d   : > { %813 = vrsqrt.f32 %v529_v32  ;;  %v499_v39 = vmul.f32 0.125, %v411_v48  ;;  %v500_v42 = vmul.f32 0.125, %v414_v38 }
 0x13e   : > { %815 = vrsqrt.f32 %v530_v34 }
 0x13f   : > { %v531_v20 = vadd.f32 1e-05, %v499_v39  ;;  %v532_v46 = vadd.f32 1e-05, %v500_v42 }
 0x140   : > { %v417_v36 = vpop.xlane.xlu1 %416  ;;  %v420_v50 = vpop.xlane.xlu0 %419 }
 0x141   : > { %817 = vrsqrt.f32 %v531_v20  ;;  %v501_v52 = vmul.f32 0.125, %v417_v36  ;;  %v502_v54 = vmul.f32 0.125, %v420_v50 }
 0x142   : > { %819 = vrsqrt.f32 %v532_v46 }
 0x143   : > { %v812_v8 = vpop.eup %811  ;;  %v533_v24 = vadd.f32 1e-05, %v501_v52  ;;  %v534_v62 = vadd.f32 1e-05, %v502_v54 }
 0x144   : > { %v592_v40 = vmul.f32 %v812_v8, %v1082_v10  ;;  %v423_v3 = vpop.xlane.xlu1 %422  ;;  %v426_v56 = vpop.xlane.xlu0 %425 }
 0x145   : > { %821 = vrsqrt.f32 %v533_v24  ;;  %v503_v12 = vmul.f32 0.125, %v423_v3  ;;  %v504_v14 = vmul.f32 0.125, %v426_v56 }
 0x146   : > { %v631_v28 = vmul.f32 %v1276_v58, %v592_v40  ;;  %823 = vrsqrt.f32 %v534_v62 }
 0x147   : > { %v814_v18 = vpop.eup %813  ;;  %v535_v10 = vadd.f32 1e-05, %v503_v12  ;;  %v536_v60 = vadd.f32 1e-05, %v504_v14 }
 0x148   : > { %v816_v61 = vpop.eup %815  ;;  %v670_v44 = vadd.f32 %v1282_v6, %v631_v28  ;;  %v593_v22 = vmul.f32 %v814_v18, %v1092_v26  ;;  %v429_v23 = vpop.xlane.xlu1 %428 }
 0x149   : > { %v432_v0 = vpop.xlane.xlu0 %431  ;;  %v594_v16 = vmul.f32 %v816_v61, %v1085_v11  ;;  %825 = vrsqrt.f32 %v535_v10  ;;  %v505_v30 = vmul.f32 0.125, %v429_v23 }
 0x14a   : > { %v506_v32 = vmul.f32 0.125, %v432_v0  ;;  %702 = vst.msk [vmem:[%s1290_s25] sm:$0xff] %vm206_vm0, %v670_v44  ;;  %v632_v34 = vmul.f32 %v1276_v58, %v593_v22  ;;  %827 = vrsqrt.f32 %v536_v60 }
 0x14b   : > { %v818_v48 = vpop.eup %817  ;;  %v633_v38 = vmul.f32 %v1276_v58, %v594_v16  ;;  %v537_v39 = vadd.f32 1e-05, %v505_v30 }
 0x14c   : > { %v538_v42 = vadd.f32 1e-05, %v506_v32  ;;  %v820_v26 = vpop.eup %819  ;;  %v671_v20 = vadd.f32 %v1282_v6, %v632_v34  ;;  %v595_v11 = vmul.f32 %v818_v48, %v1095_v27  ;;  %v435_v46 = vpop.xlane.xlu1 %434 }
 0x14d   : > { %v438_v36 = vpop.xlane.xlu0 %437  ;;  %v672_v50 = vadd.f32 %v1282_v6, %v633_v38  ;;  %v596_v52 = vmul.f32 %v820_v26, %v1104_v2  ;;  %829 = vrsqrt.f32 %v537_v39  ;;  %v507_v54 = vmul.f32 0.125, %v435_v46 }
 0x14e   : > { %703 = vst.msk [vmem:[%s1290_s25 + $0x8] sm:$0xff] %vm206_vm0, %v671_v20  ;;  %v634_v8 = vmul.f32 %v1276_v58, %v595_v11  ;;  %831 = vrsqrt.f32 %v538_v42  ;;  %v508_v24 = vmul.f32 0.125, %v438_v36 }
 0x14f   : > { %v822_v62 = vpop.eup %821  ;;  %704 = vst.msk [vmem:[%s1290_s25 + $0x10] sm:$0xff] %vm206_vm0, %v672_v50  ;;  %v635_v27 = vmul.f32 %v1276_v58, %v596_v52  ;;  %v539_v40 = vadd.f32 1e-05, %v507_v54 }
 0x150   : > { %v824_v3 = vpop.eup %823  ;;  %v673_v56 = vadd.f32 %v1282_v6, %v634_v8  ;;  %v597_v2 = vmul.f32 %v822_v62, %v1107_v5  ;;  %v540_v12 = vadd.f32 1e-05, %v508_v24  ;;  %v441_v14 = vpop.xlane.xlu1 %440 }
 0x151   : > { %v444_v28 = vpop.xlane.xlu0 %443  ;;  %v674_v18 = vadd.f32 %v1282_v6, %v635_v27  ;;  %v598_v10 = vmul.f32 %v824_v3, %v1116_v55  ;;  %833 = vrsqrt.f32 %v539_v40  ;;  %v509_v60 = vmul.f32 0.125, %v441_v14 }
 0x152   : > { %705 = vst.msk [vmem:[%s1290_s25 + $0x18] sm:$0xff] %vm206_vm0, %v673_v56  ;;  %v636_v61 = vmul.f32 %v1276_v58, %v597_v2  ;;  %835 = vrsqrt.f32 %v540_v12  ;;  %v510_v44 = vmul.f32 0.125, %v444_v28 }
 0x153   : > { %v826_v22 = vpop.eup %825  ;;  %706 = vst.msk [vmem:[%s1290_s25 + $0x20] sm:$0xff] %vm206_vm0, %v674_v18  ;;  %v637_v5 = vmul.f32 %v1276_v58, %v598_v10  ;;  %v541_v23 = vadd.f32 1e-05, %v509_v60 }
 0x154   : > { %v828_v0 = vpop.eup %827  ;;  %v675_v16 = vadd.f32 %v1282_v6, %v636_v61  ;;  %v599_v55 = vmul.f32 %v826_v22, %v1119_v9  ;;  %v542_v30 = vadd.f32 1e-05, %v510_v44  ;;  %v447_v32 = vpop.xlane.xlu1 %446 }
 0x155   : > { %v450_v34 = vpop.xlane.xlu0 %449  ;;  %v676_v48 = vadd.f32 %v1282_v6, %v637_v5  ;;  %v600_v38 = vmul.f32 %v828_v0, %v1128_v7  ;;  %837 = vrsqrt.f32 %v541_v23  ;;  %v511_v39 = vmul.f32 0.125, %v447_v32 }
 0x156   : > { %707 = vst.msk [vmem:[%s1290_s25 + $0x28] sm:$0xff] %vm206_vm0, %v675_v16  ;;  %v638_v42 = vmul.f32 %v1276_v58, %v599_v55  ;;  %839 = vrsqrt.f32 %v542_v30  ;;  %v512_v26 = vmul.f32 0.125, %v450_v34 }
 0x157   : > { %v830_v20 = vpop.eup %829  ;;  %708 = vst.msk [vmem:[%s1290_s25 + $0x30] sm:$0xff] %vm206_vm0, %v676_v48  ;;  %v639_v9 = vmul.f32 %v1276_v58, %v600_v38  ;;  %v543_v11 = vadd.f32 1e-05, %v511_v39 }
 0x158   : > { %v832_v46 = vpop.eup %831  ;;  %v677_v36 = vadd.f32 %v1282_v6, %v638_v42  ;;  %v601_v7 = vmul.f32 %v830_v20, %v1131_v13  ;;  %v544_v50 = vadd.f32 1e-05, %v512_v26  ;;  %v453_v52 = vpop.xlane.xlu1 %452 }
 0x159   : > { %v456_v54 = vpop.xlane.xlu0 %455  ;;  %v678_v8 = vadd.f32 %v1282_v6, %v639_v9  ;;  %v602_v24 = vmul.f32 %v832_v46, %v1140_v1  ;;  %841 = vrsqrt.f32 %v543_v11  ;;  %v513_v62 = vmul.f32 0.125, %v453_v52 }
 0x15a   : > { %709 = vst.msk [vmem:[%s1290_s25 + $0x38] sm:$0xff] %vm206_vm0, %v677_v36  ;;  %v640_v27 = vmul.f32 %v1276_v58, %v601_v7  ;;  %843 = vrsqrt.f32 %v544_v50  ;;  %v514_v40 = vmul.f32 0.125, %v456_v54 }
 0x15b   : > { %v834_v3 = vpop.eup %833  ;;  %710 = vst.msk [vmem:[%s1290_s25 + $0x40] sm:$0xff] %vm206_vm0, %v678_v8  ;;  %v641_v13 = vmul.f32 %v1276_v58, %v602_v24  ;;  %v545_v56 = vadd.f32 1e-05, %v513_v62 }
 0x15c   : > { %v836_v2 = vpop.eup %835  ;;  %v679_v12 = vadd.f32 %v1282_v6, %v640_v27  ;;  %v603_v1 = vmul.f32 %v834_v3, %v1143_v17  ;;  %v546_v14 = vadd.f32 1e-05, %v514_v40  ;;  %v459_v28 = vpop.xlane.xlu1 %458 }
 0x15d   : > { %v462_v18 = vpop.xlane.xlu0 %461  ;;  %v680_v10 = vadd.f32 %v1282_v6, %v641_v13  ;;  %v604_v60 = vmul.f32 %v836_v2, %v1152_v43  ;;  %845 = vrsqrt.f32 %v545_v56  ;;  %v515_v61 = vmul.f32 0.125, %v459_v28 }
 0x15e   : > { %711 = vst.msk [vmem:[%s1290_s25 + $0x48] sm:$0xff] %vm206_vm0, %v679_v12  ;;  %v642_v44 = vmul.f32 %v1276_v58, %v603_v1  ;;  %847 = vrsqrt.f32 %v546_v14  ;;  %v516_v22 = vmul.f32 0.125, %v462_v18 }
 0x15f   : > { %v838_v5 = vpop.eup %837  ;;  %712 = vst.msk [vmem:[%s1290_s25 + $0x50] sm:$0xff] %vm206_vm0, %v680_v10  ;;  %v643_v17 = vmul.f32 %v1276_v58, %v604_v60  ;;  %v547_v23 = vadd.f32 1e-05, %v515_v61 }
 0x160   : > { %v840_v0 = vpop.eup %839  ;;  %v681_v16 = vadd.f32 %v1282_v6, %v642_v44  ;;  %v605_v43 = vmul.f32 %v838_v5, %v1155_v21  ;;  %v548_v55 = vadd.f32 1e-05, %v516_v22  ;;  %v465_v30 = vpop.xlane.xlu1 %464 }
 0x161   : > { %v468_v32 = vpop.xlane.xlu0 %467  ;;  %v682_v34 = vadd.f32 %v1282_v6, %v643_v17  ;;  %v606_v48 = vmul.f32 %v840_v0, %v1164_v59  ;;  %849 = vrsqrt.f32 %v547_v23  ;;  %v517_v38 = vmul.f32 0.125, %v465_v30 }
 0x162   : > { %713 = vst.msk [vmem:[%s1290_s25 + $0x58] sm:$0xff] %vm206_vm0, %v681_v16  ;;  %v644_v39 = vmul.f32 %v1276_v58, %v605_v43  ;;  %851 = vrsqrt.f32 %v548_v55  ;;  %v518_v42 = vmul.f32 0.125, %v468_v32 }
 0x163   : > { %v842_v26 = vpop.eup %841  ;;  %714 = vst.msk [vmem:[%s1290_s25 + $0x60] sm:$0xff] %vm206_vm0, %v682_v34  ;;  %v645_v21 = vmul.f32 %v1276_v58, %v606_v48  ;;  %v549_v20 = vadd.f32 1e-05, %v517_v38 }
 0x164   : > { %v844_v9 = vpop.eup %843  ;;  %v683_v11 = vadd.f32 %v1282_v6, %v644_v39  ;;  %v607_v59 = vmul.f32 %v842_v26, %v1167_v25  ;;  %v550_v46 = vadd.f32 1e-05, %v518_v42  ;;  %v471_v36 = vpop.xlane.xlu1 %470 }
 0x165   : > { %v474_v7 = vpop.xlane.xlu0 %473  ;;  %v684_v50 = vadd.f32 %v1282_v6, %v645_v21  ;;  %v608_v52 = vmul.f32 %v844_v9, %v1176_v15  ;;  %853 = vrsqrt.f32 %v549_v20  ;;  %v519_v54 = vmul.f32 0.125, %v471_v36 }
 0x166   : > { %715 = vst.msk [vmem:[%s1290_s25 + $0x68] sm:$0xff] %vm206_vm0, %v683_v11  ;;  %v646_v8 = vmul.f32 %v1276_v58, %v607_v59  ;;  %855 = vrsqrt.f32 %v550_v46  ;;  %v520_v24 = vmul.f32 0.125, %v474_v7 }
 0x167   : > { %v846_v62 = vpop.eup %845  ;;  %716 = vst.msk [vmem:[%s1290_s25 + $0x70] sm:$0xff] %vm206_vm0, %v684_v50  ;;  %v647_v25 = vmul.f32 %v1276_v58, %v608_v52  ;;  %v551_v27 = vadd.f32 1e-05, %v519_v54 }
 0x168   : > { %v848_v40 = vpop.eup %847  ;;  %v685_v3 = vadd.f32 %v1282_v6, %v646_v8  ;;  %v609_v15 = vmul.f32 %v846_v62, %v1179_v29  ;;  %v552_v13 = vadd.f32 1e-05, %v520_v24  ;;  %v477_v56 = vpop.xlane.xlu1 %476 }
 0x169   : > { %v480_v2 = vpop.xlane.xlu0 %479  ;;  %v686_v12 = vadd.f32 %v1282_v6, %v647_v25  ;;  %v610_v1 = vmul.f32 %v848_v40, %v1188_v31  ;;  %857 = vrsqrt.f32 %v551_v27  ;;  %v521_v14 = vmul.f32 0.125, %v477_v56 }
 0x16a   : > { %717 = vst.msk [vmem:[%s1290_s25 + $0x78] sm:$0xff] %vm206_vm0, %v685_v3  ;;  %v648_v28 = vmul.f32 %v1276_v58, %v609_v15  ;;  %859 = vrsqrt.f32 %v552_v13  ;;  %v522_v18 = vmul.f32 0.125, %v480_v2 }
 0x16b   : > { %v850_v10 = vpop.eup %849  ;;  %718 = vst.msk [vmem:[%s1290_s25 + $0x80] sm:$0xff] %vm206_vm0, %v686_v12  ;;  %v649_v29 = vmul.f32 %v1276_v58, %v610_v1  ;;  %v553_v60 = vadd.f32 1e-05, %v521_v14 }
 0x16c   : > { %v852_v61 = vpop.eup %851  ;;  %v687_v44 = vadd.f32 %v1282_v6, %v648_v28  ;;  %v611_v31 = vmul.f32 %v850_v10, %v1191_v33  ;;  %v554_v22 = vadd.f32 1e-05, %v522_v18  ;;  %v483_v5 = vpop.xlane.xlu1 %482 }
 0x16d   : > { %v486_v17 = vpop.xlane.xlu0 %485  ;;  %v688_v23 = vadd.f32 %v1282_v6, %v649_v29  ;;  %v612_v0 = vmul.f32 %v852_v61, %v1200_v47  ;;  %861 = vrsqrt.f32 %v553_v60  ;;  %v523_v16 = vmul.f32 0.125, %v483_v5 }
 0x16e   : > { %719 = vst.msk [vmem:[%s1290_s25 + $0x88] sm:$0xff] %vm206_vm0, %v687_v44  ;;  %v650_v43 = vmul.f32 %v1276_v58, %v611_v31  ;;  %863 = vrsqrt.f32 %v554_v22  ;;  %v524_v55 = vmul.f32 0.125, %v486_v17 }
 0x16f   : > { %v854_v30 = vpop.eup %853  ;;  %720 = vst.msk [vmem:[%s1290_s25 + $0x90] sm:$0xff] %vm206_vm0, %v688_v23  ;;  %v651_v33 = vmul.f32 %v1276_v58, %v612_v0  ;;  %v555_v32 = vadd.f32 1e-05, %v523_v16 }
 0x170   : > { %v856_v34 = vpop.eup %855  ;;  %v689_v48 = vadd.f32 %v1282_v6, %v650_v43  ;;  %v613_v47 = vmul.f32 %v854_v30, %v1203_v37  ;;  %v556_v38 = vadd.f32 1e-05, %v524_v55  ;;  %v489_v39 = vpop.xlane.xlu1 %488 }
 0x171   : > { %v492_v42 = vpop.xlane.xlu0 %491  ;;  %v690_v26 = vadd.f32 %v1282_v6, %v651_v33  ;;  %v614_v21 = vmul.f32 %v856_v34, %v1212_v63  ;;  %865 = vrsqrt.f32 %v555_v32  ;;  %v525_v20 = vmul.f32 0.125, %v489_v39 }
 0x172   : > { %721 = vst.msk [vmem:[%s1290_s25 + $0x98] sm:$0xff] %vm206_vm0, %v689_v48  ;;  %v652_v9 = vmul.f32 %v1276_v58, %v613_v47  ;;  %867 = vrsqrt.f32 %v556_v38  ;;  %v526_v11 = vmul.f32 0.125, %v492_v42 }
 0x173   : > { %v858_v59 = vpop.eup %857  ;;  %722 = vst.msk [vmem:[%s1290_s25 + $0xa0] sm:$0xff] %vm206_vm0, %v690_v26  ;;  %v653_v37 = vmul.f32 %v1276_v58, %v614_v21  ;;  %v557_v46 = vadd.f32 1e-05, %v525_v20 }
 0x174   : > { %v860_v36 = vpop.eup %859  ;;  %v691_v7 = vadd.f32 %v1282_v6, %v652_v9  ;;  %v615_v63 = vmul.f32 %v858_v59, %v1215_v41  ;;  %v558_v50 = vadd.f32 1e-05, %v526_v11  ;;  %v495_v52 = vpop.xlane.xlu1 %494 }
 0x175   : > { %v692_v54 = vadd.f32 %v1282_v6, %v653_v37  ;;  %v616_v8 = vmul.f32 %v860_v36, %v1224_v19  ;;  %869 = vrsqrt.f32 %v557_v46  ;;  %v527_v24 = vmul.f32 0.125, %v495_v52 }
 0x176   : > { %723 = vst.msk [vmem:[%s1290_s25 + $0xa8] sm:$0xff] %vm206_vm0, %v691_v7  ;;  %v654_v62 = vmul.f32 %v1276_v58, %v615_v63  ;;  %871 = vrsqrt.f32 %v558_v50 }
 0x177   : > { %v862_v25 = vpop.eup %861  ;;  %724 = vst.msk [vmem:[%s1290_s25 + $0xb0] sm:$0xff] %vm206_vm0, %v692_v54  ;;  %v655_v41 = vmul.f32 %v1276_v58, %v616_v8  ;;  %v559_v27 = vadd.f32 1e-05, %v527_v24 }
 0x178   : > { %v864_v40 = vpop.eup %863  ;;  %v693_v3 = vadd.f32 %v1282_v6, %v654_v62  ;;  %v617_v19 = vmul.f32 %v862_v25, %v1227_v45 }
 0x179   : > { %v694_v15 = vadd.f32 %v1282_v6, %v655_v41  ;;  %v618_v13 = vmul.f32 %v864_v40, %v1236_v35  ;;  %873 = vrsqrt.f32 %v559_v27 }
 0x17a   : > { %725 = vst.msk [vmem:[%s1290_s25 + $0xb8] sm:$0xff] %vm206_vm0, %v693_v3  ;;  %v656_v56 = vmul.f32 %v1276_v58, %v617_v19 }
 0x17b   : > { %v866_v2 = vpop.eup %865  ;;  %726 = vst.msk [vmem:[%s1290_s25 + $0xc0] sm:$0xff] %vm206_vm0, %v694_v15  ;;  %v657_v12 = vmul.f32 %v1276_v58, %v618_v13 }
 0x17c   : > { %v868_v1 = vpop.eup %867  ;;  %v695_v14 = vadd.f32 %v1282_v6, %v656_v56  ;;  %v619_v45 = vmul.f32 %v866_v2, %v1239_v49 }
 0x17d   : > { %v696_v28 = vadd.f32 %v1282_v6, %v657_v12  ;;  %v620_v35 = vmul.f32 %v868_v1, %v1248_v51 }
 0x17e   : > { %727 = vst.msk [vmem:[%s1290_s25 + $0xc8] sm:$0xff] %vm206_vm0, %v695_v14  ;;  %v658_v18 = vmul.f32 %v1276_v58, %v619_v45 }
 0x17f   : > { %v870_v10 = vpop.eup %869  ;;  %728 = vst.msk [vmem:[%s1290_s25 + $0xd0] sm:$0xff] %vm206_vm0, %v696_v28  ;;  %v659_v29 = vmul.f32 %v1276_v58, %v620_v35 }
 0x180   : > { %v872_v60 = vpop.eup %871  ;;  %v697_v61 = vadd.f32 %v1282_v6, %v658_v18  ;;  %v621_v49 = vmul.f32 %v870_v10, %v1251_v53 }
 0x181   : > { %v698_v44 = vadd.f32 %v1282_v6, %v659_v29  ;;  %v622_v51 = vmul.f32 %v872_v60, %v1260_v4 }
 0x182   : > { %729 = vst.msk [vmem:[%s1290_s25 + $0xd8] sm:$0xff] %vm206_vm0, %v697_v61  ;;  %v660_v31 = vmul.f32 %v1276_v58, %v621_v49 }
 0x183   : > { %v874_v22 = vpop.eup %873  ;;  %730 = vst.msk [vmem:[%s1290_s25 + $0xe0] sm:$0xff] %vm206_vm0, %v698_v44  ;;  %v661_v5 = vmul.f32 %v1276_v58, %v622_v51 }
 0x184   : > { %v699_v17 = vadd.f32 %v1282_v6, %v660_v31  ;;  %v623_v23 = vmul.f32 %v874_v22, %v1263_v57 }
 0x185   : > { %v700_v0 = vadd.f32 %v1282_v6, %v661_v5 }
 0x186   : > { %731 = vst.msk [vmem:[%s1290_s25 + $0xe8] sm:$0xff] %vm206_vm0, %v699_v17  ;;  %v662_v53 = vmul.f32 %v1276_v58, %v623_v23 }
 0x187   : > { %732 = vst.msk [vmem:[%s1290_s25 + $0xf0] sm:$0xff] %vm206_vm0, %v700_v0 }
 0x188   : > { %v701_v4 = vadd.f32 %v1282_v6, %v662_v53 }
 0x18a   : > { %733 = vst.msk [vmem:[%s1290_s25 + $0xf8] sm:$0xff] %vm206_vm0, %v701_v4 }
 0x18b PF: > { %s13_s12 = sadd.s32 1, %s881_s12  }
 0x18c   : > { %p10_p4 = scmp.ge.s32.totalorder %s13_s12, 4  }
 0x18e   :  { %12 = sbr.rel (!%p10_p4) target bundleno = 1 (0x1), region = 62 }

// kernel: fdfa_forward.12
= control target key start
LH: loop header
LB: loop body
LE: loop exit
PB: predicated region body
PF: predicated region fallthrough
CT: control target
= control target key end

     0   :  { %s855_s9 = smov 0   ;;  %s955_s0 = inlined_call_operand.vmem [shape: f32[4,16,64], index: 0, kind: input, shape index: {}]   ;;  %s956_s1 = inlined_call_operand.vmem [shape: f32[4,16,64], index: 1, kind: input, shape index: {}]   ;;  %s957_s2 = inlined_call_operand.vmem [shape: f32[4,16,64], index: 2, kind: output, shape index: {}]  }
   0x1 LB: > { %s697_s10 = sadd.s32 4294967295, %s838_s9   ;;  %p701_p0 = scmp.ge.s32.totalorder %s838_s9, 1  ;;  %s838_s9 = sphi %s855_s9, %s12_s9  }
   0x2   : > { %p126_p1 = scmp.lt.s32.totalorder %s838_s9, 3 }
   0x4   : > { %p127_p2 = pnand %p701_p0, %p126_p1 }
   0x5   : > { %s702_s11 = sshll.u32 (!%p127_p2), %s697_s10, 1  ;;  %vm189_vm0 = vcmask (!%p127_p2), 523264   ;;  %vm416_vm2 = vcmask (!%p127_p2), 130048  }
   0x6   : > { %130 = sbr.rel (%p127_p2) target bundleno = 940 (0x3ac), region = 28  ;;  %p157_p3 = scmp.lt.s32.totalorder (!%p127_p2), %s702_s11, 3  ;;  %vm773_vm1 = vmpackc.low (!%p127_p2), %vm189_vm0, %vm189_vm0 }
   0xd   : > { %s959_s11 = smov (!%p157_p3, %s702_s11), 3 }
   0xe   : > { %s863_s12 = sshll.u32 %s959_s11, 4 }
   0xf   : > { %s168_s15 = scalar_lea.vmem %s956_s1, %s863_s12  ;;  %s161_s18 = scalar_lea.vmem %s955_s0, %s863_s12 }
  0x10   : > { %v873_v0 = vld [vmem:[%s168_s15 + $0x10] sm:$0xff]  ;;  %v875_v1 = vld [vmem:[%s168_s15] sm:$0xff]  ;;  %v877_v2 = vld [vmem:[%s168_s15 + $0x18] sm:$0xff]  ;;  %s175_s21 = scalar_lea.vmem %s957_s2, %s863_s12 }
  0x11   : > { %v216_v3 = vmul.f32 %v873_v0, %v873_v0  ;;  %v214_v4 = vmul.f32 %v875_v1, %v875_v1  ;;  %v217_v5 = vmul.f32 %v877_v2, %v877_v2  ;;  %v885_v6 = vld [vmem:[%s168_s15 + $0x8] sm:$0xff]  ;;  %v177_v8 = vld [vmem:[%s161_s18] sm:$0xff]  ;;  %v179_v16 = vld [vmem:[%s161_s18 + $0x10] sm:$0xff] }
  0x12   : > { %v215_v7 = vmul.f32 %v885_v6, %v885_v6  ;;  %v889_v9 = vld [vmem:[%s161_s18 + $0x8] sm:$0xff]  ;;  %v185_v14 = vmul.f32 %v177_v8, %v177_v8  ;;  %v180_v17 = vld [vmem:[%s161_s18 + $0x18] sm:$0xff]  ;;  %v187_v20 = vmul.f32 %v179_v16, %v179_v16 }
  0x13   : > { %v224_v10 = vsel %vm189_vm0, %v216_v3, 0.0  ;;  %v218_v11 = vsel %vm189_vm0, %v214_v4, 0.0  ;;  %v227_v12 = vsel %vm189_vm0, %v217_v5, 0.0  ;;  %v186_v15 = vmul.f32 %v889_v9, %v889_v9 }
  0x14   : > { %225 = vadd.xlane.f32.xlu1 %v224_v10  ;;  %219 = vadd.xlane.f32.xlu0 %v218_v11  ;;  %v221_v13 = vsel %vm189_vm0, %v215_v7, 0.0  ;;  %v190_v18 = vsel %vm189_vm0, %v185_v14, 0.0  ;;  %v188_v21 = vmul.f32 %v180_v17, %v180_v17  ;;  %v196_v22 = vsel %vm189_vm0, %v187_v20, 0.0 }
  0x15   : > { %v193_v19 = vsel %vm189_vm0, %v186_v15, 0.0 }
  0x16   : > { %v199_v23 = vsel %vm189_vm0, %v188_v21, 0.0 }
  0x18   : > { %228 = vadd.xlane.f32.xlu1 %v227_v12  ;;  %222 = vadd.xlane.f32.xlu0 %v221_v13 }
  0x1c   : > { %191 = vadd.xlane.f32.xlu0 %v190_v18  ;;  %194 = vadd.xlane.f32.xlu1 %v193_v19 }
  0x20   : > { %197 = vadd.xlane.f32.xlu0 %v196_v22  ;;  %200 = vadd.xlane.f32.xlu1 %v199_v23 }
  0xa1   : > { %v226_v24 = vpop.xlane.xlu1 %225  ;;  %v220_v25 = vpop.xlane.xlu0 %219 }
  0xa2   : > { %v232_v26 = vmax.f32 %v226_v24, 1e-24  ;;  %v230_v27 = vmax.f32 %v220_v25, 1e-24 }
  0xa4   : > { %800 = vrsqrt.f32 %v232_v26  ;;  %v784_v26 = vpack.c.bf16 %v885_v6, %v875_v1 }
  0xa5   : > { %v229_v28 = vpop.xlane.xlu1 %228  ;;  %v223_v29 = vpop.xlane.xlu0 %222  ;;  %802 = vrsqrt.f32 %v230_v27  ;;  %v788_v27 = vpack.c.bf16 %v877_v2, %v873_v0 }
  0xa6   : > { %v233_v30 = vmax.f32 %v229_v28, 1e-24  ;;  %v231_v31 = vmax.f32 %v223_v29, 1e-24 }
  0xa8   : > { %804 = vrsqrt.f32 %v233_v30 }
  0xa9   : > { %806 = vrsqrt.f32 %v231_v31  ;;  %v192_v32 = vpop.xlane.xlu0 %191  ;;  %v195_v33 = vpop.xlane.xlu1 %194 }
  0xaa   : > { %v202_v34 = vmax.f32 %v192_v32, 1e-24  ;;  %v203_v35 = vmax.f32 %v195_v33, 1e-24 }
  0xac   : > { %808 = vrsqrt.f32 %v202_v34 }
  0xad   : > { %v198_v36 = vpop.xlane.xlu0 %197  ;;  %v201_v37 = vpop.xlane.xlu1 %200  ;;  %810 = vrsqrt.f32 %v203_v35 }
  0xae   : > { %v801_v38 = vpop.eup %800  ;;  %v204_v39 = vmax.f32 %v198_v36, 1e-24  ;;  %v205_v40 = vmax.f32 %v201_v37, 1e-24 }
  0xaf   : > { %v803_v41 = vpop.eup %802  ;;  %v240_v42 = vmul.f32 %v801_v38, %v873_v0 }
  0xb0   : > { %812 = vrsqrt.f32 %v204_v39  ;;  %v238_v46 = vmul.f32 %v803_v41, %v875_v1 }
  0xb1   : > { %814 = vrsqrt.f32 %v205_v40 }
  0xb2   : > { %v805_v43 = vpop.eup %804 }
  0xb3   : > { %v807_v44 = vpop.eup %806  ;;  %v241_v45 = vmul.f32 %v805_v43, %v877_v2 }
  0xb4   : > { %v239_v47 = vmul.f32 %v807_v44, %v885_v6 }
  0xb5   : > { %v778_v48 = vpack.c.bf16 %v241_v45, %v240_v42 }
  0xb6   : > { %v809_v49 = vpop.eup %808  ;;  %v772_v50 = vpack.c.bf16 %v239_v47, %v238_v46 }
  0xb7   : > { %780 = vmatprep.subr.msk.bf16.mxu1 %vm773_vm1, %v778_v48  ;;  %v907_v51 = vmul.f32 %v809_v49, %v177_v8  ;;  %v811_v52 = vpop.eup %810 }
  0xb8   : > { %774 = vmatprep.subr.msk.bf16.mxu0 %vm773_vm1, %v772_v50  ;;  %783 = vmatpush3.bf16.xpose.msk.msra.mxu1 %vm773_vm1, %v778_v48  ;;  %v914_v56 = vmul.f32 %v811_v52, %v889_v9 }
  0xb9   : > { %777 = vmatpush3.bf16.xpose.msk.msra.mxu0 %vm773_vm1, %v772_v50  ;;  %748 = vmatprep.mubr.msk.f32.mxu0 %vm189_vm0, %v907_v51 }
  0xba   : > { %v813_v53 = vpop.eup %812  ;;  %785 = vmatprep.subr.bf16.mxu0 %v784_v26  ;;  %789 = vmatprep.subr.bf16.mxu1 %v788_v27 }
  0xbb   : > { %v815_v54 = vpop.eup %814  ;;  %v911_v55 = vmul.f32 %v813_v53, %v179_v16 }
  0xbc   : > { %v916_v57 = vmul.f32 %v815_v54, %v180_v17 }
  0xbd   : > { %755 = vmatprep.mubr.msk.f32.mxu1 %vm189_vm0, %v911_v55 }
  0xbf   : > { %756 = vmatmul.mubr.msk.f32.vlgmr.msra.gmra.mrb[0].mxu1 %vm189_vm0, %v916_v57 }
  0xc0   : > { %749 = vmatmul.mubr.msk.f32.vlgmr.msra.gmra.mrb[0].mxu0 %vm189_vm0, %v914_v56  ;;  %791 = vmatpush3.bf16.msra.mxu1 %v788_v27 }
  0xc1   : > { %787 = vmatpush3.bf16.msra.mxu0 %v784_v26 }
 0x192   : > { %v757_v58 = vpop.f32.mrb[0].mxu1 }
 0x193   : > { %v750_v59 = vpop.f32.mrb[0].mxu0  ;;  %v407_v60 = vpop.f32.mrb[1].mxu1  ;;  %v426_v3 = vsel %vm416_vm2, %v757_v58, -inf }
 0x194   : > { %v320_v61 = vpop.f32.mrb[1].mxu0  ;;  %v420_v62 = vsel %vm416_vm2, %v750_v59, -inf  ;;  %v423_v4 = vsel %vm416_vm2, %v407_v60, -inf }
 0x195   : > { %421 = vmax.xlane.f32.xlu1 %v420_v62  ;;  %v417_v63 = vsel %vm416_vm2, %v320_v61, -inf }
 0x196   : > { %418 = vmax.xlane.f32.xlu0 %v417_v63 }
 0x199   : > { %427 = vmax.xlane.f32.xlu1 %v426_v3 }
 0x19a   : > { %424 = vmax.xlane.f32.xlu0 %v423_v4 }
 0x222   : > { %v422_v5 = vpop.xlane.xlu1 %421 }
 0x223   : > { %v430_v7 = vsub.f32 %v750_v59, %v422_v5  ;;  %v419_v8 = vpop.xlane.xlu0 %418 }
 0x224   : > { %v429_v9 = vsub.f32 %v320_v61, %v419_v8 }
 0x225   : > { %v435_v10 = vmul.f32 1.442695, %v430_v7 }
 0x226   : > { %v433_v11 = vmul.f32 1.442695, %v429_v9  ;;  %v428_v12 = vpop.xlane.xlu1 %427 }
 0x227   : > { %816 = vpow2.f32 %v435_v10  ;;  %v432_v13 = vsub.f32 %v757_v58, %v428_v12  ;;  %v425_v14 = vpop.xlane.xlu0 %424 }
 0x228   : > { %818 = vpow2.f32 %v433_v11  ;;  %v431_v15 = vsub.f32 %v407_v60, %v425_v14 }
 0x229   : > { %v439_v16 = vmul.f32 1.442695, %v432_v13 }
 0x22a   : > { %v437_v17 = vmul.f32 1.442695, %v431_v15 }
 0x22b   : > { %820 = vpow2.f32 %v439_v16 }
 0x22c   : > { %822 = vpow2.f32 %v437_v17 }
 0x231   : > { %v817_v18 = vpop.eup %816 }
 0x232   : > { %v819_v19 = vpop.eup %818  ;;  %v444_v20 = vsel %vm416_vm2, %v817_v18, 0.0 }
 0x233   : > { %445 = vadd.xlane.f32.xlu1 %v444_v20  ;;  %v441_v21 = vsel %vm416_vm2, %v819_v19, 0.0 }
 0x234   : > { %442 = vadd.xlane.f32.xlu0 %v441_v21 }
 0x235   : > { %v821_v22 = vpop.eup %820 }
 0x236   : > { %v823_v23 = vpop.eup %822  ;;  %v450_v24 = vsel %vm416_vm2, %v821_v22, 0.0 }
 0x237   : > { %451 = vadd.xlane.f32.xlu1 %v450_v24  ;;  %v447_v25 = vsel %vm416_vm2, %v823_v23, 0.0 }
 0x238   : > { %448 = vadd.xlane.f32.xlu0 %v447_v25 }
 0x2c0   : > { %v446_v28 = vpop.xlane.xlu1 %445 }
 0x2c1   : > { %824 = vrcp.f32 %v446_v28  ;;  %v443_v29 = vpop.xlane.xlu0 %442 }
 0x2c2   : > { %826 = vrcp.f32 %v443_v29 }
 0x2c4   : > { %v452_v30 = vpop.xlane.xlu1 %451 }
 0x2c5   : > { %828 = vrcp.f32 %v452_v30  ;;  %v449_v31 = vpop.xlane.xlu0 %448 }
 0x2c6   : > { %830 = vrcp.f32 %v449_v31 }
 0x2cb   : > { %v825_v32 = vpop.eup %824 }
 0x2cc   : > { %v827_v33 = vpop.eup %826  ;;  %v458_v1 = vmul.f32 %v825_v32, %v817_v18 }
 0x2cd   : > { %v457_v34 = vmul.f32 %v827_v33, %v819_v19 }
 0x2cf   : > { %v829_v6 = vpop.eup %828  ;;  %762 = vmatprep.mubr.msk.f32.mxu0 %vm416_vm2, %v457_v34 }
 0x2d0   : > { %v831_v35 = vpop.eup %830  ;;  %763 = vmatmul.mubr.msk.f32.vlgmr.msra.gmra.mrb[2].mxu0 %vm416_vm2, %v458_v1  ;;  %v460_v2 = vmul.f32 %v829_v6, %v821_v22 }
 0x2d1   : > { %v459_v0 = vmul.f32 %v831_v35, %v823_v23 }
 0x2d3   : > { %769 = vmatprep.mubr.msk.f32.mxu1 %vm416_vm2, %v459_v0 }
 0x2d4   : > { %770 = vmatmul.mubr.msk.f32.vlgmr.msra.gmra.mrb[2].mxu1 %vm416_vm2, %v460_v2 }
 0x3a3   : > { %v764_v36 = vpop.f32.mrb[2].mxu0 }
 0x3a4   : > { %v539_v37 = vadd.f32 %v764_v36, %v914_v56  ;;  %v533_v38 = vpop.f32.mrb[3].mxu0 }
 0x3a5   : > { %v534_v39 = vadd.f32 %v533_v38, %v907_v51 }
 0x3a6   : > { %624 = vst.msk [vmem:[%s175_s21 + $0x8] sm:$0xff] %vm189_vm0, %v539_v37 }
 0x3a7   : > { %623 = vst.msk [vmem:[%s175_s21] sm:$0xff] %vm189_vm0, %v534_v39  ;;  %v771_v40 = vpop.f32.mrb[2].mxu1 }
 0x3a8   : > { %v620_v41 = vadd.f32 %v771_v40, %v916_v57  ;;  %v614_v42 = vpop.f32.mrb[3].mxu1 }
 0x3a9   : > { %v615_v43 = vadd.f32 %v614_v42, %v911_v55 }
 0x3aa   : > { %626 = vst.msk [vmem:[%s175_s21 + $0x18] sm:$0xff] %vm189_vm0, %v620_v41 }
 0x3ab   : > { %625 = vst.msk [vmem:[%s175_s21 + $0x10] sm:$0xff] %vm189_vm0, %v615_v43 }
 0x3ac PF: > { %s12_s9 = sadd.s32 1, %s838_s9  }
 0x3ad   : > { %p9_p4 = scmp.ge.s32.totalorder %s12_s9, 4  }
 0x3af   :  { %11 = sbr.rel (!%p9_p4) target bundleno = 1 (0x1), region = 61 }

// kernel: fdfa_forward.9
= control target key start
LH: loop header
LB: loop body
LE: loop exit
PB: predicated region body
PF: predicated region fallthrough
CT: control target
= control target key end

     0   :  { %s2554_s18 = smov 0   ;;  %s4713_s0 = inlined_call_operand.vmem [shape: f32[32,16,8], index: 0, kind: input, shape index: {}]   ;;  %s4714_s1 = inlined_call_operand.vmem [shape: f32[11,8], index: 1, kind: input, shape index: {}]   ;;  %s4715_s2 = inlined_call_operand.vmem [shape: f32[1,8], index: 2, kind: input, shape index: {}]   ;;  %s4716_s3 = inlined_call_operand.vmem [shape: f32[8,8], index: 3, kind: input, shape index: {}]   ;;  %s4717_s4 = inlined_call_operand.vmem [shape: f32[1,8], index: 4, kind: input, shape index: {}]   ;;  %s4718_s5 = inlined_call_operand.vmem [shape: f32[32,16,8], index: 5, kind: output, shape index: {}]  }
   0x1 LB: > { %s2372_s19 = sadd.s32 4294967295, %s2522_s18   ;;  %p2376_p0 = scmp.ge.s32.totalorder %s2522_s18, 1  ;;  %s2522_s18 = sphi %s2554_s18, %s15_s18  }
   0x2   : > { %p189_p1 = scmp.lt.s32.totalorder %s2522_s18, 3 }
   0x4   : > { %p190_p2 = pnand %p2376_p0, %p189_p1 }
   0x5   : > { %v1952_v0 = vld [vmem:[%s4716_s3] sm:$0xff] (!%p190_p2)  ;;  %s2377_s22 = sshll.u32 (!%p190_p2), %s2372_s19, 4  ;;  %v267_v1 = vlaneseq (!%p190_p2)  ;;  %vm1960_vm12 = vcmask (!%p190_p2), 64512  }
   0x6   : > { %193 = sbr.rel (%p190_p2) target bundleno = 590 (0x24e), region = 40  ;;  %2454 = vmatprep.subr.mxu0 (!%p190_p2), %v1952_v0  ;;  %2504 = vmatprep.subr.mxu1 (!%p190_p2), %v1952_v0  ;;  %p220_p3 = scmp.lt.s32.totalorder (!%p190_p2), %s2377_s22, 31  ;;  %v2572_v3 = vld [vmem:[%s4714_s1] sm:$0xff] (!%p190_p2) }
   0x7   : > { %2455 = vmatpush3.msra.mxu0 (!%p190_p2), %v1952_v0  ;;  %2505 = vmatpush3.msra.mxu1 (!%p190_p2), %v1952_v0  ;;  %v2565_v2 = vshrl.u32 (!%p190_p2), %v267_v1, 7  ;;  %v266_v0 = vld [vmem:[%s4714_s1 + $0x8] sm:$0x7] (!%p190_p2) }
   0x9   : > { %vm302_vm0 = vcmp.lt.s32.totalorder (!%p190_p2), %v2565_v2, 5  ;;  %v2576_v4 = vadd.s32 (!%p190_p2), 4294967291, %v2565_v2  ;;  %v381_v5 = vsub.s32 (!%p190_p2), 0, %v2565_v2  ;;  %vm479_vm1 = vcmp.lt.s32.totalorder (!%p190_p2), %v2565_v2, 4 }
   0xa   : > { %v2582_v6 = vadd.s32 (!%p190_p2), 4294967292, %v2565_v2  ;;  %v558_v7 = vsub.s32 (!%p190_p2), 1, %v2565_v2  ;;  %vm656_vm2 = vcmp.lt.s32.totalorder (!%p190_p2), %v2565_v2, 3  ;;  %v2587_v8 = vadd.s32 (!%p190_p2), 4294967293, %v2565_v2 }
   0xb   : > { %vm337_vm3 = vcmp.ge.s32.totalorder (!%p190_p2), %v2576_v4, 0  ;;  %v2600_v9 = vrot.slane (!%p190_p2), %v2572_v3, %v381_v5  ;;  %v735_v10 = vsub.s32 (!%p190_p2), 2, %v2565_v2  ;;  %vm833_vm4 = vcmp.lt.s32.totalorder (!%p190_p2), %v2565_v2, 2 }
   0xc   : > { %vm514_vm5 = vcmp.ge.s32.totalorder (!%p190_p2), %v2582_v6, 0  ;;  %v2614_v13 = vrot.slane (!%p190_p2), %v2572_v3, %v558_v7  ;;  %vm691_vm6 = vcmp.ge.s32.totalorder (!%p190_p2), %v2587_v8, 0  ;;  %v2618_v14 = vadd.s32 (!%p190_p2), 4294967294, %v2565_v2 }
   0xd   : > { %s4815_s22 = smov (!%p220_p3, %s2377_s22), 31  ;;  %v2629_v21 = vrot.slane %v2572_v3, %v735_v10  ;;  %v912_v41 = vsub.s32 3, %v2565_v2  ;;  %vm1010_vm8 = vcmp.lt.s32.totalorder %v2565_v2, 1  ;;  %v2687_v50 = vadd.s32 4294967295, %v2565_v2 }
   0xe   : > { %s2419_s25 = sshll.u32 %s4815_s22, 4  ;;  %vm868_vm7 = vcmp.ge.s32.totalorder %v2618_v14, 0  ;;  %v1089_v51 = vsub.s32 4, %v2565_v2  ;;  %v1157_v52 = vsub.s32 5, %v2565_v2  ;;  %vm4720_vm10 = vcmp.lt.s32.totalorder %v2565_v2, 7 }
   0xf   : > { %s2594_s28 = scalar_lea.vmem %s4713_s0, %s2419_s25  ;;  %v2682_v48 = vrot.slane %v2572_v3, %v912_v41  ;;  %vm4723_vm9 = vcmp.ge.s32.totalorder %v2687_v50, 0  ;;  %vm4719_vm11 = vcmp.lt.s32.totalorder %v2565_v2, 6  ;;  %s4597_s16 = scalar_lea.vmem %s4718_s5, %s2419_s25 }
  0x10   : > { %v2605_v11 = vld [vmem:[%s2594_s28] sm:$0xff]  ;;  %v2608_v12 = vld [vmem:[%s2594_s28 + $0x8] sm:$0xff]  ;;  %v2699_v57 = vrot.slane %v2572_v3, %v1089_v51  ;;  %v2702_v58 = vrot.slane %v2572_v3, %v1157_v52 }
  0x11   : > { %v270_v15 = vrot.slane %v2605_v11, 3  ;;  %v286_v16 = vrot.slane %v2608_v12, 3  ;;  %v447_v17 = vrot.slane %v2605_v11, 4  ;;  %v463_v18 = vrot.slane %v2608_v12, 4 }
  0x12   : > { %v624_v19 = vrot.slane %v2605_v11, 5  ;;  %v640_v20 = vrot.slane %v2608_v12, 5  ;;  %v801_v22 = vrot.slane %v2605_v11, 6  ;;  %v817_v38 = vrot.slane %v2608_v12, 6 }
  0x13   : > { %v2634_v23 = vsel %vm302_vm0, %v270_v15, %v286_v16  ;;  %v2638_v24 = vsel %vm302_vm0, %v286_v16, %v270_v15  ;;  %v2642_v25 = vsel %vm479_vm1, %v447_v17, %v463_v18  ;;  %v2646_v26 = vsel %vm479_vm1, %v463_v18, %v447_v17 }
  0x14   : > { %v347_v27 = vsel %vm337_vm3, %v2638_v24, 0.0  ;;  %v384_v28 = vmul.f32 %v2600_v9, %v2634_v23  ;;  %v524_v29 = vsel %vm514_vm5, %v2646_v26, 0.0  ;;  %v561_v30 = vmul.f32 %v2614_v13, %v2642_v25 }
  0x15   : > { %v383_v31 = vmul.f32 %v2600_v9, %v347_v27  ;;  %v560_v32 = vmul.f32 %v2614_v13, %v524_v29  ;;  %v657_v33 = vsel %vm656_vm2, %v624_v19, %v640_v20  ;;  %v2664_v34 = vsel %vm656_vm2, %v640_v20, %v624_v19  ;;  %v2729_v29 = vld [vmem:[%s2594_s28 + $0x80] sm:$0xff] }
  0x16   : > { %v593_v35 = vadd.f32 %v561_v30, %v384_v28  ;;  %v701_v36 = vsel %vm691_vm6, %v2664_v34, 0.0  ;;  %v738_v37 = vmul.f32 %v2629_v21, %v657_v33  ;;  %v834_v43 = vsel %vm833_vm4, %v801_v22, %v817_v38 }
  0x17   : > { %v592_v39 = vadd.f32 %v560_v32, %v383_v31  ;;  %v737_v40 = vmul.f32 %v2629_v21, %v701_v36  ;;  %v850_v44 = vsel %vm833_vm4, %v817_v38, %v801_v22  ;;  %v978_v45 = vrot.slane %v2605_v11, 7  ;;  %v2746_v36 = vld [vmem:[%s2594_s28 + $0x88] sm:$0xff] }
  0x18   : > { %v770_v42 = vadd.f32 %v738_v37, %v593_v35  ;;  %v878_v47 = vsel %vm868_vm7, %v850_v44, 0.0  ;;  %v994_v49 = vrot.slane %v2608_v12, 7  ;;  %v915_v54 = vmul.f32 %v2682_v48, %v834_v43 }
  0x19   : > { %v769_v46 = vadd.f32 %v737_v40, %v592_v39  ;;  %v914_v53 = vmul.f32 %v2682_v48, %v878_v47  ;;  %v1223_v59 = vrot.slane %v2605_v11, 1  ;;  %v1239_v63 = vrot.slane %v2608_v12, 1 }
  0x1a   : > { %v1011_v55 = vsel %vm1010_vm8, %v978_v45, %v994_v49  ;;  %v1027_v56 = vsel %vm1010_vm8, %v994_v49, %v978_v45  ;;  %v947_v61 = vadd.f32 %v915_v54, %v770_v42  ;;  %v1159_v16 = vmul.f32 %v2702_v58, %v2605_v11 }
  0x1b   : > { %v946_v60 = vadd.f32 %v914_v53, %v769_v46  ;;  %v1055_v62 = vsel %vm4723_vm9, %v1027_v56, 0.0  ;;  %v1092_v15 = vmul.f32 %v2699_v57, %v1011_v55  ;;  %v1160_v17 = vmul.f32 %v2702_v58, %v2608_v12 }
  0x1c   : > { %v1091_v1 = vmul.f32 %v2699_v57, %v1055_v62  ;;  %v1334_v18 = vsub.s32 6, %v2565_v2  ;;  %v1400_v19 = vrot.slane %v2605_v11, 2  ;;  %v1416_v20 = vrot.slane %v2608_v12, 2 }
  0x1d   : > { %v1124_v27 = vadd.f32 %v1092_v15, %v947_v61  ;;  %v1256_v28 = vsel %vm4720_vm10, %v1223_v59, %v1239_v63  ;;  %v1511_v32 = vsub.s32 7, %v2565_v2  ;;  %v2743_v35 = vrot.slane %v266_v0, %v381_v5 }
  0x1e   : > { %v1123_v22 = vadd.f32 %v1091_v1, %v946_v60  ;;  %v2732_v30 = vrot.slane %v2572_v3, %v1334_v18  ;;  %v1433_v31 = vsel %vm4719_vm11, %v1400_v19, %v1416_v20  ;;  %v2752_v39 = vrot.slane %v266_v0, %v558_v7 }
  0x1f   : > { %v2748_v38 = vadd.f32 %v1160_v17, %v1124_v27  ;;  %v2756_v40 = vrot.slane %v266_v0, %v735_v10  ;;  %v2760_v42 = vrot.slane %v2572_v3, %v1511_v32  ;;  %v1625_v5 = vmul.f32 %v2743_v35, %v2634_v23 }
  0x20   : > { %v1191_v37 = vadd.f32 %v1159_v16, %v1123_v22  ;;  %v1336_v41 = vmul.f32 %v2732_v30, %v1256_v28  ;;  %v278_v43 = vrot.slane %v2729_v29, 3  ;;  %v1737_v44 = vmul.f32 %v2752_v39, %v2642_v25 }
  0x21   : > { %v1849_v7 = vmul.f32 %v2756_v40, %v657_v33  ;;  %v294_v45 = vrot.slane %v2746_v36, 3  ;;  %v455_v10 = vrot.slane %v2729_v29, 4  ;;  %v1513_v47 = vmul.f32 %v2760_v42, %v1433_v31 }
  0x22   : > { %v1368_v46 = vadd.f32 %v1336_v41, %v1191_v37  ;;  %v471_v3 = vrot.slane %v2746_v36, 4  ;;  %v632_v49 = vrot.slane %v2729_v29, 5  ;;  %v648_v33 = vrot.slane %v2746_v36, 5  ;;  %v2814_v41 = vld [vmem:[%s4715_s2] ss:$0 sm:$0xff] }
  0x23   : > { %v311_v23 = vsel %vm302_vm0, %v278_v43, %v294_v45  ;;  %v2777_v25 = vsel %vm302_vm0, %v294_v45, %v278_v43  ;;  %v809_v51 = vrot.slane %v2729_v29, 6  ;;  %v825_v27 = vrot.slane %v2746_v36, 6 }
  0x24   : > { %v1545_v52 = vadd.f32 %v1513_v47, %v1368_v46  ;;  %v363_v53 = vsel %vm337_vm3, %v2777_v25, 0.0  ;;  %v400_v54 = vmul.f32 %v2600_v9, %v311_v23  ;;  %v488_v55 = vsel %vm479_vm1, %v455_v10, %v471_v3 }
  0x25   : > { %v399_v56 = vmul.f32 %v2600_v9, %v363_v53  ;;  %v2790_v60 = vsel %vm479_vm1, %v471_v3, %v455_v10  ;;  %v577_v61 = vmul.f32 %v2614_v13, %v488_v55  ;;  %v665_v62 = vsel %vm656_vm2, %v632_v49, %v648_v33 }
  0x26   : > { %v1657_v0 = vadd.f32 %v1625_v5, %v1545_v52  ;;  %v540_v1 = vsel %vm514_vm5, %v2790_v60, 0.0  ;;  %v2800_v15 = vsel %vm656_vm2, %v648_v33, %v632_v49  ;;  %v754_v16 = vmul.f32 %v2629_v21, %v665_v62 }
  0x27   : > { %v576_v17 = vmul.f32 %v2614_v13, %v540_v1  ;;  %v609_v18 = vadd.f32 %v577_v61, %v400_v54  ;;  %v717_v22 = vsel %vm691_vm6, %v2800_v15, 0.0  ;;  %v986_v32 = vrot.slane %v2729_v29, 7 }
  0x28   : > { %v1769_v28 = vadd.f32 %v1737_v44, %v1657_v0  ;;  %v753_v31 = vmul.f32 %v2629_v21, %v717_v22  ;;  %v1002_v37 = vrot.slane %v2746_v36, 7  ;;  %v842_v45 = vsel %vm833_vm4, %v809_v51, %v825_v27 }
  0x29   : > { %v608_v5 = vadd.f32 %v576_v17, %v399_v56  ;;  %v786_v43 = vadd.f32 %v754_v16, %v609_v18  ;;  %v858_v10 = vsel %vm833_vm4, %v825_v27, %v809_v51  ;;  %v931_v47 = vmul.f32 %v2682_v48, %v842_v45 }
  0x2a   : > { %v1881_v44 = vadd.f32 %v1849_v7, %v1769_v28  ;;  %v894_v46 = vsel %vm868_vm7, %v858_v10, 0.0  ;;  %v1019_v3 = vsel %vm1010_vm8, %v986_v32, %v1002_v37  ;;  %v1035_v52 = vsel %vm1010_vm8, %v1002_v37, %v986_v32 }
  0x2b   : > { %v785_v49 = vadd.f32 %v753_v31, %v608_v5  ;;  %v930_v33 = vmul.f32 %v2682_v48, %v894_v46  ;;  %v1108_v53 = vmul.f32 %v2699_v57, %v1019_v3  ;;  %v963_v51 = vadd.f32 %v931_v47, %v786_v43 }
  0x2c   : > { %v1920_v54 = vadd.f32 %v2814_v41, %v1881_v44  ;;  %v1071_v7 = vsel %vm4723_vm9, %v1035_v52, 0.0  ;;  %v1175_v56 = vmul.f32 %v2702_v58, %v2729_v29  ;;  %v1176_v1 = vmul.f32 %v2702_v58, %v2746_v36 }
  0x2d   : > { %v962_v61 = vadd.f32 %v930_v33, %v785_v49  ;;  %v1107_v0 = vmul.f32 %v2699_v57, %v1071_v7  ;;  %v1231_v16 = vrot.slane %v2729_v29, 1  ;;  %v1140_v17 = vadd.f32 %v1108_v53, %v963_v51 }
  0x2e   : > { %2456 = vmatprep.mubr.msk.f32.mxu0 %vm1960_vm12, %v1920_v54  ;;  %v1247_v18 = vrot.slane %v2746_v36, 1  ;;  %v1408_v22 = vrot.slane %v2729_v29, 2  ;;  %v1424_v27 = vrot.slane %v2746_v36, 2  ;;  %v1641_v31 = vmul.f32 %v2743_v35, %v311_v23 }
  0x2f   : > { %v1139_v28 = vadd.f32 %v1107_v0, %v962_v61  ;;  %v1753_v32 = vmul.f32 %v2752_v39, %v488_v55  ;;  %v1865_v37 = vmul.f32 %v2756_v40, %v665_v62  ;;  %v1208_v5 = vadd.f32 %v1176_v1, %v1140_v17 }
  0x30   : > { %v1264_v43 = vsel %vm4720_vm10, %v1231_v16, %v1247_v18  ;;  %v1441_v45 = vsel %vm4719_vm11, %v1408_v22, %v1424_v27  ;;  %v269_v10 = vadd.s32 8, %v2565_v2  ;;  %v1272_v23 = vsel %vm4720_vm10, %v1239_v63, %v1223_v59 }
  0x31   : > { %v1207_v44 = vadd.f32 %v1175_v56, %v1139_v28  ;;  %v1352_v29 = vmul.f32 %v2732_v30, %v1264_v43  ;;  %v1529_v36 = vmul.f32 %v2760_v42, %v1441_v45  ;;  %v1449_v62 = vsel %vm4719_vm11, %v1416_v20, %v1400_v19 }
  0x32   : > { %v2858_v55 = vadd.s32 1, %v269_v10  ;;  %v2866_v46 = vadd.s32 2, %v269_v10  ;;  %v2868_v47 = vadd.s32 3, %v269_v10  ;;  %v2870_v49 = vadd.s32 4, %v269_v10 }
  0x33   : > { %v1384_v3 = vadd.f32 %v1352_v29, %v1207_v44  ;;  %v2872_v33 = vadd.s32 5, %v269_v10  ;;  %v1280_v59 = vsel %vm4720_vm10, %v1247_v18, %v1231_v16  ;;  %v1457_v11 = vsel %vm4719_vm11, %v1424_v27, %v1408_v22  ;;  %v2905_v16 = vld [vmem:[%s2594_s28 + $0x10] sm:$0xff] }
  0x34   : > { %vm1293_vm13 = vcmp.lt.s32.totalorder %v2858_v55, 16  ;;  %vm1470_vm14 = vcmp.lt.s32.totalorder %v2866_v46, 16  ;;  %vm1582_vm15 = vcmp.lt.s32.totalorder %v2868_v47, 16  ;;  %vm4722_vm11 = vcmp.lt.s32.totalorder %v2870_v49, 16 }
  0x35   : > { %v1561_v12 = vadd.f32 %v1529_v36, %v1384_v3  ;;  %v1301_v63 = vsel %vm1293_vm13, %v1272_v23, 0.0  ;;  %v1478_v19 = vsel %vm1470_vm14, %v1449_v62, 0.0  ;;  %v1590_v20 = vsel %vm1582_vm15, %v2638_v24, 0.0 }
  0x36   : > { %v1337_v52 = vmul.f32 %v2732_v30, %v1301_v63  ;;  %v1514_v53 = vmul.f32 %v2760_v42, %v1478_v19  ;;  %v1626_v54 = vmul.f32 %v2743_v35, %v1590_v20  ;;  %v1702_v7 = vsel %vm4722_vm11, %v2646_v26, 0.0 }
  0x37   : > { %v1673_v51 = vadd.f32 %v1641_v31, %v1561_v12  ;;  %vm4721_vm10 = vcmp.lt.s32.totalorder %v2872_v33, 16  ;;  %v1317_v56 = vsel %vm1293_vm13, %v1280_v59, 0.0  ;;  %v1738_v61 = vmul.f32 %v2752_v39, %v1702_v7  ;;  %v2916_v31 = vld [vmem:[%s2594_s28 + $0x18] sm:$0xff] }
  0x38   : > { %v1369_v24 = vadd.f32 %v1337_v52, %v2748_v38  ;;  %v1814_v0 = vsel %vm4721_vm10, %v2664_v34, 0.0  ;;  %v1353_v1 = vmul.f32 %v2732_v30, %v1317_v56  ;;  %v1494_v18 = vsel %vm1470_vm14, %v1457_v11, 0.0 }
  0x39   : > { %v1785_v17 = vadd.f32 %v1753_v32, %v1673_v51  ;;  %v1850_v26 = vmul.f32 %v2756_v40, %v1814_v0  ;;  %v1606_v38 = vsel %vm1582_vm15, %v2777_v25, 0.0  ;;  %v1530_v28 = vmul.f32 %v2760_v42, %v1494_v18 }
  0x3a   : > { %v1546_v22 = vadd.f32 %v1514_v53, %v1369_v24  ;;  %v1385_v27 = vadd.f32 %v1353_v1, %v1208_v5  ;;  %v1642_v34 = vmul.f32 %v2743_v35, %v1606_v38  ;;  %v1718_v32 = vsel %vm4722_vm11, %v2790_v60, 0.0 }
  0x3b   : > { %v1897_v43 = vadd.f32 %v1865_v37, %v1785_v17  ;;  %v1830_v45 = vsel %vm4721_vm10, %v2800_v15, 0.0  ;;  %v271_v10 = vrot.slane %v2905_v16, 3  ;;  %v1754_v5 = vmul.f32 %v2752_v39, %v1718_v32 }
  0x3c   : > { %v1658_v25 = vadd.f32 %v1626_v54, %v1546_v22  ;;  %v1562_v44 = vadd.f32 %v1530_v28, %v1385_v27  ;;  %v1866_v29 = vmul.f32 %v2756_v40, %v1830_v45  ;;  %v287_v37 = vrot.slane %v2916_v31, 3 }
  0x3d   : > { %v1936_v36 = vadd.f32 %v2814_v41, %v1897_v43  ;;  %v448_v23 = vrot.slane %v2905_v16, 4  ;;  %v464_v60 = vrot.slane %v2916_v31, 4  ;;  %v625_v15 = vrot.slane %v2905_v16, 5 }
  0x3e   : > { %v1770_v62 = vadd.f32 %v1738_v61, %v1658_v25  ;;  %v1674_v3 = vadd.f32 %v1642_v34, %v1562_v44  ;;  %v641_v59 = vrot.slane %v2916_v31, 5  ;;  %v304_v11 = vsel %vm302_vm0, %v271_v10, %v287_v37 }
  0x3f   : > { %2480 = vmatprep.mubr.msk.f32.mxu1 %vm1960_vm12, %v1936_v36  ;;  %v2938_v12 = vsel %vm302_vm0, %v287_v37, %v271_v10  ;;  %v481_v63 = vsel %vm479_vm1, %v448_v23, %v464_v60  ;;  %v2944_v19 = vsel %vm479_vm1, %v464_v60, %v448_v23  ;;  %v386_v54 = vmul.f32 %v2600_v9, %v304_v11 }
  0x40   : > { %v1882_v20 = vadd.f32 %v1850_v26, %v1770_v62  ;;  %v1786_v52 = vadd.f32 %v1754_v5, %v1674_v3  ;;  %v349_v53 = vsel %vm337_vm3, %v2938_v12, 0.0  ;;  %v526_v7 = vsel %vm514_vm5, %v2944_v19, 0.0 }
  0x41   : > { %v385_v51 = vmul.f32 %v2600_v9, %v349_v53  ;;  %v563_v56 = vmul.f32 %v2614_v13, %v481_v63  ;;  %v658_v24 = vsel %vm656_vm2, %v625_v15, %v641_v59  ;;  %v562_v1 = vmul.f32 %v2614_v13, %v526_v7  ;;  %v2998_v7 = vld [vmem:[%s2594_s28 + $0x90] sm:$0xff] }
  0x42   : > { %v1921_v61 = vadd.f32 %v2814_v41, %v1882_v20  ;;  %v1898_v0 = vadd.f32 %v1866_v29, %v1786_v52  ;;  %v2961_v17 = vsel %vm656_vm2, %v641_v59, %v625_v15  ;;  %v740_v38 = vmul.f32 %v2629_v21, %v658_v24 }
  0x43   : > { %v595_v26 = vadd.f32 %v563_v56, %v386_v54  ;;  %v703_v18 = vsel %vm691_vm6, %v2961_v17, 0.0  ;;  %v802_v22 = vrot.slane %v2905_v16, 6  ;;  %v594_v28 = vadd.f32 %v562_v1, %v385_v51  ;;  %v3001_v56 = vld [vmem:[%s2594_s28 + $0x98] sm:$0xff] }
  0x44   : > { %2457 = vmatmul.mubr.msk.f32.vlgmr.msra.gmra.mrb[0].mxu0 %vm1960_vm12, %v1921_v61  ;;  %v1937_v27 = vadd.f32 %v2814_v41, %v1898_v0  ;;  %v739_v34 = vmul.f32 %v2629_v21, %v703_v18  ;;  %v818_v43 = vrot.slane %v2916_v31, 6  ;;  %v979_v45 = vrot.slane %v2905_v16, 7 }
  0x45   : > { %v772_v32 = vadd.f32 %v740_v38, %v595_v26  ;;  %v995_v10 = vrot.slane %v2916_v31, 7  ;;  %v1161_v25 = vmul.f32 %v2702_v58, %v2905_v16  ;;  %v1224_v36 = vrot.slane %v2905_v16, 1 }
  0x46   : > { %2481 = vmatmul.mubr.msk.f32.vlgmr.msra.gmra.mrb[0].mxu1 %vm1960_vm12, %v1937_v27  ;;  %v771_v44 = vadd.f32 %v739_v34, %v594_v28  ;;  %v835_v5 = vsel %vm833_vm4, %v802_v22, %v818_v43  ;;  %v851_v29 = vsel %vm833_vm4, %v818_v43, %v802_v22  ;;  %v1240_v20 = vrot.slane %v2916_v31, 1 }
  0x47   : > { %v880_v37 = vsel %vm868_vm7, %v851_v29, 0.0  ;;  %v917_v23 = vmul.f32 %v2682_v48, %v835_v5  ;;  %v1012_v60 = vsel %vm1010_vm8, %v979_v45, %v995_v10  ;;  %v1028_v62 = vsel %vm1010_vm8, %v995_v10, %v979_v45 }
  0x48   : > { %v916_v3 = vmul.f32 %v2682_v48, %v880_v37  ;;  %v1057_v15 = vsel %vm4723_vm9, %v1028_v62, 0.0  ;;  %v1094_v59 = vmul.f32 %v2699_v57, %v1012_v60  ;;  %v1401_v54 = vrot.slane %v2905_v16, 2 }
  0x49   : > { %v949_v52 = vadd.f32 %v917_v23, %v772_v32  ;;  %v1093_v53 = vmul.f32 %v2699_v57, %v1057_v15  ;;  %v1417_v51 = vrot.slane %v2916_v31, 2  ;;  %vm4731_vm10 = vcmp.lt.s32.totalorder %v2565_v2, 7 }
  0x4a   : > { %v948_v61 = vadd.f32 %v916_v3, %v771_v44  ;;  %v1257_v0 = vsel %vm4731_vm10, %v1224_v36, %v1240_v20  ;;  %v1627_v1 = vmul.f32 %v2743_v35, %v304_v11  ;;  %v1739_v26 = vmul.f32 %v2752_v39, %v481_v63 }
  0x4b   : > { %v3011_v18 = vadd.f32 %v1094_v59, %v949_v52  ;;  %v1338_v38 = vmul.f32 %v2732_v30, %v1257_v0  ;;  %vm4732_vm11 = vcmp.lt.s32.totalorder %v2565_v2, 6  ;;  %v1851_v27 = vmul.f32 %v2756_v40, %v658_v24 }
  0x4c   : > { %v1434_v22 = vsel %vm4732_vm11, %v1401_v54, %v1417_v51  ;;  %v1125_v28 = vadd.f32 %v1093_v53, %v948_v61  ;;  %v279_v11 = vrot.slane %v2998_v7, 3  ;;  %v295_v63 = vrot.slane %v3001_v56, 3 }
  0x4d   : > { %v1515_v34 = vmul.f32 %v2760_v42, %v1434_v22  ;;  %v456_v43 = vrot.slane %v2998_v7, 4  ;;  %v472_v32 = vrot.slane %v3001_v56, 4  ;;  %v633_v45 = vrot.slane %v2998_v7, 5 }
  0x4e   : > { %v649_v10 = vrot.slane %v3001_v56, 5  ;;  %v1193_v44 = vadd.f32 %v1161_v25, %v1125_v28  ;;  %v312_v5 = vsel %vm302_vm0, %v279_v11, %v295_v63  ;;  %v3032_v24 = vsel %vm302_vm0, %v295_v63, %v279_v11 }
  0x4f   : > { %v810_v29 = vrot.slane %v2998_v7, 6  ;;  %v365_v37 = vsel %vm337_vm3, %v3032_v24, 0.0  ;;  %v402_v23 = vmul.f32 %v2600_v9, %v312_v5  ;;  %v489_v60 = vsel %vm479_vm1, %v456_v43, %v472_v32 }
  0x50   : > { %v3043_v25 = vsel %vm479_vm1, %v472_v32, %v456_v43  ;;  %v1370_v62 = vadd.f32 %v1338_v38, %v1193_v44  ;;  %v401_v3 = vmul.f32 %v2600_v9, %v365_v37  ;;  %v579_v59 = vmul.f32 %v2614_v13, %v489_v60 }
  0x51   : > { %v542_v15 = vsel %vm514_vm5, %v3043_v25, 0.0  ;;  %v666_v53 = vsel %vm656_vm2, %v633_v45, %v649_v10  ;;  %v3055_v61 = vsel %vm656_vm2, %v649_v10, %v633_v45  ;;  %v826_v0 = vrot.slane %v3001_v56, 6 }
  0x52   : > { %v578_v52 = vmul.f32 %v2614_v13, %v542_v15  ;;  %v1547_v38 = vadd.f32 %v1515_v34, %v1370_v62  ;;  %v611_v22 = vadd.f32 %v579_v59, %v402_v23  ;;  %v719_v28 = vsel %vm691_vm6, %v3055_v61, 0.0 }
  0x53   : > { %v756_v11 = vmul.f32 %v2629_v21, %v666_v53  ;;  %v755_v43 = vmul.f32 %v2629_v21, %v719_v28  ;;  %v843_v32 = vsel %vm833_vm4, %v810_v29, %v826_v0  ;;  %v859_v45 = vsel %vm833_vm4, %v826_v0, %v810_v29 }
  0x54   : > { %v610_v63 = vadd.f32 %v578_v52, %v401_v3  ;;  %v1659_v10 = vadd.f32 %v1627_v1, %v1547_v38  ;;  %v896_v34 = vsel %vm868_vm7, %v859_v45, 0.0  ;;  %v933_v37 = vmul.f32 %v2682_v48, %v843_v32 }
  0x55   : > { %v788_v44 = vadd.f32 %v756_v11, %v611_v22  ;;  %v932_v62 = vmul.f32 %v2682_v48, %v896_v34  ;;  %v987_v3 = vrot.slane %v2998_v7, 7  ;;  %v1003_v15 = vrot.slane %v3001_v56, 7 }
  0x56   : > { %v787_v23 = vadd.f32 %v755_v43, %v610_v63  ;;  %v1771_v59 = vadd.f32 %v1739_v26, %v1659_v10  ;;  %v1177_v28 = vmul.f32 %v2702_v58, %v2998_v7  ;;  %v1232_v1 = vrot.slane %v2998_v7, 1 }
  0x57   : > { %v965_v52 = vadd.f32 %v933_v37, %v788_v44  ;;  %v1020_v0 = vsel %vm1010_vm8, %v987_v3, %v1003_v15  ;;  %v1036_v38 = vsel %vm1010_vm8, %v1003_v15, %v987_v3  ;;  %v1248_v22 = vrot.slane %v3001_v56, 1 }
  0x58   : > { %v964_v29 = vadd.f32 %v932_v62, %v787_v23  ;;  %v1883_v11 = vadd.f32 %v1851_v27, %v1771_v59  ;;  %v1073_v63 = vsel %vm4723_vm9, %v1036_v38, 0.0  ;;  %v1110_v26 = vmul.f32 %v2699_v57, %v1020_v0 }
  0x59   : > { %v1409_v43 = vrot.slane %v2998_v7, 2  ;;  %v1109_v32 = vmul.f32 %v2699_v57, %v1073_v63  ;;  %v1265_v45 = vsel %vm4731_vm10, %v1232_v1, %v1248_v22  ;;  %v1425_v10 = vrot.slane %v3001_v56, 2 }
  0x5a   : > { %v1643_v44 = vmul.f32 %v2743_v35, %v312_v5  ;;  %v1922_v34 = vadd.f32 %v2814_v41, %v1883_v11  ;;  %v1142_v37 = vadd.f32 %v1110_v26, %v965_v52  ;;  %v1354_v27 = vmul.f32 %v2732_v30, %v1265_v45 }
  0x5b   : > { %v1755_v23 = vmul.f32 %v2752_v39, %v489_v60  ;;  %v1141_v62 = vadd.f32 %v1109_v32, %v964_v29  ;;  %v1442_v7 = vsel %vm4732_vm11, %v1409_v43, %v1425_v10  ;;  %v1867_v3 = vmul.f32 %v2756_v40, %v666_v53 }
  0x5c   : > { %v1162_v15 = vmul.f32 %v2702_v58, %v2916_v31  ;;  %2459 = vmatprep.mubr.msk.f32.mxu0 %vm1960_vm12, %v1922_v34  ;;  %v1531_v5 = vmul.f32 %v2760_v42, %v1442_v7  ;;  %v1273_v60 = vsel %vm4731_vm10, %v1240_v20, %v1224_v36  ;;  %v1450_v53 = vsel %vm4732_vm11, %v1417_v51, %v1401_v54 }
  0x5d   : > { %v1592_v59 = vsel %vm1582_vm15, %v2938_v12, 0.0  ;;  %v1209_v52 = vadd.f32 %v1177_v28, %v1141_v62  ;;  %v1303_v0 = vsel %vm1293_vm13, %v1273_v60, 0.0  ;;  %v1480_v36 = vsel %vm1470_vm14, %v1450_v53, 0.0 }
  0x5e   : > { %v1194_v29 = vadd.f32 %v1162_v15, %v3011_v18  ;;  %v1339_v16 = vmul.f32 %v2732_v30, %v1303_v0  ;;  %v1516_v31 = vmul.f32 %v2760_v42, %v1480_v36  ;;  %v1628_v20 = vmul.f32 %v2743_v35, %v1592_v59 }
  0x5f   : > { %vm4733_vm10 = vcmp.lt.s32.totalorder %v2870_v49, 16  ;;  %v1386_v12 = vadd.f32 %v1354_v27, %v1209_v52  ;;  %vm4734_vm11 = vcmp.lt.s32.totalorder %v2872_v33, 16  ;;  %v1178_v28 = vmul.f32 %v2702_v58, %v3001_v56 }
  0x60   : > { %v1704_v54 = vsel %vm4733_vm10, %v2944_v19, 0.0  ;;  %v1816_v18 = vsel %vm4734_vm11, %v2961_v17, 0.0  ;;  %v1371_v38 = vadd.f32 %v1339_v16, %v1194_v29  ;;  %vm4735_vm9 = vcmp.lt.s32.totalorder %v2565_v2, 7 }
  0x61   : > { %v1740_v51 = vmul.f32 %v2752_v39, %v1704_v54  ;;  %v1852_v11 = vmul.f32 %v2756_v40, %v1816_v18  ;;  %v1281_v63 = vsel %vm4735_vm9, %v1248_v22, %v1232_v1  ;;  %vm4736_vm10 = vcmp.lt.s32.totalorder %v2565_v2, 6  ;;  %v3147_v22 = vld [vmem:[%s2594_s28 + $0x20] sm:$0xff] }
  0x62   : > { %v1458_v19 = vsel %vm4736_vm10, %v1425_v10, %v1409_v43  ;;  %v1563_v26 = vadd.f32 %v1531_v5, %v1386_v12  ;;  %v1210_v32 = vadd.f32 %v1178_v28, %v1142_v37  ;;  %v1319_v45 = vsel %vm1293_vm13, %v1281_v63, 0.0  ;;  %v3150_v43 = vld [vmem:[%s2594_s28 + $0x28] sm:$0xff] }
  0x63   : > { %v1496_v17 = vsel %vm1470_vm14, %v1458_v19, 0.0  ;;  %v1548_v34 = vadd.f32 %v1516_v31, %v1371_v38  ;;  %v1355_v56 = vmul.f32 %v2732_v30, %v1319_v45  ;;  %v1608_v1 = vsel %vm1582_vm15, %v3032_v24, 0.0 }
  0x64   : > { %v1532_v27 = vmul.f32 %v2760_v42, %v1496_v17  ;;  %v1675_v10 = vadd.f32 %v1643_v44, %v1563_v26  ;;  %v1644_v37 = vmul.f32 %v2743_v35, %v1608_v1  ;;  %vm4737_vm9 = vcmp.lt.s32.totalorder %v2870_v49, 16 }
  0x65   : > { %v1720_v62 = vsel %vm4737_vm9, %v3043_v25, 0.0  ;;  %v1832_v7 = vsel %vm4734_vm11, %v3055_v61, 0.0  ;;  %v1660_v15 = vadd.f32 %v1628_v20, %v1548_v34  ;;  %v1387_v5 = vadd.f32 %v1355_v56, %v1210_v32 }
  0x66   : > { %v1756_v60 = vmul.f32 %v2752_v39, %v1720_v62  ;;  %v1868_v24 = vmul.f32 %v2756_v40, %v1832_v7  ;;  %v1787_v53 = vadd.f32 %v1755_v23, %v1675_v10  ;;  %v272_v59 = vrot.slane %v3147_v22, 3 }
  0x67   : > { %v288_v44 = vrot.slane %v3150_v43, 3  ;;  %v449_v52 = vrot.slane %v3147_v22, 4  ;;  %v1772_v29 = vadd.f32 %v1740_v51, %v1660_v15  ;;  %v1564_v0 = vadd.f32 %v1532_v27, %v1387_v5 }
  0x68   : > { %v465_v25 = vrot.slane %v3150_v43, 4  ;;  %v626_v36 = vrot.slane %v3147_v22, 5  ;;  %v1899_v61 = vadd.f32 %v1867_v3, %v1787_v53  ;;  %v642_v23 = vrot.slane %v3150_v43, 5 }
  0x69   : > { %v305_v16 = vsel %vm302_vm0, %v272_v59, %v288_v44  ;;  %v3170_v31 = vsel %vm302_vm0, %v288_v44, %v272_v59  ;;  %v1884_v20 = vadd.f32 %v1852_v11, %v1772_v29  ;;  %v1676_v54 = vadd.f32 %v1644_v37, %v1564_v0 }
  0x6a   : > { %v351_v12 = vsel %vm337_vm3, %v3170_v31, 0.0  ;;  %v388_v51 = vmul.f32 %v2600_v9, %v305_v16  ;;  %v1938_v18 = vadd.f32 %v2814_v41, %v1899_v61  ;;  %v482_v28 = vsel %vm479_vm1, %v449_v52, %v465_v25 }
  0x6b   : > { %v387_v3 = vmul.f32 %v2600_v9, %v351_v12  ;;  %v3183_v38 = vsel %vm479_vm1, %v465_v25, %v449_v52  ;;  %v1923_v11 = vadd.f32 %v2814_v41, %v1884_v20  ;;  %v1788_v63 = vadd.f32 %v1756_v60, %v1676_v54 }
  0x6c   : > { %v528_v19 = vsel %vm514_vm5, %v3183_v38, 0.0  ;;  %v565_v26 = vmul.f32 %v2614_v13, %v482_v28  ;;  %2483 = vmatprep.mubr.msk.f32.mxu1 %vm1960_vm12, %v1938_v18  ;;  %v659_v45 = vsel %vm656_vm2, %v626_v36, %v642_v23  ;;  %v3196_v17 = vsel %vm656_vm2, %v642_v23, %v626_v36 }
  0x6d   : > { %v564_v32 = vmul.f32 %v2614_v13, %v528_v19  ;;  %v803_v34 = vrot.slane %v3147_v22, 6  ;;  %2460 = vmatmul.mubr.msk.f32.gmra.mrb[2].mxu0 %vm1960_vm12, %v1923_v11  ;;  %v1900_v56 = vadd.f32 %v1868_v24, %v1788_v63  ;;  %v705_v1 = vsel %vm691_vm6, %v3196_v17, 0.0  ;;  %v3233_v63 = vld [vmem:[%s2594_s28 + $0xa0] sm:$0xff]  ;;  %v3236_v19 = vld [vmem:[%s2594_s28 + $0xa8] sm:$0xff] }
  0x6e   : > { %v597_v27 = vadd.f32 %v565_v26, %v388_v51  ;;  %v742_v10 = vmul.f32 %v2629_v21, %v659_v45  ;;  %v741_v62 = vmul.f32 %v2629_v21, %v705_v1  ;;  %v819_v7 = vrot.slane %v3150_v43, 6 }
  0x6f   : > { %v596_v37 = vadd.f32 %v564_v32, %v387_v3  ;;  %v980_v15 = vrot.slane %v3147_v22, 7  ;;  %v1939_v5 = vadd.f32 %v2814_v41, %v1900_v56  ;;  %v996_v53 = vrot.slane %v3150_v43, 7 }
  0x70   : > { %v774_v60 = vadd.f32 %v742_v10, %v597_v27  ;;  %v1163_v24 = vmul.f32 %v2702_v58, %v3147_v22  ;;  %v836_v44 = vsel %vm833_vm4, %v803_v34, %v819_v7  ;;  %v852_v52 = vsel %vm833_vm4, %v819_v7, %v803_v34 }
  0x71   : > { %v773_v59 = vadd.f32 %v741_v62, %v596_v37  ;;  %v1225_v29 = vrot.slane %v3147_v22, 1  ;;  %2484 = vmatmul.mubr.msk.f32.gmra.mrb[2].mxu1 %vm1960_vm12, %v1939_v5  ;;  %v882_v0 = vsel %vm868_vm7, %v852_v52, 0.0  ;;  %v919_v25 = vmul.f32 %v2682_v48, %v836_v44 }
  0x72   : > { %v1013_v36 = vsel %vm1010_vm8, %v980_v15, %v996_v53  ;;  %v1029_v61 = vsel %vm1010_vm8, %v996_v53, %v980_v15  ;;  %v918_v23 = vmul.f32 %v2682_v48, %v882_v0  ;;  %vm4738_vm10 = vcmp.ge.s32.totalorder %v2687_v50, 0 }
  0x73   : > { %v1059_v20 = vsel %vm4738_vm10, %v1029_v61, 0.0  ;;  %v1096_v54 = vmul.f32 %v2699_v57, %v1013_v36  ;;  %v1241_v12 = vrot.slane %v3150_v43, 1  ;;  %v951_v51 = vadd.f32 %v919_v25, %v774_v60 }
  0x74   : > { %v1095_v18 = vmul.f32 %v2699_v57, %v1059_v20  ;;  %v1402_v3 = vrot.slane %v3147_v22, 2  ;;  %v1418_v11 = vrot.slane %v3150_v43, 2  ;;  %v950_v26 = vadd.f32 %v918_v23, %v773_v59 }
  0x75   : > { %vm4739_vm9 = vcmp.lt.s32.totalorder %v2565_v2, 7  ;;  %v1629_v34 = vmul.f32 %v2743_v35, %v305_v16  ;;  %v1741_v56 = vmul.f32 %v2752_v39, %v482_v28  ;;  %v3246_v27 = vadd.f32 %v1096_v54, %v951_v51 }
  0x76   : > { %v1258_v32 = vsel %vm4739_vm9, %v1225_v29, %v1241_v12  ;;  %vm4740_vm11 = vcmp.lt.s32.totalorder %v2565_v2, 6  ;;  %v1853_v37 = vmul.f32 %v2756_v40, %v659_v45  ;;  %v1127_v62 = vadd.f32 %v1095_v18, %v950_v26 }
  0x77   : > { %v1340_v1 = vmul.f32 %v2732_v30, %v1258_v32  ;;  %v1435_v10 = vsel %vm4740_vm11, %v1402_v3, %v1418_v11  ;;  %v280_v16 = vrot.slane %v3233_v63, 3  ;;  %v296_v28 = vrot.slane %v3236_v19, 3 }
  0x78   : > { %v1517_v7 = vmul.f32 %v2760_v42, %v1435_v10  ;;  %v457_v15 = vrot.slane %v3233_v63, 4  ;;  %v473_v5 = vrot.slane %v3236_v19, 4  ;;  %v634_v60 = vrot.slane %v3233_v63, 5 }
  0x79   : > { %v650_v53 = vrot.slane %v3236_v19, 5  ;;  %v1195_v59 = vadd.f32 %v1163_v24, %v1127_v62  ;;  %v313_v44 = vsel %vm302_vm0, %v280_v16, %v296_v28  ;;  %v3267_v45 = vsel %vm302_vm0, %v296_v28, %v280_v16 }
  0x7a   : > { %v811_v52 = vrot.slane %v3233_v63, 6  ;;  %v367_v0 = vsel %vm337_vm3, %v3267_v45, 0.0  ;;  %v404_v25 = vmul.f32 %v2600_v9, %v313_v44  ;;  %v490_v36 = vsel %vm479_vm1, %v457_v15, %v473_v5 }
  0x7b   : > { %v3278_v24 = vsel %vm479_vm1, %v473_v5, %v457_v15  ;;  %v1372_v61 = vadd.f32 %v1340_v1, %v1195_v59  ;;  %v403_v23 = vmul.f32 %v2600_v9, %v367_v0  ;;  %v581_v54 = vmul.f32 %v2614_v13, %v490_v36 }
  0x7c   : > { %v544_v20 = vsel %vm514_vm5, %v3278_v24, 0.0  ;;  %v667_v18 = vsel %vm656_vm2, %v634_v60, %v650_v53  ;;  %v3290_v26 = vsel %vm656_vm2, %v650_v53, %v634_v60  ;;  %v827_v32 = vrot.slane %v3236_v19, 6 }
  0x7d   : > { %v580_v51 = vmul.f32 %v2614_v13, %v544_v20  ;;  %v1549_v1 = vadd.f32 %v1517_v7, %v1372_v61  ;;  %v613_v10 = vadd.f32 %v581_v54, %v404_v25  ;;  %v721_v62 = vsel %vm691_vm6, %v3290_v26, 0.0 }
  0x7e   : > { %v758_v16 = vmul.f32 %v2629_v21, %v667_v18  ;;  %v757_v15 = vmul.f32 %v2629_v21, %v721_v62  ;;  %v844_v5 = vsel %vm833_vm4, %v811_v52, %v827_v32  ;;  %v860_v60 = vsel %vm833_vm4, %v827_v32, %v811_v52 }
  0x7f   : > { %v612_v28 = vadd.f32 %v580_v51, %v403_v23  ;;  %v1661_v53 = vadd.f32 %v1629_v34, %v1549_v1  ;;  %v898_v7 = vsel %vm868_vm7, %v860_v60, 0.0  ;;  %v935_v0 = vmul.f32 %v2682_v48, %v844_v5 }
  0x80   : > { %v790_v59 = vadd.f32 %v758_v16, %v613_v10  ;;  %v934_v61 = vmul.f32 %v2682_v48, %v898_v7  ;;  %v988_v23 = vrot.slane %v3233_v63, 7  ;;  %v1004_v20 = vrot.slane %v3236_v19, 7 }
  0x81   : > { %v789_v25 = vadd.f32 %v757_v15, %v612_v28  ;;  %v1773_v54 = vadd.f32 %v1741_v56, %v1661_v53  ;;  %v1179_v62 = vmul.f32 %v2702_v58, %v3233_v63  ;;  %v1233_v34 = vrot.slane %v3233_v63, 1 }
  0x82   : > { %v967_v51 = vadd.f32 %v935_v0, %v790_v59  ;;  %v1021_v32 = vsel %vm1010_vm8, %v988_v23, %v1004_v20  ;;  %v1037_v1 = vsel %vm1010_vm8, %v1004_v20, %v988_v23  ;;  %v1249_v10 = vrot.slane %v3236_v19, 1 }
  0x83   : > { %v966_v52 = vadd.f32 %v934_v61, %v789_v25  ;;  %v1885_v16 = vadd.f32 %v1853_v37, %v1773_v54  ;;  %v1075_v28 = vsel %vm4738_vm10, %v1037_v1, 0.0  ;;  %v1112_v56 = vmul.f32 %v2699_v57, %v1021_v32  ;;  %vm4741_vm10 = vmmov %vm4739_vm9 }
  0x84   : > { %v1410_v15 = vrot.slane %v3233_v63, 2  ;;  %v1111_v5 = vmul.f32 %v2699_v57, %v1075_v28  ;;  %v1266_v60 = vsel %vm4739_vm9, %v1233_v34, %v1249_v10  ;;  %v1426_v53 = vrot.slane %v3236_v19, 2  ;;  %vm4742_vm9 = vmmov %vm4740_vm11 }
  0x85   : > { %v1645_v59 = vmul.f32 %v2743_v35, %v313_v44  ;;  %v1924_v7 = vadd.f32 %v2814_v41, %v1885_v16  ;;  %v1144_v0 = vadd.f32 %v1112_v56, %v967_v51  ;;  %v1356_v37 = vmul.f32 %v2732_v30, %v1266_v60 }
  0x86   : > { %v1757_v25 = vmul.f32 %v2752_v39, %v490_v36  ;;  %v1143_v61 = vadd.f32 %v1111_v5, %v966_v52  ;;  %v1443_v63 = vsel %vm4740_vm11, %v1410_v15, %v1426_v53  ;;  %v1869_v23 = vmul.f32 %v2756_v40, %v667_v18 }
  0x87   : > { %v1164_v20 = vmul.f32 %v2702_v58, %v3150_v43  ;;  %2462 = vmatprep.mubr.msk.f32.mxu0 %vm1960_vm12, %v1924_v7  ;;  %v1533_v44 = vmul.f32 %v2760_v42, %v1443_v63  ;;  %v1274_v36 = vsel %vm4741_vm10, %v1241_v12, %v1225_v29  ;;  %v1451_v18 = vsel %vm4742_vm9, %v1418_v11, %v1402_v3 }
  0x88   : > { %v1594_v54 = vsel %vm1582_vm15, %v3170_v31, 0.0  ;;  %v1211_v51 = vadd.f32 %v1179_v62, %v1143_v61  ;;  %v1305_v32 = vsel %vm1293_vm13, %v1274_v36, 0.0  ;;  %v1482_v29 = vsel %vm1470_vm14, %v1451_v18, 0.0 }
  0x89   : > { %v1196_v52 = vadd.f32 %v1164_v20, %v3246_v27  ;;  %v1341_v22 = vmul.f32 %v2732_v30, %v1305_v32  ;;  %v1518_v43 = vmul.f32 %v2760_v42, %v1482_v29  ;;  %v1630_v12 = vmul.f32 %v2743_v35, %v1594_v54 }
  0x8a   : > { %vm4743_vm11 = vcmp.lt.s32.totalorder %v2870_v49, 16  ;;  %v1388_v31 = vadd.f32 %v1356_v37, %v1211_v51  ;;  %vm4744_vm10 = vcmp.lt.s32.totalorder %v2872_v33, 16  ;;  %v1180_v62 = vmul.f32 %v2702_v58, %v3236_v19 }
  0x8b   : > { %v1706_v3 = vsel %vm4743_vm11, %v3183_v38, 0.0  ;;  %v1818_v27 = vsel %vm4744_vm10, %v3196_v17, 0.0  ;;  %v1373_v1 = vadd.f32 %v1341_v22, %v1196_v52  ;;  %vm4745_vm9 = vcmp.lt.s32.totalorder %v2565_v2, 7 }
  0x8c   : > { %v1742_v11 = vmul.f32 %v2752_v39, %v1706_v3  ;;  %v1854_v16 = vmul.f32 %v2756_v40, %v1818_v27  ;;  %v1282_v28 = vsel %vm4745_vm9, %v1249_v10, %v1233_v34  ;;  %vm4746_vm11 = vcmp.lt.s32.totalorder %v2565_v2, 6  ;;  %v3382_v10 = vld [vmem:[%s2594_s28 + $0x30] sm:$0xff] }
  0x8d   : > { %v1459_v38 = vsel %vm4746_vm11, %v1426_v53, %v1410_v15  ;;  %v1565_v56 = vadd.f32 %v1533_v44, %v1388_v31  ;;  %v1212_v5 = vadd.f32 %v1180_v62, %v1144_v0  ;;  %v1321_v60 = vsel %vm1293_vm13, %v1282_v28, 0.0  ;;  %v3385_v15 = vld [vmem:[%s2594_s28 + $0x38] sm:$0xff] }
  0x8e   : > { %v1498_v17 = vsel %vm1470_vm14, %v1459_v38, 0.0  ;;  %v1550_v7 = vadd.f32 %v1518_v43, %v1373_v1  ;;  %v1357_v19 = vmul.f32 %v2732_v30, %v1321_v60  ;;  %v1610_v34 = vsel %vm1582_vm15, %v3267_v45, 0.0 }
  0x8f   : > { %v1534_v37 = vmul.f32 %v2760_v42, %v1498_v17  ;;  %v1677_v53 = vadd.f32 %v1645_v59, %v1565_v56  ;;  %v1646_v0 = vmul.f32 %v2743_v35, %v1610_v34  ;;  %vm4747_vm10 = vcmp.lt.s32.totalorder %v2870_v49, 16 }
  0x90   : > { %v1722_v61 = vsel %vm4747_vm10, %v3278_v24, 0.0  ;;  %vm4748_vm9 = vcmp.lt.s32.totalorder %v2872_v33, 16  ;;  %v1662_v20 = vadd.f32 %v1630_v12, %v1550_v7  ;;  %v1389_v44 = vadd.f32 %v1357_v19, %v1212_v5 }
  0x91   : > { %v1834_v63 = vsel %vm4748_vm9, %v3290_v26, 0.0  ;;  %v1758_v36 = vmul.f32 %v2752_v39, %v1722_v61  ;;  %v1789_v18 = vadd.f32 %v1757_v25, %v1677_v53  ;;  %v273_v54 = vrot.slane %v3382_v10, 3 }
  0x92   : > { %v1870_v45 = vmul.f32 %v2756_v40, %v1834_v63  ;;  %v289_v59 = vrot.slane %v3385_v15, 3  ;;  %v450_v51 = vrot.slane %v3382_v10, 4  ;;  %v1774_v52 = vadd.f32 %v1742_v11, %v1662_v20 }
  0x93   : > { %v1566_v32 = vadd.f32 %v1534_v37, %v1389_v44  ;;  %v466_v24 = vrot.slane %v3385_v15, 4  ;;  %v627_v29 = vrot.slane %v3382_v10, 5  ;;  %v1901_v26 = vadd.f32 %v1869_v23, %v1789_v18 }
  0x94   : > { %v306_v22 = vsel %vm302_vm0, %v273_v54, %v289_v59  ;;  %v3405_v43 = vsel %vm302_vm0, %v289_v59, %v273_v54  ;;  %v643_v25 = vrot.slane %v3385_v15, 5  ;;  %v1886_v12 = vadd.f32 %v1854_v16, %v1774_v52 }
  0x95   : > { %v1678_v3 = vadd.f32 %v1646_v0, %v1566_v32  ;;  %v353_v31 = vsel %vm337_vm3, %v3405_v43, 0.0  ;;  %v390_v11 = vmul.f32 %v2600_v9, %v306_v22  ;;  %v1940_v27 = vadd.f32 %v2814_v41, %v1901_v26 }
  0x96   : > { %v389_v23 = vmul.f32 %v2600_v9, %v353_v31  ;;  %v483_v62 = vsel %vm479_vm1, %v450_v51, %v466_v24  ;;  %v3418_v1 = vsel %vm479_vm1, %v466_v24, %v450_v51  ;;  %v1925_v16 = vadd.f32 %v2814_v41, %v1886_v12 }
  0x97   : > { %v1790_v28 = vadd.f32 %v1758_v36, %v1678_v3  ;;  %v530_v38 = vsel %vm514_vm5, %v3418_v1, 0.0  ;;  %v567_v56 = vmul.f32 %v2614_v13, %v483_v62  ;;  %2486 = vmatprep.mubr.msk.f32.mxu1 %vm1960_vm12, %v1940_v27  ;;  %v660_v60 = vsel %vm656_vm2, %v627_v29, %v643_v25 }
  0x98   : > { %v566_v5 = vmul.f32 %v2614_v13, %v530_v38  ;;  %v3431_v17 = vsel %vm656_vm2, %v643_v25, %v627_v29  ;;  %v804_v7 = vrot.slane %v3382_v10, 6  ;;  %2463 = vmatmul.mubr.msk.f32.gmra.mrb[4].mxu0 %vm1960_vm12, %v1925_v16  ;;  %v744_v53 = vmul.f32 %v2629_v21, %v660_v60  ;;  %v3468_v16 = vld [vmem:[%s2594_s28 + $0xb0] sm:$0xff] }
  0x99   : > { %v1902_v19 = vadd.f32 %v1870_v45, %v1790_v28  ;;  %v599_v37 = vadd.f32 %v567_v56, %v390_v11  ;;  %v707_v34 = vsel %vm691_vm6, %v3431_v17, 0.0  ;;  %v820_v63 = vrot.slane %v3385_v15, 6  ;;  %v3471_v28 = vld [vmem:[%s2594_s28 + $0xb8] sm:$0xff] }
  0x9a   : > { %v598_v0 = vadd.f32 %v566_v5, %v389_v23  ;;  %v743_v61 = vmul.f32 %v2629_v21, %v707_v34  ;;  %v981_v20 = vrot.slane %v3382_v10, 7  ;;  %v997_v18 = vrot.slane %v3385_v15, 7 }
  0x9b   : > { %v1941_v44 = vadd.f32 %v2814_v41, %v1902_v19  ;;  %v776_v36 = vadd.f32 %v744_v53, %v599_v37  ;;  %v1165_v45 = vmul.f32 %v2702_v58, %v3382_v10  ;;  %v837_v59 = vsel %vm833_vm4, %v804_v7, %v820_v63 }
  0x9c   : > { %v775_v54 = vadd.f32 %v743_v61, %v598_v0  ;;  %v853_v51 = vsel %vm833_vm4, %v820_v63, %v804_v7  ;;  %v1226_v52 = vrot.slane %v3382_v10, 1  ;;  %v921_v32 = vmul.f32 %v2682_v48, %v837_v59 }
  0x9d   : > { %2487 = vmatmul.mubr.msk.f32.gmra.mrb[4].mxu1 %vm1960_vm12, %v1941_v44  ;;  %v884_v41 = vsel %vm868_vm7, %v853_v51, 0.0  ;;  %v1014_v24 = vsel %vm1010_vm8, %v981_v20, %v997_v18  ;;  %v1030_v29 = vsel %vm1010_vm8, %v997_v18, %v981_v20  ;;  %vm4749_vm11 = vcmp.ge.s32.totalorder %v2687_v50, 0 }
  0x9e   : > { %v920_v26 = vmul.f32 %v2682_v48, %v884_v41  ;;  %v1061_v25 = vsel %vm4749_vm11, %v1030_v29, 0.0  ;;  %v1098_v12 = vmul.f32 %v2699_v57, %v1014_v24  ;;  %v1242_v3 = vrot.slane %v3385_v15, 1 }
  0x9f   : > { %v953_v31 = vadd.f32 %v921_v32, %v776_v36  ;;  %v1097_v11 = vmul.f32 %v2699_v57, %v1061_v25  ;;  %v1403_v27 = vrot.slane %v3382_v10, 2  ;;  %v1419_v23 = vrot.slane %v3385_v15, 2 }
  0xa0   : > { %v952_v38 = vadd.f32 %v920_v26, %v775_v54  ;;  %vm4750_vm10 = vcmp.lt.s32.totalorder %v2565_v2, 7  ;;  %v1631_v5 = vmul.f32 %v2743_v35, %v306_v22  ;;  %v1743_v7 = vmul.f32 %v2752_v39, %v483_v62 }
  0xa1   : > { %v1259_v56 = vsel %vm4750_vm10, %v1226_v52, %v1242_v3  ;;  %v3481_v19 = vadd.f32 %v1098_v12, %v953_v31  ;;  %vm4751_vm9 = vcmp.lt.s32.totalorder %v2565_v2, 6  ;;  %v1855_v53 = vmul.f32 %v2756_v40, %v660_v60 }
  0xa2   : > { %v1342_v37 = vmul.f32 %v2732_v30, %v1259_v56  ;;  %v1436_v34 = vsel %vm4751_vm9, %v1403_v27, %v1419_v23  ;;  %v1129_v0 = vadd.f32 %v1097_v11, %v952_v38  ;;  %v281_v22 = vrot.slane %v3468_v16, 3 }
  0xa3   : > { %v1519_v61 = vmul.f32 %v2760_v42, %v1436_v34  ;;  %v297_v62 = vrot.slane %v3471_v28, 3  ;;  %v458_v63 = vrot.slane %v3468_v16, 4  ;;  %v474_v20 = vrot.slane %v3471_v28, 4 }
  0xa4   : > { %v635_v44 = vrot.slane %v3468_v16, 5  ;;  %v651_v36 = vrot.slane %v3471_v28, 5  ;;  %v1197_v18 = vadd.f32 %v1165_v45, %v1129_v0  ;;  %v812_v59 = vrot.slane %v3468_v16, 6 }
  0xa5   : > { %v314_v54 = vsel %vm302_vm0, %v281_v22, %v297_v62  ;;  %v3502_v60 = vsel %vm302_vm0, %v297_v62, %v281_v22  ;;  %v491_v32 = vsel %vm479_vm1, %v458_v63, %v474_v20  ;;  %v3513_v45 = vsel %vm479_vm1, %v474_v20, %v458_v63 }
  0xa6   : > { %v369_v51 = vsel %vm337_vm3, %v3502_v60, 0.0  ;;  %v406_v41 = vmul.f32 %v2600_v9, %v314_v54  ;;  %v1374_v24 = vadd.f32 %v1342_v37, %v1197_v18  ;;  %v546_v26 = vsel %vm514_vm5, %v3513_v45, 0.0 }
  0xa7   : > { %v405_v29 = vmul.f32 %v2600_v9, %v369_v51  ;;  %v583_v25 = vmul.f32 %v2614_v13, %v491_v32  ;;  %v582_v12 = vmul.f32 %v2614_v13, %v546_v26  ;;  %v668_v31 = vsel %vm656_vm2, %v635_v44, %v651_v36 }
  0xa8   : > { %v3525_v11 = vsel %vm656_vm2, %v651_v36, %v635_v44  ;;  %v828_v38 = vrot.slane %v3471_v28, 6  ;;  %v1551_v56 = vadd.f32 %v1519_v61, %v1374_v24  ;;  %v760_v0 = vmul.f32 %v2629_v21, %v668_v31 }
  0xa9   : > { %v615_v37 = vadd.f32 %v583_v25, %v406_v41  ;;  %v723_v34 = vsel %vm691_vm6, %v3525_v11, 0.0  ;;  %v614_v22 = vadd.f32 %v582_v12, %v405_v29  ;;  %v989_v24 = vrot.slane %v3468_v16, 7 }
  0xaa   : > { %v759_v62 = vmul.f32 %v2629_v21, %v723_v34  ;;  %v845_v63 = vsel %vm833_vm4, %v812_v59, %v828_v38  ;;  %v861_v20 = vsel %vm833_vm4, %v828_v38, %v812_v59  ;;  %v1663_v44 = vadd.f32 %v1631_v5, %v1551_v56 }
  0xab   : > { %v792_v36 = vadd.f32 %v760_v0, %v615_v37  ;;  %v900_v61 = vsel %vm868_vm7, %v861_v20, 0.0  ;;  %v937_v18 = vmul.f32 %v2682_v48, %v845_v63  ;;  %v1005_v29 = vrot.slane %v3471_v28, 7 }
  0xac   : > { %v791_v51 = vadd.f32 %v759_v62, %v614_v22  ;;  %v936_v41 = vmul.f32 %v2682_v48, %v900_v61  ;;  %v1775_v26 = vadd.f32 %v1743_v7, %v1663_v44  ;;  %v1181_v12 = vmul.f32 %v2702_v58, %v3468_v16 }
  0xad   : > { %v969_v25 = vadd.f32 %v937_v18, %v792_v36  ;;  %v1234_v5 = vrot.slane %v3468_v16, 1  ;;  %v1022_v38 = vsel %vm1010_vm8, %v989_v24, %v1005_v29  ;;  %v1038_v56 = vsel %vm1010_vm8, %v1005_v29, %v989_v24 }
  0xae   : > { %v968_v59 = vadd.f32 %v936_v41, %v791_v51  ;;  %v1250_v37 = vrot.slane %v3471_v28, 1  ;;  %v1887_v34 = vadd.f32 %v1855_v53, %v1775_v26  ;;  %v1077_v0 = vsel %vm4749_vm11, %v1038_v56, 0.0  ;;  %v3563_v53 = vld [vmem:[%s4715_s2] ss:$0 sm:$0xff]  ;;  %vm4752_vm11 = vmmov %vm4750_vm10 }
  0xaf   : > { %v1114_v7 = vmul.f32 %v2699_v57, %v1022_v38  ;;  %v1411_v22 = vrot.slane %v3468_v16, 2  ;;  %v1113_v62 = vmul.f32 %v2699_v57, %v1077_v0  ;;  %v1427_v20 = vrot.slane %v3471_v28, 2 }
  0xb0   : > { %v1267_v63 = vsel %vm4750_vm10, %v1234_v5, %v1250_v37  ;;  %v1647_v44 = vmul.f32 %v2743_v35, %v314_v54  ;;  %v1926_v36 = vadd.f32 %v3563_v53, %v1887_v34  ;;  %v1759_v16 = vmul.f32 %v2752_v39, %v491_v32  ;;  %vm4753_vm10 = vmmov %vm4751_vm9 }
  0xb1   : > { %v1146_v61 = vadd.f32 %v1114_v7, %v969_v25  ;;  %v1358_v18 = vmul.f32 %v2732_v30, %v1267_v63  ;;  %v1145_v51 = vadd.f32 %v1113_v62, %v968_v59  ;;  %v1444_v41 = vsel %vm4751_vm9, %v1411_v22, %v1427_v20 }
  0xb2   : > { %v1871_v24 = vmul.f32 %v2756_v40, %v668_v31  ;;  %v1166_v54 = vmul.f32 %v2702_v58, %v3385_v15  ;;  %2465 = vmatprep.mubr.msk.f32.mxu0 %vm1960_vm12, %v1926_v36  ;;  %v1535_v29 = vmul.f32 %v2760_v42, %v1444_v41  ;;  %v1275_v32 = vsel %vm4752_vm11, %v1242_v3, %v1226_v52 }
  0xb3   : > { %v1452_v31 = vsel %vm4753_vm10, %v1419_v23, %v1403_v27  ;;  %v1596_v26 = vsel %vm1582_vm15, %v3405_v43, 0.0  ;;  %v1213_v25 = vadd.f32 %v1181_v12, %v1145_v51  ;;  %v1307_v38 = vsel %vm1293_vm13, %v1275_v32, 0.0 }
  0xb4   : > { %v1198_v59 = vadd.f32 %v1166_v54, %v3481_v19  ;;  %v1484_v52 = vsel %vm1470_vm14, %v1452_v31, 0.0  ;;  %v1343_v10 = vmul.f32 %v2732_v30, %v1307_v38  ;;  %v1632_v3 = vmul.f32 %v2743_v35, %v1596_v26 }
  0xb5   : > { %v1520_v15 = vmul.f32 %v2760_v42, %v1484_v52  ;;  %vm4754_vm9 = vcmp.lt.s32.totalorder %v2870_v49, 16  ;;  %v1390_v43 = vadd.f32 %v1358_v18, %v1213_v25  ;;  %vm4755_vm11 = vcmp.lt.s32.totalorder %v2872_v33, 16 }
  0xb6   : > { %v1708_v27 = vsel %vm4754_vm9, %v3418_v1, 0.0  ;;  %v1820_v19 = vsel %vm4755_vm11, %v3431_v17, 0.0  ;;  %v1182_v12 = vmul.f32 %v2702_v58, %v3471_v28  ;;  %v1375_v56 = vadd.f32 %v1343_v10, %v1198_v59 }
  0xb7   : > { %v1744_v23 = vmul.f32 %v2752_v39, %v1708_v27  ;;  %v1856_v34 = vmul.f32 %v2756_v40, %v1820_v19  ;;  %vm4756_vm10 = vcmp.lt.s32.totalorder %v2565_v2, 7  ;;  %vm4757_vm9 = vcmp.lt.s32.totalorder %v2565_v2, 6 }
  0xb8   : > { %v1283_v0 = vsel %vm4756_vm10, %v1250_v37, %v1234_v5  ;;  %v1460_v1 = vsel %vm4757_vm9, %v1427_v20, %v1411_v22  ;;  %v1567_v7 = vadd.f32 %v1535_v29, %v1390_v43  ;;  %v1214_v62 = vadd.f32 %v1182_v12, %v1146_v61  ;;  %v3622_v37 = vld [vmem:[%s2594_s28 + $0x40] sm:$0xff]  ;;  %v3625_v22 = vld [vmem:[%s2594_s28 + $0x48] sm:$0xff] }
  0xb9   : > { %v1323_v63 = vsel %vm1293_vm13, %v1283_v0, 0.0  ;;  %v1500_v17 = vsel %vm1470_vm14, %v1460_v1, 0.0  ;;  %v1552_v36 = vadd.f32 %v1520_v15, %v1375_v56  ;;  %v1612_v5 = vsel %vm1582_vm15, %v3502_v60, 0.0 }
  0xba   : > { %v1359_v28 = vmul.f32 %v2732_v30, %v1323_v63  ;;  %v1536_v18 = vmul.f32 %v2760_v42, %v1500_v17  ;;  %v1679_v20 = vadd.f32 %v1647_v44, %v1567_v7  ;;  %v1648_v61 = vmul.f32 %v2743_v35, %v1612_v5 }
  0xbb   : > { %vm4758_vm11 = vcmp.lt.s32.totalorder %v2870_v49, 16  ;;  %vm4759_vm10 = vcmp.lt.s32.totalorder %v2872_v33, 16  ;;  %v1664_v54 = vadd.f32 %v1632_v3, %v1552_v36  ;;  %v274_v26 = vrot.slane %v3622_v37, 3 }
  0xbc   : > { %v1724_v51 = vsel %vm4758_vm11, %v3513_v45, 0.0  ;;  %v1836_v41 = vsel %vm4759_vm10, %v3525_v11, 0.0  ;;  %v1391_v29 = vadd.f32 %v1359_v28, %v1214_v62  ;;  %v1791_v31 = vadd.f32 %v1759_v16, %v1679_v20 }
  0xbd   : > { %v1760_v32 = vmul.f32 %v2752_v39, %v1724_v51  ;;  %v1872_v60 = vmul.f32 %v2756_v40, %v1836_v41  ;;  %v290_v44 = vrot.slane %v3625_v22, 3  ;;  %v451_v25 = vrot.slane %v3622_v37, 4 }
  0xbe   : > { %v1776_v59 = vadd.f32 %v1744_v23, %v1664_v54  ;;  %v1568_v38 = vadd.f32 %v1536_v18, %v1391_v29  ;;  %v467_v45 = vrot.slane %v3625_v22, 4  ;;  %v628_v52 = vrot.slane %v3622_v37, 5 }
  0xbf   : > { %v1903_v11 = vadd.f32 %v1871_v24, %v1791_v31  ;;  %v307_v10 = vsel %vm302_vm0, %v274_v26, %v290_v44  ;;  %v3645_v15 = vsel %vm302_vm0, %v290_v44, %v274_v26  ;;  %v644_v16 = vrot.slane %v3625_v22, 5 }
  0xc0   : > { %v1888_v3 = vadd.f32 %v1856_v34, %v1776_v59  ;;  %v1680_v27 = vadd.f32 %v1648_v61, %v1568_v38  ;;  %v355_v43 = vsel %vm337_vm3, %v3645_v15, 0.0  ;;  %v392_v23 = vmul.f32 %v2600_v9, %v307_v10 }
  0xc1   : > { %v1942_v19 = vadd.f32 %v3563_v53, %v1903_v11  ;;  %v391_v24 = vmul.f32 %v2600_v9, %v355_v43  ;;  %v484_v12 = vsel %vm479_vm1, %v451_v25, %v467_v45  ;;  %v3658_v56 = vsel %vm479_vm1, %v467_v45, %v451_v25 }
  0xc2   : > { %v1927_v34 = vadd.f32 %v3563_v53, %v1888_v3  ;;  %v1792_v0 = vadd.f32 %v1760_v32, %v1680_v27  ;;  %v532_v1 = vsel %vm514_vm5, %v3658_v56, 0.0  ;;  %v569_v7 = vmul.f32 %v2614_v13, %v484_v12 }
  0xc3   : > { %2489 = vmatprep.mubr.msk.f32.mxu1 %vm1960_vm12, %v1942_v19  ;;  %v568_v62 = vmul.f32 %v2614_v13, %v532_v1  ;;  %v661_v63 = vsel %vm656_vm2, %v628_v52, %v644_v16  ;;  %v3671_v17 = vsel %vm656_vm2, %v644_v16, %v628_v52  ;;  %v805_v36 = vrot.slane %v3622_v37, 6  ;;  %v3711_v1 = vld [vmem:[%s2594_s28 + $0xc8] sm:$0xff] }
  0xc4   : > { %2466 = vmatmul.mubr.msk.f32.gmra.mrb[6].mxu0 %vm1960_vm12, %v1927_v34  ;;  %v1904_v28 = vadd.f32 %v1872_v60, %v1792_v0  ;;  %v601_v18 = vadd.f32 %v569_v7, %v392_v23  ;;  %v709_v5 = vsel %vm691_vm6, %v3671_v17, 0.0  ;;  %v746_v20 = vmul.f32 %v2629_v21, %v661_v63  ;;  %v3708_v0 = vld [vmem:[%s2594_s28 + $0xc0] sm:$0xff] }
  0xc5   : > { %v600_v61 = vadd.f32 %v568_v62, %v391_v24  ;;  %v745_v51 = vmul.f32 %v2629_v21, %v709_v5  ;;  %v821_v41 = vrot.slane %v3625_v22, 6  ;;  %v982_v54 = vrot.slane %v3622_v37, 7 }
  0xc6   : > { %v1943_v29 = vadd.f32 %v3563_v53, %v1904_v28  ;;  %v778_v32 = vadd.f32 %v746_v20, %v601_v18  ;;  %v998_v31 = vrot.slane %v3625_v22, 7  ;;  %v1167_v60 = vmul.f32 %v2702_v58, %v3622_v37 }
  0xc7   : > { %v777_v26 = vadd.f32 %v745_v51, %v600_v61  ;;  %v838_v44 = vsel %vm833_vm4, %v805_v36, %v821_v41  ;;  %v854_v25 = vsel %vm833_vm4, %v821_v41, %v805_v36  ;;  %v1227_v59 = vrot.slane %v3622_v37, 1 }
  0xc8   : > { %2490 = vmatmul.mubr.msk.f32.gmra.mrb[6].mxu1 %vm1960_vm12, %v1943_v29  ;;  %v886_v38 = vsel %vm868_vm7, %v854_v25, 0.0  ;;  %v923_v45 = vmul.f32 %v2682_v48, %v838_v44  ;;  %v1015_v52 = vsel %vm1010_vm8, %v982_v54, %v998_v31  ;;  %v1031_v11 = vsel %vm1010_vm8, %v998_v31, %v982_v54 }
  0xc9   : > { %v922_v16 = vmul.f32 %v2682_v48, %v886_v38  ;;  %vm4760_vm9 = vcmp.ge.s32.totalorder %v2687_v50, 0  ;;  %v1100_v27 = vmul.f32 %v2699_v57, %v1015_v52  ;;  %v1243_v43 = vrot.slane %v3625_v22, 1 }
  0xca   : > { %v1063_v3 = vsel %vm4760_vm9, %v1031_v11, 0.0  ;;  %v955_v23 = vadd.f32 %v923_v45, %v778_v32  ;;  %v1404_v24 = vrot.slane %v3622_v37, 2  ;;  %v1420_v34 = vrot.slane %v3625_v22, 2 }
  0xcb   : > { %v1099_v19 = vmul.f32 %v2699_v57, %v1063_v3  ;;  %v954_v7 = vadd.f32 %v922_v16, %v777_v26  ;;  %vm4761_vm11 = vcmp.lt.s32.totalorder %v2565_v2, 7  ;;  %v1633_v36 = vmul.f32 %v2743_v35, %v307_v10 }
  0xcc   : > { %v1260_v62 = vsel %vm4761_vm11, %v1227_v59, %v1243_v43  ;;  %v1745_v28 = vmul.f32 %v2752_v39, %v484_v12  ;;  %v3721_v18 = vadd.f32 %v1100_v27, %v955_v23  ;;  %vm4762_vm10 = vcmp.lt.s32.totalorder %v2565_v2, 6 }
  0xcd   : > { %v1344_v5 = vmul.f32 %v2732_v30, %v1260_v62  ;;  %v1437_v20 = vsel %vm4762_vm10, %v1404_v24, %v1420_v34  ;;  %v1857_v61 = vmul.f32 %v2756_v40, %v661_v63  ;;  %v1131_v51 = vadd.f32 %v1099_v19, %v954_v7 }
  0xce   : > { %v1521_v41 = vmul.f32 %v2760_v42, %v1437_v20  ;;  %v282_v10 = vrot.slane %v3708_v0, 3  ;;  %v298_v12 = vrot.slane %v3711_v1, 3  ;;  %v459_v54 = vrot.slane %v3708_v0, 4 }
  0xcf   : > { %v475_v29 = vrot.slane %v3711_v1, 4  ;;  %v636_v32 = vrot.slane %v3708_v0, 5  ;;  %v652_v31 = vrot.slane %v3711_v1, 5  ;;  %v1199_v26 = vadd.f32 %v1167_v60, %v1131_v51 }
  0xd0   : > { %v315_v44 = vsel %vm302_vm0, %v282_v10, %v298_v12  ;;  %v3742_v63 = vsel %vm302_vm0, %v298_v12, %v282_v10  ;;  %v813_v25 = vrot.slane %v3708_v0, 6  ;;  %v829_v62 = vrot.slane %v3711_v1, 6 }
  0xd1   : > { %v371_v38 = vsel %vm337_vm3, %v3742_v63, 0.0  ;;  %v408_v45 = vmul.f32 %v2600_v9, %v315_v44  ;;  %v492_v52 = vsel %vm479_vm1, %v459_v54, %v475_v29  ;;  %v3753_v60 = vsel %vm479_vm1, %v475_v29, %v459_v54 }
  0xd2   : > { %v1376_v11 = vadd.f32 %v1344_v5, %v1199_v26  ;;  %v407_v16 = vmul.f32 %v2600_v9, %v371_v38  ;;  %v548_v3 = vsel %vm514_vm5, %v3753_v60, 0.0  ;;  %v585_v27 = vmul.f32 %v2614_v13, %v492_v52 }
  0xd3   : > { %v584_v23 = vmul.f32 %v2614_v13, %v548_v3  ;;  %v669_v19 = vsel %vm656_vm2, %v636_v32, %v652_v31  ;;  %v3765_v7 = vsel %vm656_vm2, %v652_v31, %v636_v32  ;;  %v846_v29 = vsel %vm833_vm4, %v813_v25, %v829_v62 }
  0xd4   : > { %v1553_v5 = vadd.f32 %v1521_v41, %v1376_v11  ;;  %v617_v20 = vadd.f32 %v585_v27, %v408_v45  ;;  %v725_v51 = vsel %vm691_vm6, %v3765_v7, 0.0  ;;  %v762_v10 = vmul.f32 %v2629_v21, %v669_v19 }
  0xd5   : > { %v616_v12 = vadd.f32 %v584_v23, %v407_v16  ;;  %v761_v54 = vmul.f32 %v2629_v21, %v725_v51  ;;  %v862_v32 = vsel %vm833_vm4, %v829_v62, %v813_v25  ;;  %v939_v38 = vmul.f32 %v2682_v48, %v846_v29 }
  0xd6   : > { %v1665_v31 = vadd.f32 %v1633_v36, %v1553_v5  ;;  %v794_v26 = vadd.f32 %v762_v10, %v617_v20  ;;  %v902_v41 = vsel %vm868_vm7, %v862_v32, 0.0  ;;  %v990_v16 = vrot.slane %v3708_v0, 7 }
  0xd7   : > { %v793_v45 = vadd.f32 %v761_v54, %v616_v12  ;;  %v938_v11 = vmul.f32 %v2682_v48, %v902_v41  ;;  %v1006_v3 = vrot.slane %v3711_v1, 7  ;;  %v1183_v51 = vmul.f32 %v2702_v58, %v3708_v0 }
  0xd8   : > { %v1777_v27 = vadd.f32 %v1745_v28, %v1665_v31  ;;  %v971_v23 = vadd.f32 %v939_v38, %v794_v26  ;;  %v1235_v36 = vrot.slane %v3708_v0, 1  ;;  %v1251_v20 = vrot.slane %v3711_v1, 1 }
  0xd9   : > { %v970_v25 = vadd.f32 %v938_v11, %v793_v45  ;;  %v1023_v62 = vsel %vm1010_vm8, %v990_v16, %v1006_v3  ;;  %v1039_v5 = vsel %vm1010_vm8, %v1006_v3, %v990_v16  ;;  %v1412_v54 = vrot.slane %v3708_v0, 2 }
  0xda   : > { %v1889_v10 = vadd.f32 %v1857_v61, %v1777_v27  ;;  %v1079_v12 = vsel %vm4760_vm9, %v1039_v5, 0.0  ;;  %v1116_v28 = vmul.f32 %v2699_v57, %v1023_v62  ;;  %v1268_v32 = vsel %vm4761_vm11, %v1235_v36, %v1251_v20  ;;  %vm4763_vm9 = vmmov %vm4761_vm11 }
  0xdb   : > { %v1115_v29 = vmul.f32 %v2699_v57, %v1079_v12  ;;  %v1428_v31 = vrot.slane %v3711_v1, 2  ;;  %v1649_v26 = vmul.f32 %v2743_v35, %v315_v44  ;;  %v1360_v61 = vmul.f32 %v2732_v30, %v1268_v32  ;;  %vm4764_vm11 = vmmov %vm4762_vm10 }
  0xdc   : > { %v1928_v41 = vadd.f32 %v3563_v53, %v1889_v10  ;;  %v1148_v38 = vadd.f32 %v1116_v28, %v971_v23  ;;  %v1761_v45 = vmul.f32 %v2752_v39, %v492_v52  ;;  %v1873_v16 = vmul.f32 %v2756_v40, %v669_v19 }
  0xdd   : > { %v1147_v11 = vadd.f32 %v1115_v29, %v970_v25  ;;  %v1445_v0 = vsel %vm4762_vm10, %v1412_v54, %v1428_v31  ;;  %v1168_v3 = vmul.f32 %v2702_v58, %v3625_v22  ;;  %v1276_v52 = vsel %vm4763_vm9, %v1243_v43, %v1227_v59 }
  0xde   : > { %2468 = vmatprep.mubr.msk.f32.mxu0 %vm1960_vm12, %v1928_v41  ;;  %v1537_v44 = vmul.f32 %v2760_v42, %v1445_v0  ;;  %v1453_v19 = vsel %vm4764_vm11, %v1420_v34, %v1404_v24  ;;  %v1598_v27 = vsel %vm1582_vm15, %v3645_v15, 0.0  ;;  %v1309_v62 = vsel %vm1293_vm13, %v1276_v52, 0.0 }
  0xdf   : > { %v1215_v23 = vadd.f32 %v1183_v51, %v1147_v11  ;;  %v1200_v25 = vadd.f32 %v1168_v3, %v3721_v18  ;;  %v1486_v59 = vsel %vm1470_vm14, %v1453_v19, 0.0  ;;  %v1345_v37 = vmul.f32 %v2732_v30, %v1309_v62 }
  0xe0   : > { %v1522_v22 = vmul.f32 %v2760_v42, %v1486_v59  ;;  %v1634_v43 = vmul.f32 %v2743_v35, %v1598_v27  ;;  %vm4765_vm10 = vcmp.lt.s32.totalorder %v2870_v49, 16  ;;  %vm4766_vm9 = vcmp.lt.s32.totalorder %v2872_v33, 16 }
  0xe1   : > { %v1710_v24 = vsel %vm4765_vm10, %v3658_v56, 0.0  ;;  %v1392_v15 = vadd.f32 %v1360_v61, %v1215_v23  ;;  %v1822_v18 = vsel %vm4766_vm9, %v3671_v17, 0.0  ;;  %v1184_v51 = vmul.f32 %v2702_v58, %v3711_v1 }
  0xe2   : > { %v1746_v34 = vmul.f32 %v2752_v39, %v1710_v24  ;;  %v1377_v5 = vadd.f32 %v1345_v37, %v1200_v25  ;;  %v1858_v10 = vmul.f32 %v2756_v40, %v1822_v18  ;;  %vm4767_vm11 = vcmp.lt.s32.totalorder %v2565_v2, 7 }
  0xe3   : > { %v1284_v12 = vsel %vm4767_vm11, %v1251_v20, %v1235_v36  ;;  %vm4768_vm10 = vcmp.lt.s32.totalorder %v2565_v2, 6  ;;  %v1569_v28 = vadd.f32 %v1537_v44, %v1392_v15  ;;  %v1216_v29 = vadd.f32 %v1184_v51, %v1148_v38  ;;  %v3857_v20 = vld [vmem:[%s2594_s28 + $0x50] sm:$0xff] }
  0xe4   : > { %v1461_v56 = vsel %vm4768_vm10, %v1428_v31, %v1412_v54  ;;  %v1325_v32 = vsel %vm1293_vm13, %v1284_v12, 0.0  ;;  %v1554_v41 = vadd.f32 %v1522_v22, %v1377_v5  ;;  %v1614_v36 = vsel %vm1582_vm15, %v3742_v63, 0.0  ;;  %v3860_v54 = vld [vmem:[%s2594_s28 + $0x58] sm:$0xff] }
  0xe5   : > { %v1502_v17 = vsel %vm1470_vm14, %v1461_v56, 0.0  ;;  %v1361_v1 = vmul.f32 %v2732_v30, %v1325_v32  ;;  %v1681_v31 = vadd.f32 %v1649_v26, %v1569_v28  ;;  %v1650_v38 = vmul.f32 %v2743_v35, %v1614_v36 }
  0xe6   : > { %v1538_v61 = vmul.f32 %v2760_v42, %v1502_v17  ;;  %vm4769_vm9 = vcmp.lt.s32.totalorder %v2870_v49, 16  ;;  %vm4770_vm11 = vcmp.lt.s32.totalorder %v2872_v33, 16  ;;  %v1666_v3 = vadd.f32 %v1634_v43, %v1554_v41 }
  0xe7   : > { %v1726_v11 = vsel %vm4769_vm9, %v3753_v60, 0.0  ;;  %v1838_v0 = vsel %vm4770_vm11, %v3765_v7, 0.0  ;;  %v1393_v44 = vadd.f32 %v1361_v1, %v1216_v29  ;;  %v1793_v19 = vadd.f32 %v1761_v45, %v1681_v31 }
  0xe8   : > { %v1762_v52 = vmul.f32 %v2752_v39, %v1726_v11  ;;  %v1874_v63 = vmul.f32 %v2756_v40, %v1838_v0  ;;  %v275_v27 = vrot.slane %v3857_v20, 3  ;;  %v291_v26 = vrot.slane %v3860_v54, 3 }
  0xe9   : > { %v452_v23 = vrot.slane %v3857_v20, 4  ;;  %v1778_v25 = vadd.f32 %v1746_v34, %v1666_v3  ;;  %v1570_v62 = vadd.f32 %v1538_v61, %v1393_v44  ;;  %v468_v60 = vrot.slane %v3860_v54, 4 }
  0xea   : > { %v629_v59 = vrot.slane %v3857_v20, 5  ;;  %v1905_v7 = vadd.f32 %v1873_v16, %v1793_v19  ;;  %v308_v37 = vsel %vm302_vm0, %v275_v27, %v291_v26  ;;  %v3880_v22 = vsel %vm302_vm0, %v291_v26, %v275_v27 }
  0xeb   : > { %v645_v45 = vrot.slane %v3860_v54, 5  ;;  %v1890_v43 = vadd.f32 %v1858_v10, %v1778_v25  ;;  %v1682_v24 = vadd.f32 %v1650_v38, %v1570_v62  ;;  %v357_v15 = vsel %vm337_vm3, %v3880_v22, 0.0 }
  0xec   : > { %v394_v34 = vmul.f32 %v2600_v9, %v308_v37  ;;  %v1944_v18 = vadd.f32 %v3563_v53, %v1905_v7  ;;  %v393_v16 = vmul.f32 %v2600_v9, %v357_v15  ;;  %v485_v51 = vsel %vm479_vm1, %v452_v23, %v468_v60 }
  0xed   : > { %v3893_v5 = vsel %vm479_vm1, %v468_v60, %v452_v23  ;;  %v1929_v10 = vadd.f32 %v3563_v53, %v1890_v43  ;;  %v1794_v12 = vadd.f32 %v1762_v52, %v1682_v24  ;;  %v571_v28 = vmul.f32 %v2614_v13, %v485_v51 }
  0xee   : > { %v534_v56 = vsel %vm514_vm5, %v3893_v5, 0.0  ;;  %2492 = vmatprep.mubr.msk.f32.mxu1 %vm1960_vm12, %v1944_v18  ;;  %v662_v32 = vsel %vm656_vm2, %v629_v59, %v645_v45  ;;  %v3906_v17 = vsel %vm656_vm2, %v645_v45, %v629_v59  ;;  %v806_v41 = vrot.slane %v3857_v20, 6 }
  0xef   : > { %v570_v29 = vmul.f32 %v2614_v13, %v534_v56  ;;  %2469 = vmatmul.mubr.msk.f32.gmra.mrb[8].mxu0 %vm1960_vm12, %v1929_v10  ;;  %v1906_v1 = vadd.f32 %v1874_v63, %v1794_v12  ;;  %v603_v61 = vadd.f32 %v571_v28, %v394_v34  ;;  %v711_v36 = vsel %vm691_vm6, %v3906_v17, 0.0  ;;  %v3943_v12 = vld [vmem:[%s2594_s28 + $0xd0] sm:$0xff]  ;;  %v3946_v56 = vld [vmem:[%s2594_s28 + $0xd8] sm:$0xff] }
  0xf0   : > { %v748_v31 = vmul.f32 %v2629_v21, %v662_v32  ;;  %v747_v11 = vmul.f32 %v2629_v21, %v711_v36  ;;  %v822_v0 = vrot.slane %v3860_v54, 6  ;;  %v983_v3 = vrot.slane %v3857_v20, 7 }
  0xf1   : > { %v602_v38 = vadd.f32 %v570_v29, %v393_v16  ;;  %v1945_v44 = vadd.f32 %v3563_v53, %v1906_v1  ;;  %v999_v19 = vrot.slane %v3860_v54, 7  ;;  %v1169_v63 = vmul.f32 %v2702_v58, %v3857_v20 }
  0xf2   : > { %v780_v52 = vadd.f32 %v748_v31, %v603_v61  ;;  %v839_v26 = vsel %vm833_vm4, %v806_v41, %v822_v0  ;;  %v855_v23 = vsel %vm833_vm4, %v822_v0, %v806_v41  ;;  %v1228_v25 = vrot.slane %v3857_v20, 1 }
  0xf3   : > { %v779_v27 = vadd.f32 %v747_v11, %v602_v38  ;;  %2493 = vmatmul.mubr.msk.f32.gmra.mrb[8].mxu1 %vm1960_vm12, %v1945_v44  ;;  %v888_v62 = vsel %vm868_vm7, %v855_v23, 0.0  ;;  %v925_v60 = vmul.f32 %v2682_v48, %v839_v26  ;;  %v1016_v59 = vsel %vm1010_vm8, %v983_v3, %v999_v19 }
  0xf4   : > { %v1032_v7 = vsel %vm1010_vm8, %v999_v19, %v983_v3  ;;  %v924_v45 = vmul.f32 %v2682_v48, %v888_v62  ;;  %vm4771_vm10 = vcmp.ge.s32.totalorder %v2687_v50, 0  ;;  %v1102_v24 = vmul.f32 %v2699_v57, %v1016_v59 }
  0xf5   : > { %v1065_v43 = vsel %vm4771_vm10, %v1032_v7, 0.0  ;;  %v1244_v15 = vrot.slane %v3860_v54, 1  ;;  %v957_v34 = vadd.f32 %v925_v60, %v780_v52  ;;  %v1405_v16 = vrot.slane %v3857_v20, 2 }
  0xf6   : > { %v1101_v18 = vmul.f32 %v2699_v57, %v1065_v43  ;;  %v1421_v10 = vrot.slane %v3860_v54, 2  ;;  %v956_v28 = vadd.f32 %v924_v45, %v779_v27  ;;  %vm4772_vm9 = vcmp.lt.s32.totalorder %v2565_v2, 7 }
  0xf7   : > { %v1261_v29 = vsel %vm4772_vm9, %v1228_v25, %v1244_v15  ;;  %v1635_v41 = vmul.f32 %v2743_v35, %v308_v37  ;;  %v1747_v1 = vmul.f32 %v2752_v39, %v485_v51  ;;  %v3956_v61 = vadd.f32 %v1102_v24, %v957_v34 }
  0xf8   : > { %v1346_v36 = vmul.f32 %v2732_v30, %v1261_v29  ;;  %vm4773_vm11 = vcmp.lt.s32.totalorder %v2565_v2, 6  ;;  %v1859_v38 = vmul.f32 %v2756_v40, %v662_v32  ;;  %v1133_v11 = vadd.f32 %v1101_v18, %v956_v28 }
  0xf9   : > { %v1438_v31 = vsel %vm4773_vm11, %v1405_v16, %v1421_v10  ;;  %v283_v37 = vrot.slane %v3943_v12, 3  ;;  %v299_v51 = vrot.slane %v3946_v56, 3  ;;  %v460_v3 = vrot.slane %v3943_v12, 4 }
  0xfa   : > { %v1523_v0 = vmul.f32 %v2760_v42, %v1438_v31  ;;  %v476_v44 = vrot.slane %v3946_v56, 4  ;;  %v637_v52 = vrot.slane %v3943_v12, 5  ;;  %v653_v19 = vrot.slane %v3946_v56, 5 }
  0xfb   : > { %v1201_v27 = vadd.f32 %v1169_v63, %v1133_v11  ;;  %v316_v26 = vsel %vm302_vm0, %v283_v37, %v299_v51  ;;  %v3977_v32 = vsel %vm302_vm0, %v299_v51, %v283_v37  ;;  %v814_v23 = vrot.slane %v3943_v12, 6 }
  0xfc   : > { %v373_v62 = vsel %vm337_vm3, %v3977_v32, 0.0  ;;  %v410_v60 = vmul.f32 %v2600_v9, %v316_v26  ;;  %v493_v59 = vsel %vm479_vm1, %v460_v3, %v476_v44  ;;  %v3988_v63 = vsel %vm479_vm1, %v476_v44, %v460_v3 }
  0xfd   : > { %v1378_v7 = vadd.f32 %v1346_v36, %v1201_v27  ;;  %v409_v45 = vmul.f32 %v2600_v9, %v373_v62  ;;  %v550_v43 = vsel %vm514_vm5, %v3988_v63, 0.0  ;;  %v587_v24 = vmul.f32 %v2614_v13, %v493_v59 }
  0xfe   : > { %v586_v34 = vmul.f32 %v2614_v13, %v550_v43  ;;  %v670_v18 = vsel %vm656_vm2, %v637_v52, %v653_v19  ;;  %v4000_v28 = vsel %vm656_vm2, %v653_v19, %v637_v52  ;;  %v830_v29 = vrot.slane %v3946_v56, 6 }
  0xff   : > { %v1555_v36 = vadd.f32 %v1523_v0, %v1378_v7  ;;  %v619_v31 = vadd.f32 %v587_v24, %v410_v60  ;;  %v727_v11 = vsel %vm691_vm6, %v4000_v28, 0.0  ;;  %v764_v37 = vmul.f32 %v2629_v21, %v670_v18 }
 0x100   : > { %v618_v51 = vadd.f32 %v586_v34, %v409_v45  ;;  %v763_v3 = vmul.f32 %v2629_v21, %v727_v11  ;;  %v847_v44 = vsel %vm833_vm4, %v814_v23, %v830_v29  ;;  %v863_v52 = vsel %vm833_vm4, %v830_v29, %v814_v23 }
 0x101   : > { %v1667_v19 = vadd.f32 %v1635_v41, %v1555_v36  ;;  %v796_v27 = vadd.f32 %v764_v37, %v619_v31  ;;  %v904_v0 = vsel %vm868_vm7, %v863_v52, 0.0  ;;  %v941_v62 = vmul.f32 %v2682_v48, %v847_v44 }
 0x102   : > { %v795_v60 = vadd.f32 %v763_v3, %v618_v51  ;;  %v940_v7 = vmul.f32 %v2682_v48, %v904_v0  ;;  %v991_v45 = vrot.slane %v3943_v12, 7  ;;  %v1007_v43 = vrot.slane %v3946_v56, 7 }
 0x103   : > { %v1779_v24 = vadd.f32 %v1747_v1, %v1667_v19  ;;  %v973_v34 = vadd.f32 %v941_v62, %v796_v27  ;;  %v1185_v11 = vmul.f32 %v2702_v58, %v3943_v12  ;;  %v1236_v41 = vrot.slane %v3943_v12, 1 }
 0x104   : > { %v972_v23 = vadd.f32 %v940_v7, %v795_v60  ;;  %v1024_v29 = vsel %vm1010_vm8, %v991_v45, %v1007_v43  ;;  %v1040_v36 = vsel %vm1010_vm8, %v1007_v43, %v991_v45  ;;  %v1252_v31 = vrot.slane %v3946_v56, 1 }
 0x105   : > { %v1891_v37 = vadd.f32 %v1859_v38, %v1779_v24  ;;  %v1081_v51 = vsel %vm4771_vm10, %v1040_v36, 0.0  ;;  %v1118_v1 = vmul.f32 %v2699_v57, %v1024_v29  ;;  %v1413_v3 = vrot.slane %v3943_v12, 2  ;;  %vm4774_vm10 = vmmov %vm4772_vm9 }
 0x106   : > { %v1117_v44 = vmul.f32 %v2699_v57, %v1081_v51  ;;  %v1269_v52 = vsel %vm4772_vm9, %v1236_v41, %v1252_v31  ;;  %v1429_v19 = vrot.slane %v3946_v56, 2  ;;  %v1651_v27 = vmul.f32 %v2743_v35, %v316_v26  ;;  %vm4775_vm9 = vmmov %vm4773_vm11 }
 0x107   : > { %v1930_v0 = vadd.f32 %v3563_v53, %v1891_v37  ;;  %v1150_v62 = vadd.f32 %v1118_v1, %v973_v34  ;;  %v1362_v38 = vmul.f32 %v2732_v30, %v1269_v52  ;;  %v1763_v60 = vmul.f32 %v2752_v39, %v493_v59 }
 0x108   : > { %v1149_v7 = vadd.f32 %v1117_v44, %v972_v23  ;;  %v1446_v12 = vsel %vm4773_vm11, %v1413_v3, %v1429_v19  ;;  %v1875_v45 = vmul.f32 %v2756_v40, %v670_v18  ;;  %v1170_v43 = vmul.f32 %v2702_v58, %v3860_v54 }
 0x109   : > { %2471 = vmatprep.mubr.msk.f32.mxu0 %vm1960_vm12, %v1930_v0  ;;  %v1539_v26 = vmul.f32 %v2760_v42, %v1446_v12  ;;  %v1277_v59 = vsel %vm4774_vm10, %v1244_v15, %v1228_v25  ;;  %v1454_v18 = vsel %vm4775_vm9, %v1421_v10, %v1405_v16  ;;  %v1600_v24 = vsel %vm1582_vm15, %v3880_v22, 0.0 }
 0x10a   : > { %v1217_v34 = vadd.f32 %v1185_v11, %v1149_v7  ;;  %v1202_v23 = vadd.f32 %v1170_v43, %v3956_v61  ;;  %v1311_v29 = vsel %vm1293_vm13, %v1277_v59, 0.0  ;;  %v1488_v25 = vsel %vm1470_vm14, %v1454_v18, 0.0 }
 0x10b   : > { %v1347_v20 = vmul.f32 %v2732_v30, %v1311_v29  ;;  %v1524_v54 = vmul.f32 %v2760_v42, %v1488_v25  ;;  %v1636_v15 = vmul.f32 %v2743_v35, %v1600_v24  ;;  %vm4776_vm11 = vcmp.lt.s32.totalorder %v2870_v49, 16 }
 0x10c   : > { %v1712_v16 = vsel %vm4776_vm11, %v3893_v5, 0.0  ;;  %v1394_v22 = vadd.f32 %v1362_v38, %v1217_v34  ;;  %vm4777_vm10 = vcmp.lt.s32.totalorder %v2872_v33, 16  ;;  %v1186_v11 = vmul.f32 %v2702_v58, %v3946_v56 }
 0x10d   : > { %v1748_v10 = vmul.f32 %v2752_v39, %v1712_v16  ;;  %v1824_v61 = vsel %vm4777_vm10, %v3906_v17, 0.0  ;;  %v1379_v36 = vadd.f32 %v1347_v20, %v1202_v23  ;;  %vm4778_vm9 = vcmp.lt.s32.totalorder %v2565_v2, 7 }
 0x10e   : > { %v1860_v37 = vmul.f32 %v2756_v40, %v1824_v61  ;;  %v1285_v51 = vsel %vm4778_vm9, %v1252_v31, %v1236_v41  ;;  %vm4779_vm11 = vcmp.lt.s32.totalorder %v2565_v2, 6  ;;  %v1571_v1 = vadd.f32 %v1539_v26, %v1394_v22  ;;  %v4092_v31 = vld [vmem:[%s2594_s28 + $0x60] sm:$0xff] }
 0x10f   : > { %v1462_v5 = vsel %vm4779_vm11, %v1429_v19, %v1413_v3  ;;  %v1218_v44 = vadd.f32 %v1186_v11, %v1150_v62  ;;  %v1327_v52 = vsel %vm1293_vm13, %v1285_v51, 0.0  ;;  %v1556_v0 = vadd.f32 %v1524_v54, %v1379_v36  ;;  %v4095_v3 = vld [vmem:[%s2594_s28 + $0x68] sm:$0xff] }
 0x110   : > { %v1504_v17 = vsel %vm1470_vm14, %v1462_v5, 0.0  ;;  %v1363_v56 = vmul.f32 %v2732_v30, %v1327_v52  ;;  %v1616_v41 = vsel %vm1582_vm15, %v3977_v32, 0.0  ;;  %v1683_v19 = vadd.f32 %v1651_v27, %v1571_v1 }
 0x111   : > { %v1540_v38 = vmul.f32 %v2760_v42, %v1504_v17  ;;  %v1652_v62 = vmul.f32 %v2743_v35, %v1616_v41  ;;  %vm4780_vm10 = vcmp.lt.s32.totalorder %v2870_v49, 16  ;;  %vm4781_vm9 = vcmp.lt.s32.totalorder %v2872_v33, 16 }
 0x112   : > { %v1728_v7 = vsel %vm4780_vm10, %v3988_v63, 0.0  ;;  %v1840_v12 = vsel %vm4781_vm9, %v4000_v28, 0.0  ;;  %v1668_v43 = vadd.f32 %v1636_v15, %v1556_v0  ;;  %v1395_v26 = vadd.f32 %v1363_v56, %v1218_v44 }
 0x113   : > { %v1764_v59 = vmul.f32 %v2752_v39, %v1728_v7  ;;  %v1876_v32 = vmul.f32 %v2756_v40, %v1840_v12  ;;  %v1795_v18 = vadd.f32 %v1763_v60, %v1683_v19  ;;  %v276_v24 = vrot.slane %v4092_v31, 3 }
 0x114   : > { %v292_v27 = vrot.slane %v4095_v3, 3  ;;  %v453_v34 = vrot.slane %v4092_v31, 4  ;;  %v1780_v23 = vadd.f32 %v1748_v10, %v1668_v43  ;;  %v1572_v29 = vadd.f32 %v1540_v38, %v1395_v26 }
 0x115   : > { %v469_v63 = vrot.slane %v4095_v3, 4  ;;  %v630_v25 = vrot.slane %v4092_v31, 5  ;;  %v1907_v28 = vadd.f32 %v1875_v45, %v1795_v18  ;;  %v646_v60 = vrot.slane %v4095_v3, 5 }
 0x116   : > { %v309_v20 = vsel %vm302_vm0, %v276_v24, %v292_v27  ;;  %v4115_v54 = vsel %vm302_vm0, %v292_v27, %v276_v24  ;;  %v1892_v15 = vadd.f32 %v1860_v37, %v1780_v23  ;;  %v1684_v16 = vadd.f32 %v1652_v62, %v1572_v29 }
 0x117   : > { %v359_v22 = vsel %vm337_vm3, %v4115_v54, 0.0  ;;  %v396_v10 = vmul.f32 %v2600_v9, %v309_v20  ;;  %v1946_v61 = vadd.f32 %v3563_v53, %v1907_v28  ;;  %v486_v11 = vsel %vm479_vm1, %v453_v34, %v469_v63 }
 0x118   : > { %v395_v45 = vmul.f32 %v2600_v9, %v359_v22  ;;  %v4128_v36 = vsel %vm479_vm1, %v469_v63, %v453_v34  ;;  %v1931_v37 = vadd.f32 %v3563_v53, %v1892_v15  ;;  %v1796_v51 = vadd.f32 %v1764_v59, %v1684_v16 }
 0x119   : > { %v536_v5 = vsel %vm514_vm5, %v4128_v36, 0.0  ;;  %v573_v1 = vmul.f32 %v2614_v13, %v486_v11  ;;  %2495 = vmatprep.mubr.msk.f32.mxu1 %vm1960_vm12, %v1946_v61  ;;  %v663_v52 = vsel %vm656_vm2, %v630_v25, %v646_v60  ;;  %v4141_v17 = vsel %vm656_vm2, %v646_v60, %v630_v25 }
 0x11a   : > { %v572_v44 = vmul.f32 %v2614_v13, %v536_v5  ;;  %v807_v0 = vrot.slane %v4092_v31, 6  ;;  %2472 = vmatmul.mubr.msk.f32.gmra.mrb[10].mxu0 %vm1960_vm12, %v1931_v37  ;;  %v1908_v56 = vadd.f32 %v1876_v32, %v1796_v51  ;;  %v713_v41 = vsel %vm691_vm6, %v4141_v17, 0.0  ;;  %v4178_v37 = vld [vmem:[%s2594_s28 + $0xe0] sm:$0xff]  ;;  %v4181_v51 = vld [vmem:[%s2594_s28 + $0xe8] sm:$0xff] }
 0x11b   : > { %v605_v38 = vadd.f32 %v573_v1, %v396_v10  ;;  %v750_v19 = vmul.f32 %v2629_v21, %v663_v52  ;;  %v749_v7 = vmul.f32 %v2629_v21, %v713_v41  ;;  %v823_v12 = vrot.slane %v4095_v3, 6 }
 0x11c   : > { %v604_v62 = vadd.f32 %v572_v44, %v395_v45  ;;  %v984_v43 = vrot.slane %v4092_v31, 7  ;;  %v1947_v26 = vadd.f32 %v3563_v53, %v1908_v56  ;;  %v1000_v18 = vrot.slane %v4095_v3, 7  ;;  %v4191_v56 = vpop.f32.mrb[0].mxu0 }
 0x11d   : > { %v782_v59 = vadd.f32 %v750_v19, %v605_v38  ;;  %v1171_v32 = vmul.f32 %v2702_v58, %v4092_v31  ;;  %v840_v27 = vsel %vm833_vm4, %v807_v0, %v823_v12  ;;  %v856_v34 = vsel %vm833_vm4, %v823_v12, %v807_v0 }
 0x11e   : > { %v781_v24 = vadd.f32 %v749_v7, %v604_v62  ;;  %v1229_v23 = vrot.slane %v4092_v31, 1  ;;  %2496 = vmatmul.mubr.msk.f32.gmra.mrb[10].mxu1 %vm1960_vm12, %v1947_v26  ;;  %v890_v53 = vsel %vm868_vm7, %v856_v34, 0.0  ;;  %v927_v29 = vmul.f32 %v2682_v48, %v840_v27  ;;  %v4203_v7 = vpop.f32.mrb[1].mxu0  ;;  %v4208_v26 = vpop.f32.mrb[0].mxu1 }
 0x11f   : > { %v1017_v63 = vsel %vm1010_vm8, %v984_v43, %v1000_v18  ;;  %v1033_v25 = vsel %vm1010_vm8, %v1000_v18, %v984_v43  ;;  %v926_v28 = vmul.f32 %v2682_v48, %v890_v53  ;;  %vm4782_vm11 = vcmp.ge.s32.totalorder %v2687_v50, 0 }
 0x120   : > { %v1067_v60 = vsel %vm4782_vm11, %v1033_v25, 0.0  ;;  %v1104_v15 = vmul.f32 %v2699_v57, %v1017_v63  ;;  %v4726_v16 = vrot.slane %v4095_v3, 1  ;;  %v959_v22 = vadd.f32 %v927_v29, %v782_v59 }
 0x121   : > { %v1103_v10 = vmul.f32 %v2699_v57, %v1067_v60  ;;  %v4725_v61 = vrot.slane %v4092_v31, 2  ;;  %v4724_v45 = vrot.slane %v4095_v3, 2  ;;  %v958_v5 = vadd.f32 %v926_v28, %v781_v24 }
 0x122   : > { %vm4783_vm10 = vcmp.lt.s32.totalorder %v2565_v2, 7  ;;  %v1637_v44 = vmul.f32 %v2743_v35, %v309_v20  ;;  %v1749_v0 = vmul.f32 %v2752_v39, %v486_v11  ;;  %v4193_v38 = vadd.f32 %v1104_v15, %v959_v22 }
 0x123   : > { %v1262_v1 = vsel %vm4783_vm10, %v1229_v23, %v4726_v16  ;;  %vm4784_vm9 = vcmp.lt.s32.totalorder %v2565_v2, 6  ;;  %v1861_v62 = vmul.f32 %v2756_v40, %v663_v52  ;;  %v1135_v20 = vadd.f32 %v1103_v10, %v958_v5  ;;  %v4214_v52 = vpop.f32.mrb[1].mxu1 }
 0x124   : > { %v1348_v41 = vmul.f32 %v2732_v30, %v1262_v1  ;;  %v1439_v19 = vsel %vm4784_vm9, %v4725_v61, %v4724_v45  ;;  %v284_v12 = vrot.slane %v4178_v37, 3  ;;  %v300_v43 = vrot.slane %v4181_v51, 3 }
 0x125   : > { %v1525_v11 = vmul.f32 %v2760_v42, %v1439_v19  ;;  %v461_v59 = vrot.slane %v4178_v37, 4  ;;  %v477_v18 = vrot.slane %v4181_v51, 4  ;;  %v638_v24 = vrot.slane %v4178_v37, 5 }
 0x126   : > { %v654_v27 = vrot.slane %v4181_v51, 5  ;;  %v1203_v34 = vadd.f32 %v1171_v32, %v1135_v20  ;;  %v317_v53 = vsel %vm302_vm0, %v284_v12, %v300_v43  ;;  %v4220_v29 = vsel %vm302_vm0, %v300_v43, %v284_v12 }
 0x127   : > { %v815_v63 = vrot.slane %v4178_v37, 6  ;;  %v375_v25 = vsel %vm337_vm3, %v4220_v29, 0.0  ;;  %v412_v28 = vmul.f32 %v2600_v9, %v317_v53  ;;  %v494_v60 = vsel %vm479_vm1, %v461_v59, %v477_v18 }
 0x128   : > { %v4231_v32 = vsel %vm479_vm1, %v477_v18, %v461_v59  ;;  %v1380_v15 = vadd.f32 %v1348_v41, %v1203_v34  ;;  %v411_v22 = vmul.f32 %v2600_v9, %v375_v25  ;;  %v589_v5 = vmul.f32 %v2614_v13, %v494_v60 }
 0x129   : > { %v552_v10 = vsel %vm514_vm5, %v4231_v32, 0.0  ;;  %v671_v19 = vsel %vm656_vm2, %v638_v24, %v654_v27  ;;  %v4243_v20 = vsel %vm656_vm2, %v654_v27, %v638_v24  ;;  %v831_v12 = vrot.slane %v4181_v51, 6 }
 0x12a   : > { %v588_v1 = vmul.f32 %v2614_v13, %v552_v10  ;;  %v1557_v41 = vadd.f32 %v1525_v11, %v1380_v15  ;;  %v621_v43 = vadd.f32 %v589_v5, %v412_v28  ;;  %v729_v59 = vsel %vm691_vm6, %v4243_v20, 0.0 }
 0x12b   : > { %v766_v18 = vmul.f32 %v2629_v21, %v671_v19  ;;  %v765_v25 = vmul.f32 %v2629_v21, %v729_v59  ;;  %v848_v10 = vsel %vm833_vm4, %v815_v63, %v831_v12  ;;  %v864_v24 = vsel %vm833_vm4, %v831_v12, %v815_v63 }
 0x12c   : > { %v620_v34 = vadd.f32 %v588_v1, %v411_v22  ;;  %v1669_v27 = vadd.f32 %v1637_v44, %v1557_v41  ;;  %v906_v11 = vsel %vm868_vm7, %v864_v24, 0.0  ;;  %v943_v28 = vmul.f32 %v2682_v48, %v848_v10 }
 0x12d   : > { %v798_v45 = vadd.f32 %v766_v18, %v621_v43  ;;  %v942_v5 = vmul.f32 %v2682_v48, %v906_v11  ;;  %v992_v22 = vrot.slane %v4178_v37, 7  ;;  %v1008_v1 = vrot.slane %v4181_v51, 7 }
 0x12e   : > { %v797_v15 = vadd.f32 %v765_v25, %v620_v34  ;;  %v1781_v59 = vadd.f32 %v1749_v0, %v1669_v27  ;;  %v1187_v16 = vmul.f32 %v2702_v58, %v4178_v37  ;;  %v1237_v44 = vrot.slane %v4178_v37, 1 }
 0x12f   : > { %v975_v61 = vadd.f32 %v943_v28, %v798_v45  ;;  %v1025_v12 = vsel %vm1010_vm8, %v992_v22, %v1008_v1  ;;  %v1041_v41 = vsel %vm1010_vm8, %v1008_v1, %v992_v22  ;;  %v1253_v43 = vrot.slane %v4181_v51, 1 }
 0x130   : > { %v974_v63 = vadd.f32 %v942_v5, %v797_v15  ;;  %v1893_v18 = vadd.f32 %v1861_v62, %v1781_v59  ;;  %v1083_v34 = vsel %vm4782_vm11, %v1041_v41, 0.0  ;;  %v1120_v45 = vmul.f32 %v2699_v57, %v1025_v12  ;;  %v4281_v62 = vld [vmem:[%s4715_s2] ss:$0 sm:$0xff]  ;;  %vm4786_vm11 = vmmov %vm4783_vm10 }
 0x131   : > { %v1414_v0 = vrot.slane %v4178_v37, 2  ;;  %v1119_v25 = vmul.f32 %v2699_v57, %v1083_v34  ;;  %v1270_v10 = vsel %vm4783_vm10, %v1237_v44, %v1253_v43  ;;  %v1430_v24 = vrot.slane %v4181_v51, 2  ;;  %vm4789_vm10 = vmmov %vm4784_vm9 }
 0x132   : > { %v1653_v27 = vmul.f32 %v2743_v35, %v317_v53  ;;  %v1932_v11 = vadd.f32 %v4281_v62, %v1893_v18  ;;  %v1152_v28 = vadd.f32 %v1120_v45, %v975_v61  ;;  %v1364_v15 = vmul.f32 %v2732_v30, %v1270_v10 }
 0x133   : > { %v1765_v37 = vmul.f32 %v2752_v39, %v494_v60  ;;  %v1151_v5 = vadd.f32 %v1119_v25, %v974_v63  ;;  %v1447_v22 = vsel %vm4784_vm9, %v1414_v0, %v1430_v24  ;;  %v1877_v1 = vmul.f32 %v2756_v40, %v671_v19 }
 0x134   : > { %v1172_v53 = vmul.f32 %v2702_v58, %v4095_v3  ;;  %2474 = vmatprep.mubr.msk.f32.mxu0 %vm1960_vm12, %v1932_v11  ;;  %v1541_v59 = vmul.f32 %v2760_v42, %v1447_v22  ;;  %v4785_v61 = vrot.slane %v4095_v3, 1  ;;  %v4787_v63 = vrot.slane %v4092_v31, 2 }
 0x135   : > { %v4788_v12 = vrot.slane %v4095_v3, 2  ;;  %v1602_v41 = vsel %vm1582_vm15, %v4115_v54, 0.0  ;;  %v1219_v18 = vadd.f32 %v1187_v16, %v1151_v5  ;;  %vm4790_vm9 = vcmp.lt.s32.totalorder %v2870_v49, 16 }
 0x136   : > { %v1278_v60 = vsel %vm4786_vm11, %v4785_v61, %v1229_v23  ;;  %v1204_v34 = vadd.f32 %v1172_v53, %v4193_v38  ;;  %v1638_v25 = vmul.f32 %v2743_v35, %v1602_v41  ;;  %v1714_v10 = vsel %vm4790_vm9, %v4128_v36, 0.0 }
 0x137   : > { %v1455_v19 = vsel %vm4789_vm10, %v4788_v12, %v4787_v63  ;;  %v1313_v45 = vsel %vm1293_vm13, %v1278_v60, 0.0  ;;  %v1396_v54 = vadd.f32 %v1364_v15, %v1219_v18  ;;  %v1750_v16 = vmul.f32 %v2752_v39, %v1714_v10 }
 0x138   : > { %v1490_v23 = vsel %vm1470_vm14, %v1455_v19, 0.0  ;;  %v1349_v31 = vmul.f32 %v2732_v30, %v1313_v45  ;;  %vm4791_vm11 = vcmp.lt.s32.totalorder %v2872_v33, 16  ;;  %v1188_v11 = vmul.f32 %v2702_v58, %v4181_v51 }
 0x139   : > { %v1526_v3 = vmul.f32 %v2760_v42, %v1490_v23  ;;  %v1826_v38 = vsel %vm4791_vm11, %v4141_v17, 0.0  ;;  %vm4792_vm10 = vcmp.lt.s32.totalorder %v2565_v2, 7  ;;  %vm4793_vm9 = vcmp.lt.s32.totalorder %v2565_v2, 6 }
 0x13a   : > { %v1381_v5 = vadd.f32 %v1349_v31, %v1204_v34  ;;  %v1862_v22 = vmul.f32 %v2756_v40, %v1826_v38  ;;  %v1286_v53 = vsel %vm4792_vm10, %v1253_v43, %v1237_v44  ;;  %v1463_v36 = vsel %vm4793_vm9, %v1430_v24, %v1414_v0  ;;  %v4340_v43 = vld [vmem:[%s2594_s28 + $0x70] sm:$0xff]  ;;  %v4343_v0 = vld [vmem:[%s2594_s28 + $0x78] sm:$0xff] }
 0x13b   : > { %v1573_v15 = vadd.f32 %v1541_v59, %v1396_v54  ;;  %v1220_v61 = vadd.f32 %v1188_v11, %v1152_v28  ;;  %v1329_v60 = vsel %vm1293_vm13, %v1286_v53, 0.0  ;;  %v1506_v17 = vsel %vm1470_vm14, %v1463_v36, 0.0 }
 0x13c   : > { %v1558_v63 = vadd.f32 %v1526_v3, %v1381_v5  ;;  %v1365_v51 = vmul.f32 %v2732_v30, %v1329_v60  ;;  %v1542_v12 = vmul.f32 %v2760_v42, %v1506_v17  ;;  %v1618_v44 = vsel %vm1582_vm15, %v4220_v29, 0.0 }
 0x13d   : > { %v1685_v24 = vadd.f32 %v1653_v27, %v1573_v15  ;;  %v1654_v28 = vmul.f32 %v2743_v35, %v1618_v44  ;;  %vm4794_vm11 = vcmp.lt.s32.totalorder %v2870_v49, 16  ;;  %vm4795_vm10 = vcmp.lt.s32.totalorder %v2872_v33, 16 }
 0x13e   : > { %v1730_v59 = vsel %vm4794_vm11, %v4231_v32, 0.0  ;;  %v1842_v19 = vsel %vm4795_vm10, %v4243_v20, 0.0  ;;  %v1670_v41 = vadd.f32 %v1638_v25, %v1558_v63  ;;  %v1397_v18 = vadd.f32 %v1365_v51, %v1220_v61 }
 0x13f   : > { %v1766_v34 = vmul.f32 %v2752_v39, %v1730_v59  ;;  %v1878_v29 = vmul.f32 %v2756_v40, %v1842_v19  ;;  %v1797_v45 = vadd.f32 %v1765_v37, %v1685_v24  ;;  %v277_v23 = vrot.slane %v4340_v43, 3 }
 0x140   : > { %v293_v27 = vrot.slane %v4343_v0, 3  ;;  %v454_v31 = vrot.slane %v4340_v43, 4  ;;  %v1782_v3 = vadd.f32 %v1750_v16, %v1670_v41  ;;  %v1574_v10 = vadd.f32 %v1542_v12, %v1397_v18 }
 0x141   : > { %v470_v32 = vrot.slane %v4343_v0, 4  ;;  %v631_v54 = vrot.slane %v4340_v43, 5  ;;  %v1909_v20 = vadd.f32 %v1877_v1, %v1797_v45  ;;  %v647_v37 = vrot.slane %v4343_v0, 5 }
 0x142   : > { %v310_v25 = vsel %vm302_vm0, %v277_v23, %v293_v27  ;;  %v4363_v38 = vsel %vm302_vm0, %v293_v27, %v277_v23  ;;  %v1894_v11 = vadd.f32 %v1862_v22, %v1782_v3  ;;  %v1686_v5 = vadd.f32 %v1654_v28, %v1574_v10 }
 0x143   : > { %v361_v16 = vsel %vm337_vm3, %v4363_v38, 0.0  ;;  %v398_v53 = vmul.f32 %v2600_v9, %v310_v25  ;;  %v1948_v36 = vadd.f32 %v4281_v62, %v1909_v20  ;;  %v487_v15 = vsel %vm479_vm1, %v454_v31, %v470_v32 }
 0x144   : > { %v397_v1 = vmul.f32 %v2600_v9, %v361_v16  ;;  %v4376_v61 = vsel %vm479_vm1, %v470_v32, %v454_v31  ;;  %v1933_v22 = vadd.f32 %v4281_v62, %v1894_v11  ;;  %v1798_v60 = vadd.f32 %v1766_v34, %v1686_v5 }
 0x145   : > { %v538_v17 = vsel %vm514_vm5, %v4376_v61, 0.0  ;;  %v575_v63 = vmul.f32 %v2614_v13, %v487_v15  ;;  %2498 = vmatprep.mubr.msk.f32.mxu1 %vm1960_vm12, %v1948_v36  ;;  %v664_v12 = vsel %vm656_vm2, %v631_v54, %v647_v37  ;;  %v4389_v44 = vsel %vm656_vm2, %v647_v37, %v631_v54 }
 0x146   : > { %v574_v51 = vmul.f32 %v2614_v13, %v538_v17  ;;  %v808_v24 = vrot.slane %v4340_v43, 6  ;;  %2475 = vmatmul.mubr.msk.f32.gmra.mrb[12].mxu0 %vm1960_vm12, %v1933_v22  ;;  %v1910_v28 = vadd.f32 %v1878_v29, %v1798_v60  ;;  %v715_v19 = vsel %vm691_vm6, %v4389_v44, 0.0 }
 0x147   : > { %v607_v59 = vadd.f32 %v575_v63, %v398_v53  ;;  %v752_v41 = vmul.f32 %v2629_v21, %v664_v12  ;;  %v751_v34 = vmul.f32 %v2629_v21, %v715_v19  ;;  %v824_v45 = vrot.slane %v4343_v0, 6 }
 0x148   : > { %v606_v18 = vadd.f32 %v574_v51, %v397_v1  ;;  %v985_v23 = vrot.slane %v4340_v43, 7  ;;  %v1949_v27 = vadd.f32 %v4281_v62, %v1910_v28  ;;  %v1001_v3 = vrot.slane %v4343_v0, 7  ;;  %v4426_v51 = vld [vmem:[%s2594_s28 + $0xf0] sm:$0xff]  ;;  %v4431_v28 = vpop.f32.mrb[2].mxu0 }
 0x149   : > { %v784_v31 = vadd.f32 %v752_v41, %v607_v59  ;;  %v841_v10 = vsel %vm833_vm4, %v808_v24, %v824_v45  ;;  %v857_v32 = vsel %vm833_vm4, %v824_v45, %v808_v24  ;;  %v4730_v54 = vrot.slane %v4340_v43, 1  ;;  %v4429_v24 = vld [vmem:[%s2594_s28 + $0xf8] sm:$0xff] }
 0x14a   : > { %v783_v29 = vadd.f32 %v751_v34, %v606_v18  ;;  %2499 = vmatmul.mubr.msk.f32.gmra.mrb[12].mxu1 %vm1960_vm12, %v1949_v27  ;;  %v892_v20 = vsel %vm868_vm7, %v857_v32, 0.0  ;;  %v929_v37 = vmul.f32 %v2682_v48, %v841_v10  ;;  %v1018_v11 = vsel %vm1010_vm8, %v985_v23, %v1001_v3  ;;  %v4440_v34 = vpop.f32.mrb[3].mxu0 }
 0x14b   : > { %v1034_v5 = vsel %vm1010_vm8, %v1001_v3, %v985_v23  ;;  %v928_v16 = vmul.f32 %v2682_v48, %v892_v20  ;;  %vm4796_vm9 = vcmp.ge.s32.totalorder %v2687_v50, 0  ;;  %v1173_v36 = vmul.f32 %v2702_v58, %v4340_v43 }
 0x14c   : > { %v1069_v53 = vsel %vm4796_vm9, %v1034_v5, 0.0  ;;  %v4729_v1 = vrot.slane %v4343_v0, 1  ;;  %v1106_v60 = vmul.f32 %v2699_v57, %v1018_v11  ;;  %v4728_v17 = vrot.slane %v4340_v43, 2  ;;  %v4458_v5 = vpop.f32.mrb[2].mxu1 }
 0x14d   : > { %v1105_v22 = vmul.f32 %v2699_v57, %v1069_v53  ;;  %v4727_v63 = vrot.slane %v4343_v0, 2  ;;  %v960_v59 = vadd.f32 %v928_v16, %v783_v29  ;;  %v961_v19 = vadd.f32 %v929_v37, %v784_v31 }
 0x14e   : > { %vm4797_vm11 = vcmp.lt.s32.totalorder %v2565_v2, 7  ;;  %v1639_v18 = vmul.f32 %v2743_v35, %v310_v25  ;;  %vm4798_vm10 = vcmp.lt.s32.totalorder %v2565_v2, 6  ;;  %v1751_v27 = vmul.f32 %v2752_v39, %v487_v15  ;;  %v4581_v2 = vld [vmem:[%s4717_s4] ss:$0 sm:$0xff] }
 0x14f   : > { %v1263_v41 = vsel %vm4797_vm11, %v4730_v54, %v4729_v1  ;;  %v1440_v23 = vsel %vm4798_vm10, %v4728_v17, %v4727_v63  ;;  %v1863_v31 = vmul.f32 %v2756_v40, %v664_v12  ;;  %v1137_v3 = vadd.f32 %v1105_v22, %v960_v59  ;;  %v4467_v22 = vpop.f32.mrb[3].mxu1 }
 0x150   : > { %v1350_v45 = vmul.f32 %v2732_v30, %v1263_v41  ;;  %v1527_v29 = vmul.f32 %v2760_v42, %v1440_v23  ;;  %v285_v25 = vrot.slane %v4426_v51, 3  ;;  %v301_v10 = vrot.slane %v4429_v24, 3 }
 0x151   : > { %v462_v32 = vrot.slane %v4426_v51, 4  ;;  %v478_v20 = vrot.slane %v4429_v24, 4  ;;  %v639_v37 = vrot.slane %v4426_v51, 5  ;;  %v655_v11 = vrot.slane %v4429_v24, 5 }
 0x152   : > { %v1205_v15 = vadd.f32 %v1173_v36, %v1137_v3  ;;  %v318_v12 = vsel %vm302_vm0, %v285_v25, %v301_v10  ;;  %v4464_v16 = vsel %vm302_vm0, %v301_v10, %v285_v25  ;;  %v816_v53 = vrot.slane %v4426_v51, 6  ;;  %vm4799_vm0 = vmmov %vm4796_vm9 }
 0x153   : > { %v377_v59 = vsel %vm337_vm3, %v4464_v16, 0.0  ;;  %v414_v41 = vmul.f32 %v2600_v9, %v318_v12  ;;  %v495_v36 = vsel %vm479_vm1, %v462_v32, %v478_v20  ;;  %v4477_v23 = vsel %vm479_vm1, %v478_v20, %v462_v32  ;;  %vm4800_vm1 = vmmov %vm4797_vm11 }
 0x154   : > { %v1382_v3 = vadd.f32 %v1350_v45, %v1205_v15  ;;  %v413_v25 = vmul.f32 %v2600_v9, %v377_v59  ;;  %v554_v10 = vsel %vm514_vm5, %v4477_v23, 0.0  ;;  %v591_v63 = vmul.f32 %v2614_v13, %v495_v36  ;;  %vm4804_vm3 = vmmov %vm4800_vm1 }
 0x155   : > { %v590_v4 = vmul.f32 %v2614_v13, %v554_v10  ;;  %v672_v17 = vsel %vm656_vm2, %v639_v37, %v655_v11  ;;  %v4489_v1 = vsel %vm656_vm2, %v655_v11, %v639_v37  ;;  %v832_v32 = vrot.slane %v4429_v24, 6  ;;  %vm4801_vm2 = vmmov %vm4798_vm10 }
 0x156   : > { %v1559_v45 = vadd.f32 %v1527_v29, %v1382_v3  ;;  %v623_v20 = vadd.f32 %v591_v63, %v414_v41  ;;  %v731_v6 = vsel %vm691_vm6, %v4489_v1, 0.0  ;;  %v768_v9 = vmul.f32 %v2629_v21, %v672_v17 }
 0x157   : > { %v622_v15 = vadd.f32 %v590_v4, %v413_v25  ;;  %v767_v13 = vmul.f32 %v2629_v21, %v731_v6  ;;  %v849_v59 = vsel %vm833_vm4, %v816_v53, %v832_v32  ;;  %v865_v37 = vsel %vm833_vm4, %v832_v32, %v816_v53  ;;  %vm4807_vm4 = vmmov %vm4801_vm2 }
 0x158   : > { %v1671_v11 = vadd.f32 %v1639_v18, %v1559_v45  ;;  %v800_v10 = vadd.f32 %v768_v9, %v623_v20  ;;  %v908_v63 = vsel %vm868_vm7, %v865_v37, 0.0  ;;  %v945_v29 = vmul.f32 %v2682_v48, %v849_v59  ;;  %vm4810_vm7 = vmmov %vm4800_vm1 }
 0x159   : > { %v799_v8 = vadd.f32 %v767_v13, %v622_v15  ;;  %v944_v41 = vmul.f32 %v2682_v48, %v908_v63  ;;  %v993_v3 = vrot.slane %v4426_v51, 7  ;;  %v1009_v21 = vrot.slane %v4429_v24, 7 }
 0x15a   : > { %v1138_v25 = vadd.f32 %v1106_v60, %v961_v19  ;;  %v1783_v4 = vadd.f32 %v1751_v27, %v1671_v11  ;;  %v977_v6 = vadd.f32 %v945_v29, %v800_v10  ;;  %v1238_v54 = vrot.slane %v4426_v51, 1 }
 0x15b   : > { %v976_v53 = vadd.f32 %v944_v41, %v799_v8  ;;  %v1026_v18 = vsel %vm1010_vm8, %v993_v3, %v1009_v21  ;;  %v1042_v14 = vsel %vm1010_vm8, %v1009_v21, %v993_v3  ;;  %v1254_v32 = vrot.slane %v4429_v24, 1  ;;  %vm4811_vm8 = vmmov %vm4801_vm2 }
 0x15c   : > { %v1895_v45 = vadd.f32 %v1863_v31, %v1783_v4  ;;  %v1085_v48 = vsel %vm4799_vm0, %v1042_v14, 0.0  ;;  %v1122_v20 = vmul.f32 %v2699_v57, %v1026_v18  ;;  %v1415_v60 = vrot.slane %v4426_v51, 2 }
 0x15d   : > { %v1121_v19 = vmul.f32 %v2699_v57, %v1085_v48  ;;  %v1189_v27 = vmul.f32 %v2702_v58, %v4426_v51  ;;  %v1271_v9 = vsel %vm4800_vm1, %v1238_v54, %v1254_v32  ;;  %v1431_v15 = vrot.slane %v4429_v24, 2 }
 0x15e   : > { %v1934_v13 = vadd.f32 %v4281_v62, %v1895_v45  ;;  %v1154_v31 = vadd.f32 %v1122_v20, %v977_v6  ;;  %v1366_v50 = vmul.f32 %v2732_v30, %v1271_v9  ;;  %v1655_v59 = vmul.f32 %v2743_v35, %v318_v12 }
 0x15f   : > { %v1153_v37 = vadd.f32 %v1121_v19, %v976_v53  ;;  %v1448_v11 = vsel %vm4801_vm2, %v1415_v60, %v1431_v15  ;;  %v1767_v57 = vmul.f32 %v2752_v39, %v495_v36  ;;  %v1174_v51 = vmul.f32 %v2702_v58, %v4343_v0 }
 0x160   : > { %2477 = vmatprep.mubr.msk.f32.mxu0 %vm1960_vm12, %v1934_v13  ;;  %v1543_v10 = vmul.f32 %v2760_v42, %v1448_v11  ;;  %v4802_v63 = vrot.slane %v4340_v43, 1  ;;  %v4803_v29 = vrot.slane %v4343_v0, 1  ;;  %v4805_v8 = vrot.slane %v4340_v43, 2 }
 0x161   : > { %v4806_v41 = vrot.slane %v4343_v0, 2  ;;  %v1604_v3 = vsel %vm1582_vm15, %v4363_v38, 0.0  ;;  %v1221_v21 = vadd.f32 %v1189_v27, %v1153_v37  ;;  %v1206_v4 = vadd.f32 %v1174_v51, %v1138_v25 }
 0x162   : > { %v1279_v12 = vsel %vm4804_vm3, %v4803_v29, %v4802_v63  ;;  %v1879_v18 = vmul.f32 %v2756_v40, %v672_v17  ;;  %vm4808_vm5 = vcmp.lt.s32.totalorder %v2870_v49, 16  ;;  %v1640_v38 = vmul.f32 %v2743_v35, %v1604_v3 }
 0x163   : > { %v1456_v36 = vsel %vm4807_vm4, %v4806_v41, %v4805_v8  ;;  %v1315_v6 = vsel %vm1293_vm13, %v1279_v12, 0.0  ;;  %v1716_v14 = vsel %vm4808_vm5, %v4376_v61, 0.0  ;;  %v1398_v45 = vadd.f32 %v1366_v50, %v1221_v21 }
 0x164   : > { %v1492_v53 = vsel %vm1470_vm14, %v1456_v36, 0.0  ;;  %v1351_v43 = vmul.f32 %v2732_v30, %v1315_v6  ;;  %v1752_v25 = vmul.f32 %v2752_v39, %v1716_v14  ;;  %v1190_v48 = vmul.f32 %v2702_v58, %v4429_v24 }
 0x165   : > { %v1528_v0 = vmul.f32 %v2760_v42, %v1492_v53  ;;  %vm4809_vm6 = vcmp.lt.s32.totalorder %v2872_v33, 16  ;;  %v1287_v19 = vsel %vm4810_vm7, %v1254_v32, %v1238_v54  ;;  %v1464_v27 = vsel %vm4811_vm8, %v1431_v15, %v1415_v60 }
 0x166   : > { %v1383_v20 = vadd.f32 %v1351_v43, %v1206_v4  ;;  %v1828_v17 = vsel %vm4809_vm6, %v4389_v44, 0.0  ;;  %v1575_v61 = vadd.f32 %v1543_v10, %v1398_v45  ;;  %v1222_v9 = vadd.f32 %v1190_v48, %v1154_v31 }
 0x167   : > { %v1331_v13 = vsel %vm1293_vm13, %v1287_v19, 0.0  ;;  %v1508_v58 = vsel %vm1470_vm14, %v1464_v27, 0.0  ;;  %v1620_v54 = vsel %vm1582_vm15, %v4464_v16, 0.0  ;;  %v1864_v32 = vmul.f32 %v2756_v40, %v1828_v17  ;;  %vm4812_vm13 = vmmov %vm4808_vm5 }
 0x168   : > { %v1560_v24 = vadd.f32 %v1528_v0, %v1383_v20  ;;  %v1367_v50 = vmul.f32 %v2732_v30, %v1331_v13  ;;  %v1544_v44 = vmul.f32 %v2760_v42, %v1508_v58  ;;  %v1687_v55 = vadd.f32 %v1655_v59, %v1575_v61  ;;  %vm4813_vm14 = vmmov %vm4809_vm6 }
 0x169   : > { %v1656_v46 = vmul.f32 %v2743_v35, %v1620_v54  ;;  %v1732_v30 = vsel %vm4812_vm13, %v4477_v23, 0.0  ;;  %v1844_v47 = vsel %vm4813_vm14, %v4489_v1, 0.0  ;;  %v2129_v49 = vadd.f32 %v4191_v56, %v4581_v2 }
 0x16a   : > { %v1672_v60 = vadd.f32 %v1640_v38, %v1560_v24  ;;  %v1399_v42 = vadd.f32 %v1367_v50, %v1222_v9  ;;  %v1768_v15 = vmul.f32 %v2752_v39, %v1732_v30  ;;  %v1799_v35 = vadd.f32 %v1767_v57, %v1687_v55 }
 0x16b   : > { %v2209_v39 = vadd.f32 %v4208_v26, %v4581_v2  ;;  %v2124_v33 = vadd.f32 %v4581_v2, %v4203_v7  ;;  %v2204_v23 = vadd.f32 %v4581_v2, %v4214_v52  ;;  %v2139_v31 = vadd.f32 %v4431_v28, %v4581_v2  ;;  %2283 = vst.msk [vmem:[%s4597_s16 + $0x8] sm:$0xff] %vm1960_vm12, %v2129_v49  ;;  %v2464_v57 = vpop.f32.mrb[4].mxu0 }
 0x16c   : > { %v1784_v1 = vadd.f32 %v1752_v25, %v1672_v60  ;;  %v1576_v16 = vadd.f32 %v1544_v44, %v1399_v42  ;;  %v1911_v56 = vadd.f32 %v1879_v18, %v1799_v35  ;;  %v2219_v7 = vadd.f32 %v4458_v5, %v4581_v2  ;;  %v2143_v10 = vpop.f32.mrb[5].mxu0 }
 0x16d   : > { %2299 = vst.msk [vmem:[%s4597_s16 + $0x88] sm:$0xff] %vm1960_vm12, %v2209_v39  ;;  %2282 = vst.msk [vmem:[%s4597_s16] sm:$0xff] %vm1960_vm12, %v2124_v33  ;;  %v2134_v26 = vadd.f32 %v4581_v2, %v4440_v34  ;;  %v2214_v52 = vadd.f32 %v4581_v2, %v4467_v22  ;;  %v1880_v28 = vmul.f32 %v2756_v40, %v1844_v47 }
 0x16e   : > { %v1896_v59 = vadd.f32 %v1864_v32, %v1784_v1  ;;  %v1688_v37 = vadd.f32 %v1656_v46, %v1576_v16  ;;  %2298 = vst.msk [vmem:[%s4597_s16 + $0x80] sm:$0xff] %vm1960_vm12, %v2204_v23  ;;  %2285 = vst.msk [vmem:[%s4597_s16 + $0x18] sm:$0xff] %vm1960_vm12, %v2139_v31  ;;  %v1950_v11 = vadd.f32 %v4281_v62, %v1911_v56 }
 0x16f   : > { %2301 = vst.msk [vmem:[%s4597_s16 + $0x98] sm:$0xff] %vm1960_vm12, %v2219_v7  ;;  %2284 = vst.msk [vmem:[%s4597_s16 + $0x10] sm:$0xff] %vm1960_vm12, %v2134_v26  ;;  %v2149_v51 = vadd.f32 %v2464_v57, %v4581_v2  ;;  %v2144_v63 = vadd.f32 %v4581_v2, %v2143_v10 }
 0x170   : > { %2300 = vst.msk [vmem:[%s4597_s16 + $0x90] sm:$0xff] %vm1960_vm12, %v2214_v52  ;;  %v1935_v34 = vadd.f32 %v4281_v62, %v1896_v59  ;;  %v1800_v5 = vadd.f32 %v1768_v15, %v1688_v37  ;;  %2501 = vmatprep.mubr.msk.f32.mxu1 %vm1960_vm12, %v1950_v11  ;;  %v2488_v29 = vpop.f32.mrb[4].mxu1 }
 0x171   : > { %2287 = vst.msk [vmem:[%s4597_s16 + $0x28] sm:$0xff] %vm1960_vm12, %v2149_v51  ;;  %2286 = vst.msk [vmem:[%s4597_s16 + $0x20] sm:$0xff] %vm1960_vm12, %v2144_v63  ;;  %v2229_v12 = vadd.f32 %v2488_v29, %v4581_v2 }
 0x172   : > { %2478 = vmatmul.mubr.msk.f32.gmra.mrb[14].mxu0 %vm1960_vm12, %v1935_v34  ;;  %v1912_v40 = vadd.f32 %v1880_v28, %v1800_v5 }
 0x173   : > { %2303 = vst.msk [vmem:[%s4597_s16 + $0xa8] sm:$0xff] %vm1960_vm12, %v2229_v12 }
 0x174   : > { %v1951_v22 = vadd.f32 %v4281_v62, %v1912_v40  ;;  %v2223_v62 = vpop.f32.mrb[5].mxu1 }
 0x175   : > { %v2224_v8 = vadd.f32 %v4581_v2, %v2223_v62 }
 0x176   : > { %2502 = vmatmul.mubr.msk.f32.gmra.mrb[14].mxu1 %vm1960_vm12, %v1951_v22 }
 0x177   : > { %2302 = vst.msk [vmem:[%s4597_s16 + $0xa0] sm:$0xff] %vm1960_vm12, %v2224_v8 }
 0x197   : > { %v2467_v41 = vpop.f32.mrb[6].mxu0 }
 0x198   : > { %v2159_v36 = vadd.f32 %v2467_v41, %v4581_v2  ;;  %v2153_v3 = vpop.f32.mrb[7].mxu0 }
 0x199   : > { %v2154_v21 = vadd.f32 %v4581_v2, %v2153_v3 }
 0x19a   : > { %2289 = vst.msk [vmem:[%s4597_s16 + $0x38] sm:$0xff] %vm1960_vm12, %v2159_v36 }
 0x19b   : > { %v2491_v4 = vpop.f32.mrb[6].mxu1  ;;  %2288 = vst.msk [vmem:[%s4597_s16 + $0x30] sm:$0xff] %vm1960_vm12, %v2154_v21 }
 0x19c   : > { %v2239_v6 = vadd.f32 %v2491_v4, %v4581_v2  ;;  %v2233_v53 = vpop.f32.mrb[7].mxu1 }
 0x19d   : > { %v2234_v18 = vadd.f32 %v4581_v2, %v2233_v53 }
 0x19e   : > { %2305 = vst.msk [vmem:[%s4597_s16 + $0xb8] sm:$0xff] %vm1960_vm12, %v2239_v6 }
 0x19f   : > { %2304 = vst.msk [vmem:[%s4597_s16 + $0xb0] sm:$0xff] %vm1960_vm12, %v2234_v18 }
 0x1c2   : > { %v2470_v43 = vpop.f32.mrb[8].mxu0 }
 0x1c3   : > { %v2169_v0 = vadd.f32 %v2470_v43, %v4581_v2  ;;  %v2163_v14 = vpop.f32.mrb[9].mxu0 }
 0x1c4   : > { %v2164_v45 = vadd.f32 %v4581_v2, %v2163_v14 }
 0x1c5   : > { %2291 = vst.msk [vmem:[%s4597_s16 + $0x48] sm:$0xff] %vm1960_vm12, %v2169_v0 }
 0x1c6   : > { %v2494_v38 = vpop.f32.mrb[8].mxu1  ;;  %2290 = vst.msk [vmem:[%s4597_s16 + $0x40] sm:$0xff] %vm1960_vm12, %v2164_v45 }
 0x1c7   : > { %v2249_v25 = vadd.f32 %v2494_v38, %v4581_v2  ;;  %v2243_v48 = vpop.f32.mrb[9].mxu1 }
 0x1c8   : > { %v2244_v20 = vadd.f32 %v4581_v2, %v2243_v48 }
 0x1c9   : > { %2307 = vst.msk [vmem:[%s4597_s16 + $0xc8] sm:$0xff] %vm1960_vm12, %v2249_v25 }
 0x1ca   : > { %2306 = vst.msk [vmem:[%s4597_s16 + $0xc0] sm:$0xff] %vm1960_vm12, %v2244_v20 }
 0x1ed   : > { %v2473_v17 = vpop.f32.mrb[10].mxu0 }
 0x1ee   : > { %v2179_v19 = vadd.f32 %v2473_v17, %v4581_v2  ;;  %v2173_v27 = vpop.f32.mrb[11].mxu0 }
 0x1ef   : > { %v2174_v61 = vadd.f32 %v4581_v2, %v2173_v27 }
 0x1f0   : > { %2293 = vst.msk [vmem:[%s4597_s16 + $0x58] sm:$0xff] %vm1960_vm12, %v2179_v19 }
 0x1f1   : > { %v2497_v9 = vpop.f32.mrb[10].mxu1  ;;  %2292 = vst.msk [vmem:[%s4597_s16 + $0x50] sm:$0xff] %vm1960_vm12, %v2174_v61 }
 0x1f2   : > { %v2259_v13 = vadd.f32 %v2497_v9, %v4581_v2  ;;  %v2253_v58 = vpop.f32.mrb[11].mxu1 }
 0x1f3   : > { %v2254_v24 = vadd.f32 %v4581_v2, %v2253_v58 }
 0x1f4   : > { %2309 = vst.msk [vmem:[%s4597_s16 + $0xd8] sm:$0xff] %vm1960_vm12, %v2259_v13 }
 0x1f5   : > { %2308 = vst.msk [vmem:[%s4597_s16 + $0xd0] sm:$0xff] %vm1960_vm12, %v2254_v24 }
 0x219   : > { %v2476_v50 = vpop.f32.mrb[12].mxu0 }
 0x21a   : > { %v2189_v44 = vadd.f32 %v2476_v50, %v4581_v2  ;;  %v2183_v54 = vpop.f32.mrb[13].mxu0 }
 0x21b   : > { %v2184_v55 = vadd.f32 %v4581_v2, %v2183_v54 }
 0x21c   : > { %2295 = vst.msk [vmem:[%s4597_s16 + $0x68] sm:$0xff] %vm1960_vm12, %v2189_v44 }
 0x21d   : > { %v2500_v32 = vpop.f32.mrb[12].mxu1  ;;  %2294 = vst.msk [vmem:[%s4597_s16 + $0x60] sm:$0xff] %vm1960_vm12, %v2184_v55 }
 0x21e   : > { %v2269_v46 = vadd.f32 %v2500_v32, %v4581_v2  ;;  %v2263_v30 = vpop.f32.mrb[13].mxu1 }
 0x21f   : > { %v2264_v60 = vadd.f32 %v4581_v2, %v2263_v30 }
 0x220   : > { %2311 = vst.msk [vmem:[%s4597_s16 + $0xe8] sm:$0xff] %vm1960_vm12, %v2269_v46 }
 0x221   : > { %2310 = vst.msk [vmem:[%s4597_s16 + $0xe0] sm:$0xff] %vm1960_vm12, %v2264_v60 }
 0x245   : > { %v2479_v42 = vpop.f32.mrb[14].mxu0 }
 0x246   : > { %v2199_v15 = vadd.f32 %v2479_v42, %v4581_v2  ;;  %v2193_v47 = vpop.f32.mrb[15].mxu0 }
 0x247   : > { %v2194_v35 = vadd.f32 %v4581_v2, %v2193_v47 }
 0x248   : > { %2297 = vst.msk [vmem:[%s4597_s16 + $0x78] sm:$0xff] %vm1960_vm12, %v2199_v15 }
 0x249   : > { %v2503_v49 = vpop.f32.mrb[14].mxu1  ;;  %2296 = vst.msk [vmem:[%s4597_s16 + $0x70] sm:$0xff] %vm1960_vm12, %v2194_v35 }
 0x24a   : > { %v2279_v39 = vadd.f32 %v2503_v49, %v4581_v2  ;;  %v2273_v33 = vpop.f32.mrb[15].mxu1 }
 0x24b   : > { %v2274_v1 = vadd.f32 %v4581_v2, %v2273_v33 }
 0x24c   : > { %2313 = vst.msk [vmem:[%s4597_s16 + $0xf8] sm:$0xff] %vm1960_vm12, %v2279_v39 }
 0x24d   : > { %2312 = vst.msk [vmem:[%s4597_s16 + $0xf0] sm:$0xff] %vm1960_vm12, %v2274_v1 }
 0x24e PF: > { %s15_s18 = sadd.s32 1, %s2522_s18  }
 0x24f   : > { %p12_p4 = scmp.ge.s32.totalorder %s15_s18, 4  }
 0x251   :  { %14 = sbr.rel (!%p12_p4) target bundleno = 1 (0x1), region = 70 }

// kernel: fdfa_forward.13
= control target key start
LH: loop header
LB: loop body
LE: loop exit
PB: predicated region body
PF: predicated region fallthrough
CT: control target
= control target key end

     0   :  { %s1185_s21 = smov 0   ;;  %s1492_s0 = inlined_call_operand.vmem [shape: f32[512,8], index: 0, kind: input, shape index: {}]   ;;  %s1493_s1 = inlined_call_operand.vmem [shape: f32[512,8], index: 1, kind: input, shape index: {}]   ;;  %s1494_s2 = inlined_call_operand.vmem [shape: f32[512,8], index: 2, kind: input, shape index: {}]   ;;  %s1495_s3 = inlined_call_operand.vmem [shape: f32[512,8], index: 3, kind: input, shape index: {}]   ;;  %s1496_s4 = inlined_call_operand.vmem [shape: f32[8,8], index: 4, kind: input, shape index: {}]   ;;  %s1497_s5 = inlined_call_operand.vmem [shape: f32[1,8], index: 5, kind: input, shape index: {}]   ;;  %s1498_s6 = inlined_call_operand.vmem [shape: f32[512,8], index: 6, kind: output, shape index: {}]  }
   0x1 LB: > { %s999_s22 = sadd.s32 4294967295, %s1148_s21   ;;  %p1003_p0 = scmp.ge.s32.totalorder %s1148_s21, 1  ;;  %s1148_s21 = sphi %s1185_s21, %s16_s21  }
   0x2   : > { %p246_p1 = scmp.lt.s32.totalorder %s1148_s21, 3 }
   0x4   : > { %p247_p2 = pnand %p1003_p0, %p246_p1 }
   0x5   : > { %v417_v0 = vld [vmem:[%s1496_s4] sm:$0xff] (!%p247_p2)  ;;  %s1004_s25 = sshll.u32 (!%p247_p2), %s999_s22, 5  ;;  %vm425_vm0 = vcmask (!%p247_p2), 64512  }
   0x6   : > { %250 = sbr.rel (%p247_p2) target bundleno = 271 (0x10f), region = 44  ;;  %1082 = vmatprep.subr.mxu0 (!%p247_p2), %v417_v0  ;;  %1132 = vmatprep.subr.mxu1 (!%p247_p2), %v417_v0  ;;  %p292_p3 = scmp.lt.s32.totalorder (!%p247_p2), %s1004_s25, 63 }
   0x7   : > { %1083 = vmatpush3.msra.mxu0 (!%p247_p2), %v417_v0  ;;  %1133 = vmatpush3.msra.mxu1 (!%p247_p2), %v417_v0 }
   0xd   : > { %s1500_s25 = smov (!%p292_p3, %s1004_s25), 63 }
   0xe   : > { %s1196_s26 = sshll.u32 %s1500_s25, 3 }
   0xf   : > { %s1202_s29 = scalar_lea.vmem %s1492_s0, %s1196_s26  ;;  %s1208_s8 = scalar_lea.vmem %s1493_s1, %s1196_s26 }
  0x10   : > { %v321_v1 = vld [vmem:[%s1202_s29] sm:$0xff]  ;;  %v322_v6 = vld [vmem:[%s1202_s29 + $0x8] sm:$0xff]  ;;  %v323_v12 = vld [vmem:[%s1202_s29 + $0x10] sm:$0xff]  ;;  %s1310_s11 = scalar_lea.vmem %s1494_s2, %s1196_s26  ;;  %s1321_s16 = scalar_lea.vmem %s1495_s3, %s1196_s26 }
  0x11   : > { %v353_v2 = vld [vmem:[%s1208_s8] sm:$0xff]  ;;  %v354_v7 = vld [vmem:[%s1208_s8 + $0x8] sm:$0xff]  ;;  %v355_v14 = vld [vmem:[%s1208_s8 + $0x10] sm:$0xff]  ;;  %s1338_s19 = scalar_lea.vmem %s1498_s6, %s1196_s26 }
  0x12   : > { %v337_v3 = vld [vmem:[%s1202_s29 + $0x80] sm:$0xff]  ;;  %v385_v4 = vadd.f32 %v353_v2, %v321_v1  ;;  %v386_v9 = vadd.f32 %v354_v7, %v322_v6  ;;  %v338_v10 = vld [vmem:[%s1202_s29 + $0x88] sm:$0xff]  ;;  %v339_v15 = vld [vmem:[%s1202_s29 + $0x90] sm:$0xff]  ;;  %v387_v17 = vadd.f32 %v355_v14, %v323_v12 }
  0x13   : > { %v369_v5 = vld [vmem:[%s1208_s8 + $0x80] sm:$0xff]  ;;  %v370_v11 = vld [vmem:[%s1208_s8 + $0x88] sm:$0xff]  ;;  %v371_v16 = vld [vmem:[%s1208_s8 + $0x90] sm:$0xff] }
  0x14   : > { %v401_v8 = vadd.f32 %v369_v5, %v337_v3  ;;  %1084 = vmatprep.mubr.msk.f32.mxu0 %vm425_vm0, %v385_v4  ;;  %v402_v13 = vadd.f32 %v370_v11, %v338_v10  ;;  %v403_v18 = vadd.f32 %v371_v16, %v339_v15  ;;  %v324_v19 = vld [vmem:[%s1202_s29 + $0x18] sm:$0xff]  ;;  %v325_v24 = vld [vmem:[%s1202_s29 + $0x20] sm:$0xff]  ;;  %v326_v30 = vld [vmem:[%s1202_s29 + $0x28] sm:$0xff] }
  0x15   : > { %1085 = vmatmul.mubr.msk.f32.vlgmr.msra.gmra.mrb[0].mxu0 %vm425_vm0, %v386_v9  ;;  %v356_v20 = vld [vmem:[%s1208_s8 + $0x18] sm:$0xff]  ;;  %v357_v25 = vld [vmem:[%s1208_s8 + $0x20] sm:$0xff]  ;;  %v358_v32 = vld [vmem:[%s1208_s8 + $0x28] sm:$0xff] }
  0x16   : > { %1108 = vmatprep.mubr.msk.f32.mxu1 %vm425_vm0, %v401_v8  ;;  %v340_v21 = vld [vmem:[%s1202_s29 + $0x98] sm:$0xff]  ;;  %v388_v22 = vadd.f32 %v356_v20, %v324_v19  ;;  %1087 = vmatprep.mubr.msk.f32.mxu0 %vm425_vm0, %v387_v17  ;;  %v389_v27 = vadd.f32 %v357_v25, %v325_v24  ;;  %v341_v28 = vld [vmem:[%s1202_s29 + $0xa0] sm:$0xff]  ;;  %v342_v33 = vld [vmem:[%s1202_s29 + $0xa8] sm:$0xff]  ;;  %v390_v35 = vadd.f32 %v358_v32, %v326_v30 }
  0x17   : > { %1109 = vmatmul.mubr.msk.f32.vlgmr.msra.gmra.mrb[0].mxu1 %vm425_vm0, %v402_v13  ;;  %v372_v23 = vld [vmem:[%s1208_s8 + $0x98] sm:$0xff]  ;;  %v373_v29 = vld [vmem:[%s1208_s8 + $0xa0] sm:$0xff]  ;;  %v374_v34 = vld [vmem:[%s1208_s8 + $0xa8] sm:$0xff] }
  0x18   : > { %1111 = vmatprep.mubr.msk.f32.mxu1 %vm425_vm0, %v403_v18  ;;  %v404_v26 = vadd.f32 %v372_v23, %v340_v21  ;;  %v405_v31 = vadd.f32 %v373_v29, %v341_v28  ;;  %v327_v36 = vld [vmem:[%s1202_s29 + $0x30] sm:$0xff]  ;;  %v406_v39 = vadd.f32 %v374_v34, %v342_v33  ;;  %v328_v42 = vld [vmem:[%s1202_s29 + $0x38] sm:$0xff]  ;;  %v329_v47 = vld [vmem:[%s1202_s29 + $0x40] sm:$0xff] }
  0x19   : > { %1088 = vmatmul.mubr.msk.f32.gmra.mrb[2].mxu0 %vm425_vm0, %v388_v22  ;;  %v359_v37 = vld [vmem:[%s1208_s8 + $0x30] sm:$0xff]  ;;  %v360_v43 = vld [vmem:[%s1208_s8 + $0x38] sm:$0xff]  ;;  %v361_v48 = vld [vmem:[%s1208_s8 + $0x40] sm:$0xff] }
  0x1a   : > { %v343_v38 = vld [vmem:[%s1202_s29 + $0xb0] sm:$0xff]  ;;  %1090 = vmatprep.mubr.msk.f32.mxu0 %vm425_vm0, %v389_v27  ;;  %v391_v40 = vadd.f32 %v359_v37, %v327_v36  ;;  %v344_v45 = vld [vmem:[%s1202_s29 + $0xb8] sm:$0xff]  ;;  %v345_v49 = vld [vmem:[%s1202_s29 + $0xc0] sm:$0xff]  ;;  %v392_v51 = vadd.f32 %v360_v43, %v328_v42  ;;  %v393_v53 = vadd.f32 %v361_v48, %v329_v47 }
  0x1b   : > { %1112 = vmatmul.mubr.msk.f32.gmra.mrb[2].mxu1 %vm425_vm0, %v404_v26  ;;  %v375_v41 = vld [vmem:[%s1208_s8 + $0xb0] sm:$0xff]  ;;  %v376_v46 = vld [vmem:[%s1208_s8 + $0xb8] sm:$0xff]  ;;  %v377_v50 = vld [vmem:[%s1208_s8 + $0xc0] sm:$0xff] }
  0x1c   : > { %1114 = vmatprep.mubr.msk.f32.mxu1 %vm425_vm0, %v405_v31  ;;  %v407_v44 = vadd.f32 %v375_v41, %v343_v38  ;;  %v408_v52 = vadd.f32 %v376_v46, %v344_v45  ;;  %v330_v54 = vld [vmem:[%s1202_s29 + $0x48] sm:$0xff]  ;;  %v409_v57 = vadd.f32 %v377_v50, %v345_v49  ;;  %v331_v59 = vld [vmem:[%s1202_s29 + $0x50] sm:$0xff]  ;;  %v332_v2 = vld [vmem:[%s1202_s29 + $0x58] sm:$0xff] }
  0x1d   : > { %1091 = vmatmul.mubr.msk.f32.gmra.mrb[4].mxu0 %vm425_vm0, %v390_v35  ;;  %v362_v55 = vld [vmem:[%s1208_s8 + $0x48] sm:$0xff]  ;;  %v363_v60 = vld [vmem:[%s1208_s8 + $0x50] sm:$0xff]  ;;  %v364_v3 = vld [vmem:[%s1208_s8 + $0x58] sm:$0xff] }
  0x1e   : > { %1093 = vmatprep.mubr.msk.f32.mxu0 %vm425_vm0, %v391_v40  ;;  %v346_v56 = vld [vmem:[%s1202_s29 + $0xc8] sm:$0xff]  ;;  %v347_v61 = vld [vmem:[%s1202_s29 + $0xd0] sm:$0xff]  ;;  %v394_v63 = vadd.f32 %v362_v55, %v330_v54  ;;  %v395_v1 = vadd.f32 %v363_v60, %v331_v59  ;;  %v348_v4 = vld [vmem:[%s1202_s29 + $0xd8] sm:$0xff]  ;;  %v396_v11 = vadd.f32 %v364_v3, %v332_v2 }
  0x1f   : > { %1115 = vmatmul.mubr.msk.f32.gmra.mrb[4].mxu1 %vm425_vm0, %v406_v39  ;;  %v378_v58 = vld [vmem:[%s1208_s8 + $0xc8] sm:$0xff]  ;;  %v379_v62 = vld [vmem:[%s1208_s8 + $0xd0] sm:$0xff]  ;;  %v380_v6 = vld [vmem:[%s1208_s8 + $0xd8] sm:$0xff] }
  0x20   : > { %1117 = vmatprep.mubr.msk.f32.mxu1 %vm425_vm0, %v407_v44  ;;  %v410_v0 = vadd.f32 %v378_v58, %v346_v56  ;;  %v411_v5 = vadd.f32 %v379_v62, %v347_v61  ;;  %v333_v7 = vld [vmem:[%s1202_s29 + $0x60] sm:$0xff]  ;;  %v412_v12 = vadd.f32 %v380_v6, %v348_v4  ;;  %v334_v14 = vld [vmem:[%s1202_s29 + $0x68] sm:$0xff]  ;;  %v335_v19 = vld [vmem:[%s1202_s29 + $0x70] sm:$0xff] }
  0x21   : > { %1094 = vmatmul.mubr.msk.f32.gmra.mrb[6].mxu0 %vm425_vm0, %v392_v51  ;;  %v365_v8 = vld [vmem:[%s1208_s8 + $0x60] sm:$0xff]  ;;  %v366_v15 = vld [vmem:[%s1208_s8 + $0x68] sm:$0xff]  ;;  %v367_v20 = vld [vmem:[%s1208_s8 + $0x70] sm:$0xff] }
  0x22   : > { %1096 = vmatprep.mubr.msk.f32.mxu0 %vm425_vm0, %v393_v53  ;;  %v349_v9 = vld [vmem:[%s1202_s29 + $0xe0] sm:$0xff]  ;;  %v397_v13 = vadd.f32 %v365_v8, %v333_v7  ;;  %v350_v16 = vld [vmem:[%s1202_s29 + $0xe8] sm:$0xff]  ;;  %v351_v21 = vld [vmem:[%s1202_s29 + $0xf0] sm:$0xff]  ;;  %v398_v23 = vadd.f32 %v366_v15, %v334_v14  ;;  %v399_v25 = vadd.f32 %v367_v20, %v335_v19 }
  0x23   : > { %1118 = vmatmul.mubr.msk.f32.gmra.mrb[6].mxu1 %vm425_vm0, %v408_v52  ;;  %v381_v10 = vld [vmem:[%s1208_s8 + $0xe0] sm:$0xff]  ;;  %v382_v18 = vld [vmem:[%s1208_s8 + $0xe8] sm:$0xff]  ;;  %v383_v22 = vld [vmem:[%s1208_s8 + $0xf0] sm:$0xff] }
  0x24   : > { %1120 = vmatprep.mubr.msk.f32.mxu1 %vm425_vm0, %v409_v57  ;;  %v413_v17 = vadd.f32 %v381_v10, %v349_v9  ;;  %v414_v24 = vadd.f32 %v382_v18, %v350_v16  ;;  %v336_v26 = vld [vmem:[%s1202_s29 + $0x78] sm:$0xff]  ;;  %v415_v28 = vadd.f32 %v383_v22, %v351_v21  ;;  %v1315_v33 = vld [vmem:[%s1497_s5] ss:$0 sm:$0xff]  ;;  %v748_v35 = vld [vmem:[%s1310_s11 + $0x8] sm:$0xff] }
  0x25   : > { %1097 = vmatmul.mubr.msk.f32.gmra.mrb[8].mxu0 %vm425_vm0, %v394_v63  ;;  %v368_v27 = vld [vmem:[%s1208_s8 + $0x78] sm:$0xff]  ;;  %v764_v38 = vld [vmem:[%s1310_s11 + $0x88] sm:$0xff]  ;;  %v747_v40 = vld [vmem:[%s1310_s11] sm:$0xff] }
  0x26   : > { %1099 = vmatprep.mubr.msk.f32.mxu0 %vm425_vm0, %v395_v1  ;;  %v352_v29 = vld [vmem:[%s1202_s29 + $0xf8] sm:$0xff]  ;;  %v400_v31 = vadd.f32 %v368_v27, %v336_v26  ;;  %v812_v41 = vld [vmem:[%s1321_s16 + $0x8] sm:$0xff]  ;;  %v763_v45 = vld [vmem:[%s1310_s11 + $0x80] sm:$0xff] }
  0x27   : > { %1121 = vmatmul.mubr.msk.f32.gmra.mrb[8].mxu1 %vm425_vm0, %v410_v0  ;;  %v384_v30 = vld [vmem:[%s1208_s8 + $0xf8] sm:$0xff]  ;;  %v828_v47 = vld [vmem:[%s1321_s16 + $0x88] sm:$0xff]  ;;  %v811_v48 = vld [vmem:[%s1321_s16] sm:$0xff] }
  0x28   : > { %1123 = vmatprep.mubr.msk.f32.mxu1 %vm425_vm0, %v411_v5  ;;  %v416_v32 = vadd.f32 %v384_v30, %v352_v29  ;;  %v827_v52 = vld [vmem:[%s1321_s16 + $0x80] sm:$0xff]  ;;  %v750_v54 = vld [vmem:[%s1310_s11 + $0x18] sm:$0xff]  ;;  %v749_v61 = vld [vmem:[%s1310_s11 + $0x10] sm:$0xff] }
  0x29   : > { %1100 = vmatmul.mubr.msk.f32.gmra.mrb[10].mxu0 %vm425_vm0, %v396_v11  ;;  %v766_v59 = vld [vmem:[%s1310_s11 + $0x98] sm:$0xff]  ;;  %v765_v4 = vld [vmem:[%s1310_s11 + $0x90] sm:$0xff]  ;;  %v752_v14 = vld [vmem:[%s1310_s11 + $0x28] sm:$0xff] }
  0x2a   : > { %1102 = vmatprep.mubr.msk.f32.mxu0 %vm425_vm0, %v397_v13  ;;  %v814_v0 = vld [vmem:[%s1321_s16 + $0x18] sm:$0xff]  ;;  %v813_v8 = vld [vmem:[%s1321_s16 + $0x10] sm:$0xff]  ;;  %v768_v19 = vld [vmem:[%s1310_s11 + $0xa8] sm:$0xff] }
  0x2b   : > { %1124 = vmatmul.mubr.msk.f32.gmra.mrb[10].mxu1 %vm425_vm0, %v412_v12  ;;  %v830_v7 = vld [vmem:[%s1321_s16 + $0x98] sm:$0xff]  ;;  %v829_v12 = vld [vmem:[%s1321_s16 + $0x90] sm:$0xff]  ;;  %v751_v21 = vld [vmem:[%s1310_s11 + $0x20] sm:$0xff] }
  0x2c   : > { %1126 = vmatprep.mubr.msk.f32.mxu1 %vm425_vm0, %v413_v17 }
  0x2d   : > { %1103 = vmatmul.mubr.msk.f32.gmra.mrb[12].mxu0 %vm425_vm0, %v398_v23 }
  0x2e   : > { %1105 = vmatprep.mubr.msk.f32.mxu0 %vm425_vm0, %v399_v25 }
  0x2f   : > { %1127 = vmatmul.mubr.msk.f32.gmra.mrb[12].mxu1 %vm425_vm0, %v414_v24  ;;  %v816_v24 = vld [vmem:[%s1321_s16 + $0x28] sm:$0xff] }
  0x30   : > { %1129 = vmatprep.mubr.msk.f32.mxu1 %vm425_vm0, %v415_v28  ;;  %v767_v28 = vld [vmem:[%s1310_s11 + $0xa0] sm:$0xff] }
  0x31   : > { %1106 = vmatmul.mubr.msk.f32.gmra.mrb[14].mxu0 %vm425_vm0, %v400_v31  ;;  %v832_v31 = vld [vmem:[%s1321_s16 + $0xa8] sm:$0xff] }
  0x33   : > { %1130 = vmatmul.mubr.msk.f32.gmra.mrb[14].mxu1 %vm425_vm0, %v416_v32  ;;  %v815_v32 = vld [vmem:[%s1321_s16 + $0x20] sm:$0xff] }
  0xe8   : > { %v1086_v34 = vpop.f32.mrb[0].mxu0 }
  0xe9   : > { %v594_v36 = vadd.f32 %v1086_v34, %v1315_v33  ;;  %v588_v39 = vpop.f32.mrb[1].mxu0 }
  0xea   : > { %v1110_v37 = vpop.f32.mrb[0].mxu1  ;;  %v589_v43 = vadd.f32 %v1315_v33, %v588_v39  ;;  %v754_v39 = vld [vmem:[%s1310_s11 + $0x38] sm:$0xff] }
  0xeb   : > { %v674_v42 = vadd.f32 %v1110_v37, %v1315_v33  ;;  %v668_v44 = vpop.f32.mrb[1].mxu1  ;;  %v780_v46 = vadd.f32 %v748_v35, %v594_v36  ;;  %v831_v37 = vld [vmem:[%s1321_s16 + $0xa0] sm:$0xff] }
  0xec   : > { %v669_v49 = vadd.f32 %v1315_v33, %v668_v44  ;;  %v779_v51 = vadd.f32 %v747_v40, %v589_v43  ;;  %v1089_v53 = vpop.f32.mrb[2].mxu0  ;;  %v770_v44 = vld [vmem:[%s1310_s11 + $0xb8] sm:$0xff] }
  0xed   : > { %v796_v50 = vadd.f32 %v764_v38, %v674_v42  ;;  %v844_v55 = vadd.f32 %v812_v41, %v780_v46  ;;  %v604_v57 = vadd.f32 %v1089_v53, %v1315_v33  ;;  %v598_v60 = vpop.f32.mrb[3].mxu0  ;;  %v753_v46 = vld [vmem:[%s1310_s11 + $0x30] sm:$0xff] }
  0xee   : > { %v795_v56 = vadd.f32 %v763_v45, %v669_v49  ;;  %v1113_v58 = vpop.f32.mrb[2].mxu1  ;;  %v843_v63 = vadd.f32 %v811_v48, %v779_v51  ;;  %v599_v2 = vadd.f32 %v1315_v33, %v598_v60  ;;  %v818_v49 = vld [vmem:[%s1321_s16 + $0x38] sm:$0xff]  ;;  %v769_v53 = vld [vmem:[%s1310_s11 + $0xb0] sm:$0xff] }
  0xef   : > { %v860_v62 = vadd.f32 %v828_v47, %v796_v50  ;;  %v684_v1 = vadd.f32 %v1113_v58, %v1315_v33  ;;  %v678_v3 = vpop.f32.mrb[3].mxu1  ;;  %876 = vst.msk [vmem:[%s1338_s19 + $0x8] sm:$0xff] %vm425_vm0, %v844_v55  ;;  %v782_v6 = vadd.f32 %v750_v54, %v604_v57  ;;  %v817_v57 = vld [vmem:[%s1321_s16 + $0x30] sm:$0xff] }
  0xf0   : > { %v859_v5 = vadd.f32 %v827_v52, %v795_v56  ;;  %v679_v9 = vadd.f32 %v1315_v33, %v678_v3  ;;  %875 = vst.msk [vmem:[%s1338_s19] sm:$0xff] %vm425_vm0, %v843_v63  ;;  %v781_v11 = vadd.f32 %v749_v61, %v599_v2  ;;  %v1092_v13 = vpop.f32.mrb[4].mxu0  ;;  %v834_v56 = vld [vmem:[%s1321_s16 + $0xb8] sm:$0xff]  ;;  %v833_v61 = vld [vmem:[%s1321_s16 + $0xb0] sm:$0xff]  ;;  %v756_v63 = vld [vmem:[%s1310_s11 + $0x48] sm:$0xff] }
  0xf1   : > { %892 = vst.msk [vmem:[%s1338_s19 + $0x88] sm:$0xff] %vm425_vm0, %v860_v62  ;;  %v798_v10 = vadd.f32 %v766_v59, %v684_v1  ;;  %v846_v15 = vadd.f32 %v814_v0, %v782_v6  ;;  %v614_v17 = vadd.f32 %v1092_v13, %v1315_v33  ;;  %v608_v20 = vpop.f32.mrb[5].mxu0  ;;  %v755_v6 = vld [vmem:[%s1310_s11 + $0x40] sm:$0xff] }
  0xf2   : > { %891 = vst.msk [vmem:[%s1338_s19 + $0x80] sm:$0xff] %vm425_vm0, %v859_v5  ;;  %v797_v16 = vadd.f32 %v765_v4, %v679_v9  ;;  %v1116_v18 = vpop.f32.mrb[4].mxu1  ;;  %v845_v23 = vadd.f32 %v813_v8, %v781_v11  ;;  %v609_v26 = vadd.f32 %v1315_v33, %v608_v20  ;;  %v772_v4 = vld [vmem:[%s1310_s11 + $0xc8] sm:$0xff]  ;;  %v771_v13 = vld [vmem:[%s1310_s11 + $0xc0] sm:$0xff] }
  0xf3   : > { %v862_v22 = vadd.f32 %v830_v7, %v798_v10  ;;  %v694_v25 = vadd.f32 %v1116_v18, %v1315_v33  ;;  %v688_v27 = vpop.f32.mrb[5].mxu1  ;;  %878 = vst.msk [vmem:[%s1338_s19 + $0x18] sm:$0xff] %vm425_vm0, %v846_v15  ;;  %v784_v30 = vadd.f32 %v752_v14, %v614_v17  ;;  %v820_v9 = vld [vmem:[%s1321_s16 + $0x48] sm:$0xff]  ;;  %v819_v17 = vld [vmem:[%s1321_s16 + $0x40] sm:$0xff] }
  0xf4   : > { %v861_v29 = vadd.f32 %v829_v12, %v797_v16  ;;  %v689_v34 = vadd.f32 %v1315_v33, %v688_v27  ;;  %877 = vst.msk [vmem:[%s1338_s19 + $0x10] sm:$0xff] %vm425_vm0, %v845_v23  ;;  %v783_v36 = vadd.f32 %v751_v21, %v609_v26  ;;  %v1095_v38 = vpop.f32.mrb[6].mxu0  ;;  %v836_v16 = vld [vmem:[%s1321_s16 + $0xc8] sm:$0xff]  ;;  %v835_v21 = vld [vmem:[%s1321_s16 + $0xc0] sm:$0xff]  ;;  %v758_v23 = vld [vmem:[%s1310_s11 + $0x58] sm:$0xff] }
  0xf5   : > { %894 = vst.msk [vmem:[%s1338_s19 + $0x98] sm:$0xff] %vm425_vm0, %v862_v22  ;;  %v800_v35 = vadd.f32 %v768_v19, %v694_v25  ;;  %v848_v40 = vadd.f32 %v816_v24, %v784_v30  ;;  %v624_v42 = vadd.f32 %v1095_v38, %v1315_v33  ;;  %v618_v45 = vpop.f32.mrb[7].mxu0  ;;  %v757_v30 = vld [vmem:[%s1310_s11 + $0x50] sm:$0xff] }
  0xf6   : > { %893 = vst.msk [vmem:[%s1338_s19 + $0x90] sm:$0xff] %vm425_vm0, %v861_v29  ;;  %v799_v41 = vadd.f32 %v767_v28, %v689_v34  ;;  %v1119_v43 = vpop.f32.mrb[6].mxu1  ;;  %v847_v48 = vadd.f32 %v815_v32, %v783_v36  ;;  %v619_v51 = vadd.f32 %v1315_v33, %v618_v45  ;;  %v774_v28 = vld [vmem:[%s1310_s11 + $0xd8] sm:$0xff]  ;;  %v773_v38 = vld [vmem:[%s1310_s11 + $0xd0] sm:$0xff] }
  0xf7   : > { %v864_v47 = vadd.f32 %v832_v31, %v800_v35  ;;  %v704_v50 = vadd.f32 %v1119_v43, %v1315_v33  ;;  %v698_v52 = vpop.f32.mrb[7].mxu1  ;;  %880 = vst.msk [vmem:[%s1338_s19 + $0x28] sm:$0xff] %vm425_vm0, %v848_v40  ;;  %v786_v55 = vadd.f32 %v754_v39, %v624_v42  ;;  %v822_v34 = vld [vmem:[%s1321_s16 + $0x58] sm:$0xff]  ;;  %v821_v42 = vld [vmem:[%s1321_s16 + $0x50] sm:$0xff] }
  0xf8   : > { %v863_v54 = vadd.f32 %v831_v37, %v799_v41  ;;  %v699_v58 = vadd.f32 %v1315_v33, %v698_v52  ;;  %879 = vst.msk [vmem:[%s1338_s19 + $0x20] sm:$0xff] %vm425_vm0, %v847_v48  ;;  %v785_v60 = vadd.f32 %v753_v46, %v619_v51  ;;  %v1098_v62 = vpop.f32.mrb[8].mxu0  ;;  %v838_v41 = vld [vmem:[%s1321_s16 + $0xd8] sm:$0xff]  ;;  %v837_v46 = vld [vmem:[%s1321_s16 + $0xd0] sm:$0xff]  ;;  %v760_v48 = vld [vmem:[%s1310_s11 + $0x68] sm:$0xff] }
  0xf9   : > { %896 = vst.msk [vmem:[%s1338_s19 + $0xa8] sm:$0xff] %vm425_vm0, %v864_v47  ;;  %v802_v59 = vadd.f32 %v770_v44, %v704_v50  ;;  %v850_v0 = vadd.f32 %v818_v49, %v786_v55  ;;  %v634_v2 = vadd.f32 %v1098_v62, %v1315_v33  ;;  %v628_v5 = vpop.f32.mrb[9].mxu0  ;;  %v759_v55 = vld [vmem:[%s1310_s11 + $0x60] sm:$0xff] }
  0xfa   : > { %895 = vst.msk [vmem:[%s1338_s19 + $0xa0] sm:$0xff] %vm425_vm0, %v863_v54  ;;  %v801_v1 = vadd.f32 %v769_v53, %v699_v58  ;;  %v1122_v3 = vpop.f32.mrb[8].mxu1  ;;  %v849_v8 = vadd.f32 %v817_v57, %v785_v60  ;;  %v629_v11 = vadd.f32 %v1315_v33, %v628_v5  ;;  %v776_v53 = vld [vmem:[%s1310_s11 + $0xe8] sm:$0xff]  ;;  %v775_v62 = vld [vmem:[%s1310_s11 + $0xe0] sm:$0xff] }
  0xfb   : > { %v866_v7 = vadd.f32 %v834_v56, %v802_v59  ;;  %v714_v10 = vadd.f32 %v1122_v3, %v1315_v33  ;;  %v708_v12 = vpop.f32.mrb[9].mxu1  ;;  %882 = vst.msk [vmem:[%s1338_s19 + $0x38] sm:$0xff] %vm425_vm0, %v850_v0  ;;  %v788_v15 = vadd.f32 %v756_v63, %v634_v2  ;;  %v824_v58 = vld [vmem:[%s1321_s16 + $0x68] sm:$0xff]  ;;  %v823_v2 = vld [vmem:[%s1321_s16 + $0x60] sm:$0xff] }
  0xfc   : > { %v865_v14 = vadd.f32 %v833_v61, %v801_v1  ;;  %v709_v18 = vadd.f32 %v1315_v33, %v708_v12  ;;  %881 = vst.msk [vmem:[%s1338_s19 + $0x30] sm:$0xff] %vm425_vm0, %v849_v8  ;;  %v787_v20 = vadd.f32 %v755_v6, %v629_v11  ;;  %v1101_v22 = vpop.f32.mrb[10].mxu0  ;;  %v840_v1 = vld [vmem:[%s1321_s16 + $0xe8] sm:$0xff]  ;;  %v839_v6 = vld [vmem:[%s1321_s16 + $0xe0] sm:$0xff]  ;;  %v762_v8 = vld [vmem:[%s1310_s11 + $0x78] sm:$0xff] }
  0xfd   : > { %898 = vst.msk [vmem:[%s1338_s19 + $0xb8] sm:$0xff] %vm425_vm0, %v866_v7  ;;  %v804_v19 = vadd.f32 %v772_v4, %v714_v10  ;;  %v852_v24 = vadd.f32 %v820_v9, %v788_v15  ;;  %v644_v26 = vadd.f32 %v1101_v22, %v1315_v33  ;;  %v638_v29 = vpop.f32.mrb[11].mxu0  ;;  %v761_v15 = vld [vmem:[%s1310_s11 + $0x70] sm:$0xff] }
  0xfe   : > { %897 = vst.msk [vmem:[%s1338_s19 + $0xb0] sm:$0xff] %vm425_vm0, %v865_v14  ;;  %v803_v25 = vadd.f32 %v771_v13, %v709_v18  ;;  %v1125_v27 = vpop.f32.mrb[10].mxu1  ;;  %v851_v32 = vadd.f32 %v819_v17, %v787_v20  ;;  %v639_v36 = vadd.f32 %v1315_v33, %v638_v29  ;;  %v778_v13 = vld [vmem:[%s1310_s11 + $0xf8] sm:$0xff]  ;;  %v777_v22 = vld [vmem:[%s1310_s11 + $0xf0] sm:$0xff] }
  0xff   : > { %v868_v31 = vadd.f32 %v836_v16, %v804_v19  ;;  %v724_v35 = vadd.f32 %v1125_v27, %v1315_v33  ;;  %v718_v37 = vpop.f32.mrb[11].mxu1  ;;  %884 = vst.msk [vmem:[%s1338_s19 + $0x48] sm:$0xff] %vm425_vm0, %v852_v24  ;;  %v790_v40 = vadd.f32 %v758_v23, %v644_v26  ;;  %v826_v18 = vld [vmem:[%s1321_s16 + $0x78] sm:$0xff]  ;;  %v825_v26 = vld [vmem:[%s1321_s16 + $0x70] sm:$0xff] }
 0x100   : > { %v867_v39 = vadd.f32 %v835_v21, %v803_v25  ;;  %v719_v43 = vadd.f32 %v1315_v33, %v718_v37  ;;  %883 = vst.msk [vmem:[%s1338_s19 + $0x40] sm:$0xff] %vm425_vm0, %v851_v32  ;;  %v789_v45 = vadd.f32 %v757_v30, %v639_v36  ;;  %v1104_v47 = vpop.f32.mrb[12].mxu0  ;;  %v842_v25 = vld [vmem:[%s1321_s16 + $0xf8] sm:$0xff]  ;;  %v841_v30 = vld [vmem:[%s1321_s16 + $0xf0] sm:$0xff] }
 0x101   : > { %900 = vst.msk [vmem:[%s1338_s19 + $0xc8] sm:$0xff] %vm425_vm0, %v868_v31  ;;  %v806_v44 = vadd.f32 %v774_v28, %v724_v35  ;;  %v854_v49 = vadd.f32 %v822_v34, %v790_v40  ;;  %v654_v51 = vadd.f32 %v1104_v47, %v1315_v33  ;;  %v648_v54 = vpop.f32.mrb[13].mxu0 }
 0x102   : > { %899 = vst.msk [vmem:[%s1338_s19 + $0xc0] sm:$0xff] %vm425_vm0, %v867_v39  ;;  %v805_v50 = vadd.f32 %v773_v38, %v719_v43  ;;  %v1128_v52 = vpop.f32.mrb[12].mxu1  ;;  %v853_v57 = vadd.f32 %v821_v42, %v789_v45  ;;  %v649_v60 = vadd.f32 %v1315_v33, %v648_v54 }
 0x103   : > { %v870_v56 = vadd.f32 %v838_v41, %v806_v44  ;;  %v734_v59 = vadd.f32 %v1128_v52, %v1315_v33  ;;  %v728_v61 = vpop.f32.mrb[13].mxu1  ;;  %886 = vst.msk [vmem:[%s1338_s19 + $0x58] sm:$0xff] %vm425_vm0, %v854_v49  ;;  %v792_v0 = vadd.f32 %v760_v48, %v654_v51 }
 0x104   : > { %v869_v63 = vadd.f32 %v837_v46, %v805_v50  ;;  %v729_v3 = vadd.f32 %v1315_v33, %v728_v61  ;;  %885 = vst.msk [vmem:[%s1338_s19 + $0x50] sm:$0xff] %vm425_vm0, %v853_v57  ;;  %v791_v5 = vadd.f32 %v759_v55, %v649_v60  ;;  %v1107_v7 = vpop.f32.mrb[14].mxu0 }
 0x105   : > { %902 = vst.msk [vmem:[%s1338_s19 + $0xd8] sm:$0xff] %vm425_vm0, %v870_v56  ;;  %v808_v4 = vadd.f32 %v776_v53, %v734_v59  ;;  %v856_v9 = vadd.f32 %v824_v58, %v792_v0  ;;  %v664_v11 = vadd.f32 %v1107_v7, %v1315_v33  ;;  %v658_v14 = vpop.f32.mrb[15].mxu0 }
 0x106   : > { %901 = vst.msk [vmem:[%s1338_s19 + $0xd0] sm:$0xff] %vm425_vm0, %v869_v63  ;;  %v807_v10 = vadd.f32 %v775_v62, %v729_v3  ;;  %v1131_v12 = vpop.f32.mrb[14].mxu1  ;;  %v855_v17 = vadd.f32 %v823_v2, %v791_v5  ;;  %v659_v20 = vadd.f32 %v1315_v33, %v658_v14 }
 0x107   : > { %v872_v16 = vadd.f32 %v840_v1, %v808_v4  ;;  %v744_v19 = vadd.f32 %v1131_v12, %v1315_v33  ;;  %v738_v21 = vpop.f32.mrb[15].mxu1  ;;  %888 = vst.msk [vmem:[%s1338_s19 + $0x68] sm:$0xff] %vm425_vm0, %v856_v9  ;;  %v794_v24 = vadd.f32 %v762_v8, %v664_v11 }
 0x108   : > { %v871_v23 = vadd.f32 %v839_v6, %v807_v10  ;;  %v739_v27 = vadd.f32 %v1315_v33, %v738_v21  ;;  %887 = vst.msk [vmem:[%s1338_s19 + $0x60] sm:$0xff] %vm425_vm0, %v855_v17  ;;  %v793_v29 = vadd.f32 %v761_v15, %v659_v20 }
 0x109   : > { %904 = vst.msk [vmem:[%s1338_s19 + $0xe8] sm:$0xff] %vm425_vm0, %v872_v16  ;;  %v810_v28 = vadd.f32 %v778_v13, %v744_v19  ;;  %v858_v31 = vadd.f32 %v826_v18, %v794_v24 }
 0x10a   : > { %903 = vst.msk [vmem:[%s1338_s19 + $0xe0] sm:$0xff] %vm425_vm0, %v871_v23  ;;  %v809_v32 = vadd.f32 %v777_v22, %v739_v27  ;;  %v857_v35 = vadd.f32 %v825_v26, %v793_v29 }
 0x10b   : > { %v874_v34 = vadd.f32 %v842_v25, %v810_v28  ;;  %890 = vst.msk [vmem:[%s1338_s19 + $0x78] sm:$0xff] %vm425_vm0, %v858_v31 }
 0x10c   : > { %v873_v36 = vadd.f32 %v841_v30, %v809_v32  ;;  %889 = vst.msk [vmem:[%s1338_s19 + $0x70] sm:$0xff] %vm425_vm0, %v857_v35 }
 0x10d   : > { %906 = vst.msk [vmem:[%s1338_s19 + $0xf8] sm:$0xff] %vm425_vm0, %v874_v34 }
 0x10e   : > { %905 = vst.msk [vmem:[%s1338_s19 + $0xf0] sm:$0xff] %vm425_vm0, %v873_v36 }
 0x10f PF: > { %s16_s21 = sadd.s32 1, %s1148_s21  }
 0x110   : > { %p13_p4 = scmp.ge.s32.totalorder %s16_s21, 4  }
 0x112   :  { %15 = sbr.rel (!%p13_p4) target bundleno = 1 (0x1), region = 83 }

</bundles_post_ra>
